<compile_context>
chip_gen: v7x
topology: tpu7x:2x2x1
jax: 0.10.0
libtpu: 0.0.40
codegen_flags: <defaults>
</compile_context>

<pallas_src>
import math

import jax
import jax.numpy as jnp
import numpy as np
from jax.experimental import pallas as pl
from jax.experimental.pallas import tpu as pltpu

# ----------------------------- configuration -------------------------------
HIDDEN = 32            # hidden_size
NUM_LAYERS = 2         # num_layers
NUM_CLASSES = 10       # num_classes
ATTN_DIM = 16          # attention_dim
IN_FEATS = 21 * 2      # per-stream LSTM input size (42)
NUM_STREAMS = 5        # l, r, f2l, f2r, h2h
GATES = 4              # PyTorch gate order in weights: i, f, g, o


def _round_up(n, m):
    return ((n + m - 1) // m) * m


SH = NUM_STREAMS * HIDDEN                       # 160 live lanes (5 streams * 32)
GW = _round_up(SH, 128)                         # 256: padded per-gate lane width
XPAD = _round_up(NUM_STREAMS * IN_FEATS, 128)   # 256: padded frame-feature width
LOGIT_W = _round_up(NUM_CLASSES, 128)           # 128: padded logits width
# packed gate order (i, f, o, g): torch gate index -> packed gate position
PACKED_GATE = (0, 1, 3, 2)


# ------------------------- input preparation (glue) -------------------------
def prepare_input_frame(x):
    """JAX port of LSTMTransformerModel.prepare_input. x: (133, 2) -> (210,)."""
    x = x.astype(jnp.float32)
    source_body = x[0]
    source_left = x[100]
    source_right = x[121]
    body = x[:17]
    left = x[91:112]
    right = x[112:133]

    w_left = jnp.max(left[:, 0]) - jnp.min(left[:, 0])
    h_left = jnp.max(left[:, 1]) - jnp.min(left[:, 1])
    w_right = jnp.max(right[:, 0]) - jnp.min(right[:, 0])
    h_right = jnp.max(right[:, 1]) - jnp.min(right[:, 1])
    w_body = body[5, 0] - body[6, 0]
    h_body = 4.0 * w_body

    face2left = left - source_body
    face2right = right - source_body
    hand2hand = left - right
    left = left - source_left
    right = right - source_right

    one = jnp.ones((), jnp.float32)
    cond_l = (w_left != 0.0) & (h_left != 0.0)
    cond_r = (w_right != 0.0) & (h_right != 0.0)
    cond_b = (w_body != 0.0) & (h_body != 0.0)

    # NOTE: both jnp.where branches are evaluated; inf/nan in the unselected
    # branch is discarded by the select (matches the PyTorch conditional).
    left = jnp.where(cond_l, left / jnp.stack([w_left, h_left]), left)
    right = jnp.where(cond_r, right / jnp.stack([w_right, h_right]), right)
    face2left = jnp.where(cond_b, face2left / jnp.stack([w_body, one]), face2left)
    face2right = jnp.where(cond_b, face2right / jnp.stack([one, h_body]), face2right)
    hand2hand = jnp.where(cond_b, hand2hand / jnp.stack([w_body, h_body]), hand2hand)

    # stream order: l, r, f2l, f2r, h2h (matches the torch concat + slicing)
    return jnp.concatenate(
        [left, right, face2left, face2right, hand2hand], axis=0
    ).reshape(-1)                                 # (210,)


# ------------------------------- Pallas kernel ------------------------------
def lstm_seq_kernel(*refs):
    """Grid axis = time.  Per step: 2 LSTM layers (2 wide dots each) + tail dot.

    refs layout:
      [0] x_ref        (1, 1, XPAD)       f32   streamed per frame
      [1] state0_ref   (2L, GW)           f32   resident (read at t==0)
      per layer k: wx (K, 4GW) bf16, wh (GW, 4GW) bf16, b (1, 4GW) f32  resident
      [..] wcomb_ref   (GW, LOGIT_W)      bf16  resident (fuse . fc folded)
      [..] bcomb_ref   (1, LOGIT_W)       f32   resident
      outs: logits_ref (1, 1, LOGIT_W) streamed; state_out_ref (2L, GW) resident
      scratch: state_sc (2L, GW) f32 — h rows [0:L], c rows [L:2L], carried
               across grid steps.
    """
    nl = NUM_LAYERS
    x_ref, state0_ref = refs[0], refs[1]
    layer_refs = [refs[2 + 3 * k: 2 + 3 * (k + 1)] for k in range(nl)]
    wcomb_ref, bcomb_ref = refs[2 + 3 * nl], refs[3 + 3 * nl]
    logits_ref, state_out_ref = refs[4 + 3 * nl], refs[5 + 3 * nl]
    state_sc = refs[6 + 3 * nl]

    t = pl.program_id(0)
    f32, bf16 = jnp.float32, jnp.bfloat16

    @pl.when(t == 0)
    def _init():
        state_sc[...] = state0_ref[...]

    cur = x_ref[0].astype(bf16)                               # (1, XPAD/GW)

    for k in range(nl):
        wx_ref, wh_ref, b_ref = layer_refs[k]
        h_prev = state_sc[k:k + 1, :]                          # (1, GW) f32
        c_prev = state_sc[nl + k:nl + k + 1, :]                # (1, GW) f32

        # All 4 gates * 5 streams in one 1024-lane pre-activation row.
        z = (jnp.dot(cur, wx_ref[...], preferred_element_type=f32)
             + jnp.dot(h_prev.astype(bf16), wh_ref[...], preferred_element_type=f32)
             + b_ref[...])                                     # (1, 4*GW)

        ifo = jax.nn.sigmoid(z[:, :3 * GW])                    # i | f | o
        g_g = jnp.tanh(z[:, 3 * GW:])                          # g
        i_g = ifo[:, 0:GW]
        f_g = ifo[:, GW:2 * GW]
        o_g = ifo[:, 2 * GW:3 * GW]

        c_new = f_g * c_prev + i_g * g_g                       # (1, GW)
        h_new = o_g * jnp.tanh(c_new)                          # (1, GW)

        state_sc[k:k + 1, :] = h_new
        state_sc[nl + k:nl + k + 1, :] = c_new
        cur = h_new.astype(bf16)                               # next layer input

    # fuse -> (identity singleton attention) -> fc, folded into one affine
    logits = (jnp.dot(cur, wcomb_ref[...], preferred_element_type=f32)
              + bcomb_ref[...])                                # (1, LOGIT_W)
    logits_ref[...] = logits[None]

    # state is tiny; write every step so the final (single) writeback is valid
    state_out_ref[...] = state_sc[...]


# ------------------------------ wrapper / glue -------------------------------
def _const2(_t):
    return (0, 0)


def _make_call(T):
    in_specs = [
        pl.BlockSpec((1, 1, XPAD), lambda t: (t, 0, 0)),           # x (streamed)
        pl.BlockSpec((2 * NUM_LAYERS, GW), _const2),               # state0
    ]
    for k in range(NUM_LAYERS):
        kx_rows = XPAD if k == 0 else GW
        in_specs += [
            pl.BlockSpec((kx_rows, 4 * GW), _const2),              # wx[k]
            pl.BlockSpec((GW, 4 * GW), _const2),                   # wh[k]
            pl.BlockSpec((1, 4 * GW), _const2),                    # b[k]
        ]
    in_specs += [
        pl.BlockSpec((GW, LOGIT_W), _const2),                      # wcomb
        pl.BlockSpec((1, LOGIT_W), _const2),                       # bcomb
    ]
    out_specs = [
        pl.BlockSpec((1, 1, LOGIT_W), lambda t: (t, 0, 0)),        # logits/frame
        pl.BlockSpec((2 * NUM_LAYERS, GW), _const2),               # final state
    ]
    return pl.pallas_call(
        lstm_seq_kernel,
        out_shape=(jax.ShapeDtypeStruct((T, 1, LOGIT_W), jnp.float32),
                   jax.ShapeDtypeStruct((2 * NUM_LAYERS, GW), jnp.float32)),
        grid_spec=pltpu.PrefetchScalarGridSpec(
            num_scalar_prefetch=0,
            grid=(T,),
            in_specs=in_specs,
            out_specs=out_specs,
            scratch_shapes=[pltpu.VMEM((2 * NUM_LAYERS, GW), jnp.float32)],
        ),
        compiler_params=pltpu.CompilerParams(
            dimension_semantics=("arbitrary",)),   # time axis is recurrent
    )


@jax.jit
def lstm_transformer_forward_seq(x_seq, params, state0):
    """x_seq: (T, 133, 2) raw landmark frames; state0: (2L, GW) f32
    (rows [0:L]=h, [L:2L]=c, stream-major lanes [32s:32s+32], pad lanes zero).
    Returns (logits (T, NUM_CLASSES), new_state (2L, GW))."""
    T = x_seq.shape[0]
    feats = jax.vmap(prepare_input_frame)(x_seq)               # (T, 210)
    x_pad = jnp.zeros((T, 1, XPAD), jnp.float32)
    x_pad = x_pad.at[:, 0, :NUM_STREAMS * IN_FEATS].set(feats)

    args = [x_pad, state0]
    for k in range(NUM_LAYERS):
        args += [params["wx"][k], params["wh"][k], params["b"][k]]
    args += [params["wcomb"], params["bcomb"]]

    logits_pad, state_out = _make_call(T)(*args)
    return logits_pad[:, 0, :NUM_CLASSES], state_out


# ------------------------------ parameter init -------------------------------
def init_raw_params(key):
    """PyTorch-layout parameters (per stream, per layer)."""
    keys = iter(jax.random.split(key, 128))
    lstm_bound = 1.0 / math.sqrt(HIDDEN)

    def u(shape, bound):
        return jax.random.uniform(next(keys), shape, jnp.float32, -bound, bound)

    raw = {"w_ih": [], "w_hh": [], "b_ih": [], "b_hh": []}
    for k in range(NUM_LAYERS):
        in_k = IN_FEATS if k == 0 else HIDDEN
        raw["w_ih"].append([u((4 * HIDDEN, in_k), lstm_bound) for _ in range(NUM_STREAMS)])
        raw["w_hh"].append([u((4 * HIDDEN, HIDDEN), lstm_bound) for _ in range(NUM_STREAMS)])
        raw["b_ih"].append([u((4 * HIDDEN,), lstm_bound) for _ in range(NUM_STREAMS)])
        raw["b_hh"].append([u((4 * HIDDEN,), lstm_bound) for _ in range(NUM_STREAMS)])
    fuse_bound = 1.0 / math.sqrt(NUM_STREAMS * HIDDEN)
    att_bound = 1.0 / math.sqrt(HIDDEN)
    score_bound = 1.0 / math.sqrt(ATTN_DIM)
    raw["fuse_w"] = u((HIDDEN, NUM_STREAMS * HIDDEN), fuse_bound)
    raw["fuse_b"] = u((HIDDEN,), fuse_bound)
    raw["att_w"] = u((ATTN_DIM, HIDDEN), att_bound)
    raw["att_b"] = u((ATTN_DIM,), att_bound)
    raw["score_w"] = u((1, ATTN_DIM), score_bound)
    raw["score_b"] = u((1,), score_bound)
    raw["fc_w"] = u((NUM_CLASSES, HIDDEN), att_bound)
    raw["fc_b"] = u((NUM_CLASSES,), att_bound)
    return raw


def pack_params(raw):
    """Pack into lane-dense, tile-aligned slabs (weights bf16, biases f32).

    Gate layout (per layer, 4*GW = 1024 lanes, packed gate order i,f,o,g):
      column PACKED_GATE[gt]*GW + 32*s + u  <-  torch gate gt, stream s, unit u
    x-side rows: layer0 stream s at [42s:42(s+1)] (rows 210:256 zero);
    layer>=1 / h-side stream s at [32s:32(s+1)] (rows 160:256 zero).
    fuse -> fc is folded: Wcomb = (fc_w @ fuse_w)^T, bcomb = fc_w @ fuse_b + fc_b.
    """
    H = HIDDEN
    wx_list, wh_list, b_list = [], [], []
    for k in range(NUM_LAYERS):
        d = IN_FEATS if k == 0 else H
        kx_rows = XPAD if k == 0 else GW
        wx = np.zeros((kx_rows, 4 * GW), np.float32)
        wh = np.zeros((GW, 4 * GW), np.float32)
        bb = np.zeros((1, 4 * GW), np.float32)
        for s in range(NUM_STREAMS):
            wih = np.asarray(raw["w_ih"][k][s])           # (4H, d)
            whh = np.asarray(raw["w_hh"][k][s])           # (4H, H)
            bsum = np.asarray(raw["b_ih"][k][s]) + np.asarray(raw["b_hh"][k][s])
            for gt in range(GATES):
                col = PACKED_GATE[gt] * GW + H * s
                wx[d * s:d * (s + 1), col:col + H] = wih[gt * H:(gt + 1) * H, :].T
                wh[H * s:H * (s + 1), col:col + H] = whh[gt * H:(gt + 1) * H, :].T
                bb[0, col:col + H] = bsum[gt * H:(gt + 1) * H]
        wx_list.append(jnp.asarray(wx, jnp.bfloat16))
        wh_list.append(jnp.asarray(wh, jnp.bfloat16))
        b_list.append(jnp.asarray(bb, jnp.float32))

    fuse_w = np.asarray(raw["fuse_w"])                    # (H, 5H)
    fuse_b = np.asarray(raw["fuse_b"])                    # (H,)
    fc_w = np.asarray(raw["fc_w"])                        # (C, H)
    fc_b = np.asarray(raw["fc_b"])                        # (C,)
    w_comb = (fc_w @ fuse_w).T                            # (5H, C)
    b_comb = fc_w @ fuse_b + fc_b                         # (C,)
    wcomb = np.zeros((GW, LOGIT_W), np.float32)
    wcomb[:SH, :NUM_CLASSES] = w_comb
    bcomb = np.zeros((1, LOGIT_W), np.float32)
    bcomb[0, :NUM_CLASSES] = b_comb

    return {"wx": tuple(wx_list), "wh": tuple(wh_list), "b": tuple(b_list),
            "wcomb": jnp.asarray(wcomb, jnp.bfloat16),
            "bcomb": jnp.asarray(bcomb, jnp.float32)}


# -------------------------- pure-JAX reference check -------------------------
@jax.jit
def reference_step(raw, flat, h, c):
    """Faithful per-frame port of the PyTorch forward (incl. full attention)."""
    H = HIDDEN
    xs = flat.reshape(NUM_STREAMS, IN_FEATS)
    cur = [xs[s] for s in range(NUM_STREAMS)]
    h_new, c_new = h, c
    for k in range(NUM_LAYERS):
        nxt = []
        for s in range(NUM_STREAMS):
            z = (raw["w_ih"][k][s] @ cur[s] + raw["w_hh"][k][s] @ h[k, s]
                 + raw["b_ih"][k][s] + raw["b_hh"][k][s])
            i = jax.nn.sigmoid(z[0:H])
            f = jax.nn.sigmoid(z[H:2 * H])
            g = jnp.tanh(z[2 * H:3 * H])
            o = jax.nn.sigmoid(z[3 * H:4 * H])
            cc = f * c[k, s] + i * g
            hh = o * jnp.tanh(cc)
            h_new = h_new.at[k, s].set(hh)
            c_new = c_new.at[k, s].set(cc)
            nxt.append(hh)
        cur = nxt
    out = jnp.concatenate(cur)[None, :]                   # (1, 160)
    fused = out @ raw["fuse_w"].T + raw["fuse_b"]         # (1, 32)
    lstm_out = fused[:, None, :]                          # (1, 1, 32)
    att = jnp.tanh(lstm_out @ raw["att_w"].T + raw["att_b"])
    score = att @ raw["score_w"].T + raw["score_b"]       # (1, 1, 1)
    score = jax.nn.softmax(score, axis=1)                 # == 1.0 (length-1 seq)
    context = jnp.sum(score * lstm_out, axis=1)           # (1, 32)
    logits = context @ raw["fc_w"].T + raw["fc_b"]        # (1, 10)
    return logits[0], h_new, c_new


# ------------------------------------ main -----------------------------------
if __name__ == "__main__":
    key = jax.random.PRNGKey(0)
    kx, kp = jax.random.split(key)

    T = 8                                                 # frames per sequence
    x_seq = jax.random.uniform(kx, (T, 133, 2), jnp.float32)
    # keep the body-width normalizer (body[5,0]-body[6,0]) well conditioned so
    # the numerical comparison is not dominated by a near-zero divisor
    x_seq = x_seq.at[:, 5, 0].set(0.9).at[:, 6, 0].set(0.1)

    raw = init_raw_params(kp)
    params = pack_params(raw)

    # initialize_cell_and_hidden_state(): zero h/c for every stream & layer
    state0 = jnp.zeros((2 * NUM_LAYERS, GW), jnp.float32)

    logits, state_out = lstm_transformer_forward_seq(x_seq, params, state0)
    jax.block_until_ready((logits, state_out))

    # reference: call the (stateful) PyTorch-equivalent forward frame by frame
    h_ref = jnp.zeros((NUM_LAYERS, NUM_STREAMS, HIDDEN), jnp.float32)
    c_ref = jnp.zeros_like(h_ref)
    ref_logits = []
    for t in range(T):
        flat = prepare_input_frame(x_seq[t])
        lg, h_ref, c_ref = reference_step(raw, flat, h_ref, c_ref)
        ref_logits.append(lg)
    ref_logits = jnp.stack(ref_logits)

    # Tolerance covers bf16 MXU operand rounding accumulated over the T-step
    # recurrence; genuine layout / packing bugs show up as O(0.1+) errors.
    tol = dict(rtol=2e-2, atol=2e-2)
    np.testing.assert_allclose(np.asarray(logits), np.asarray(ref_logits), **tol)
    h_k = np.asarray(state_out[:NUM_LAYERS, :SH]).reshape(NUM_LAYERS, NUM_STREAMS, HIDDEN)
    c_k = np.asarray(state_out[NUM_LAYERS:, :SH]).reshape(NUM_LAYERS, NUM_STREAMS, HIDDEN)
    np.testing.assert_allclose(h_k, np.asarray(h_ref), **tol)
    np.testing.assert_allclose(c_k, np.asarray(c_ref), **tol)

    print("KERNEL_OK")
</pallas_src>

<mosaic_0001>
module attributes {stable_mosaic.version = 11 : i64} {
  func.func @lstm_seq_kernel(%arg0: i32, %arg1: memref<1x1x256xf32, #tpu.memory_space<vmem>>, %arg2: memref<4x256xf32, #tpu.memory_space<vmem>>, %arg3: memref<256x1024xbf16, #tpu.memory_space<vmem>>, %arg4: memref<256x1024xbf16, #tpu.memory_space<vmem>>, %arg5: memref<1x1024xf32, #tpu.memory_space<vmem>>, %arg6: memref<256x1024xbf16, #tpu.memory_space<vmem>>, %arg7: memref<256x1024xbf16, #tpu.memory_space<vmem>>, %arg8: memref<1x1024xf32, #tpu.memory_space<vmem>>, %arg9: memref<256x128xbf16, #tpu.memory_space<vmem>>, %arg10: memref<1x128xf32, #tpu.memory_space<vmem>>, %arg11: memref<1x1x128xf32, #tpu.memory_space<vmem>>, %arg12: memref<4x256xf32, #tpu.memory_space<vmem>>, %arg13: memref<4x256xf32, #tpu.memory_space<vmem>>) attributes {dimension_semantics = [#tpu.dimension_semantics<arbitrary>], iteration_bounds = array<i64: 8>, scalar_prefetch = 0 : i64, scratch_operands = 1 : i64, tpu.core_type = #tpu.core_type<tc>, window_params = [{transform_indices = @transform_0, window_bounds = array<i64: 1, 1, 256>}, {pipeline_mode = #tpu.pipeline_mode<synchronous>, transform_indices = @transform_1, window_bounds = array<i64: 4, 256>}, {pipeline_mode = #tpu.pipeline_mode<synchronous>, transform_indices = @transform_2, window_bounds = array<i64: 256, 1024>}, {pipeline_mode = #tpu.pipeline_mode<synchronous>, transform_indices = @transform_3, window_bounds = array<i64: 256, 1024>}, {pipeline_mode = #tpu.pipeline_mode<synchronous>, transform_indices = @transform_4, window_bounds = array<i64: 1, 1024>}, {pipeline_mode = #tpu.pipeline_mode<synchronous>, transform_indices = @transform_5, window_bounds = array<i64: 256, 1024>}, {pipeline_mode = #tpu.pipeline_mode<synchronous>, transform_indices = @transform_6, window_bounds = array<i64: 256, 1024>}, {pipeline_mode = #tpu.pipeline_mode<synchronous>, transform_indices = @transform_7, window_bounds = array<i64: 1, 1024>}, {pipeline_mode = #tpu.pipeline_mode<synchronous>, transform_indices = @transform_8, window_bounds = array<i64: 256, 128>}, {pipeline_mode = #tpu.pipeline_mode<synchronous>, transform_indices = @transform_9, window_bounds = array<i64: 1, 128>}, {transform_indices = @transform_10, window_bounds = array<i64: 1, 1, 128>}, {pipeline_mode = #tpu.pipeline_mode<synchronous>, transform_indices = @transform_11, window_bounds = array<i64: 4, 256>}]} {
    %c0_i32 = arith.constant 0 : i32
    %0 = arith.cmpi eq, %arg0, %c0_i32 : i32
    %1 = arith.extui %0 : i1 to i32
    %c0_i32_0 = arith.constant 0 : i32
    %2 = arith.cmpi ne, %1, %c0_i32_0 : i32
    scf.if %2 {
      %c0_45 = arith.constant 0 : index
      %c0_46 = arith.constant 0 : index
      %72 = vector.load %arg2[%c0_45, %c0_46] : memref<4x256xf32, #tpu.memory_space<vmem>>, vector<4x256xf32>
      %c0_47 = arith.constant 0 : index
      %c0_48 = arith.constant 0 : index
      %73 = vector.load %arg13[%c0_47, %c0_48] : memref<4x256xf32, #tpu.memory_space<vmem>>, vector<4x256xf32>
      tpu.vector_store %arg13[%c0_47, %c0_48], %72 {strides = array<i32>} : memref<4x256xf32, #tpu.memory_space<vmem>>, vector<4x256xf32>,
    } else {
    }
    %c0 = arith.constant 0 : index
    %c0_1 = arith.constant 0 : index
    %c0_2 = arith.constant 0 : index
    %3 = vector.load %arg1[%c0, %c0_1, %c0_2] : memref<1x1x256xf32, #tpu.memory_space<vmem>>, vector<1x1x256xf32>
    %4 = vector.shape_cast %3 : vector<1x1x256xf32> to vector<1x256xf32>
    %5 = arith.truncf %4 : vector<1x256xf32> to vector<1x256xbf16>
    %c0_3 = arith.constant 0 : index
    %c0_4 = arith.constant 0 : index
    %6 = vector.load %arg13[%c0_3, %c0_4] : memref<4x256xf32, #tpu.memory_space<vmem>>, vector<1x256xf32>
    %c2 = arith.constant 2 : index
    %c0_5 = arith.constant 0 : index
    %7 = vector.load %arg13[%c2, %c0_5] : memref<4x256xf32, #tpu.memory_space<vmem>>, vector<1x256xf32>
    %c0_6 = arith.constant 0 : index
    %c0_7 = arith.constant 0 : index
    %8 = vector.load %arg3[%c0_6, %c0_7] : memref<256x1024xbf16, #tpu.memory_space<vmem>>, vector<256x1024xbf16>
    %cst = arith.constant dense<0.000000e+00> : vector<1x1024xf32>
    %9 = tpu.matmul %5, %8, %cst {dimension_numbers = #tpu.dot_dimension_numbers<[1], [0], [0], [1], [0, 0, 1, 1], [], []>} : vector<1x256xbf16>, vector<256x1024xbf16>, vector<1x1024xf32> -> vector<1x1024xf32>
    %10 = arith.truncf %6 : vector<1x256xf32> to vector<1x256xbf16>
    %c0_8 = arith.constant 0 : index
    %c0_9 = arith.constant 0 : index
    %11 = vector.load %arg4[%c0_8, %c0_9] : memref<256x1024xbf16, #tpu.memory_space<vmem>>, vector<256x1024xbf16>
    %cst_10 = arith.constant dense<0.000000e+00> : vector<1x1024xf32>
    %12 = tpu.matmul %10, %11, %cst_10 {dimension_numbers = #tpu.dot_dimension_numbers<[1], [0], [0], [1], [0, 0, 1, 1], [], []>} : vector<1x256xbf16>, vector<256x1024xbf16>, vector<1x1024xf32> -> vector<1x1024xf32>
    %13 = arith.addf %9, %12 : vector<1x1024xf32>
    %c0_11 = arith.constant 0 : index
    %c0_12 = arith.constant 0 : index
    %14 = vector.load %arg5[%c0_11, %c0_12] : memref<1x1024xf32, #tpu.memory_space<vmem>>, vector<1x1024xf32>
    %15 = arith.addf %13, %14 : vector<1x1024xf32>
    %16 = vector.extract_strided_slice %15 {offsets = [0, 0], sizes = [1, 768], strides = [1, 1]} : vector<1x1024xf32> to vector<1x768xf32>
    %17 = arith.negf %16 : vector<1x768xf32>
    %18 = math.exp %17 : vector<1x768xf32>
    %cst_13 = arith.constant 1.000000e+00 : f32
    %19 = vector.broadcast %cst_13 : f32 to vector<1x768xf32>
    %20 = arith.addf %19, %18 : vector<1x768xf32>
    %21 = arith.divf %19, %20 : vector<1x768xf32>
    %22 = vector.extract_strided_slice %15 {offsets = [0, 768], sizes = [1, 256], strides = [1, 1]} : vector<1x1024xf32> to vector<1x256xf32>
    %23 = math.tanh %22 : vector<1x256xf32>
    %24 = vector.extract_strided_slice %21 {offsets = [0, 0], sizes = [1, 256], strides = [1, 1]} : vector<1x768xf32> to vector<1x256xf32>
    %25 = vector.extract_strided_slice %21 {offsets = [0, 256], sizes = [1, 256], strides = [1, 1]} : vector<1x768xf32> to vector<1x256xf32>
    %26 = vector.extract_strided_slice %21 {offsets = [0, 512], sizes = [1, 256], strides = [1, 1]} : vector<1x768xf32> to vector<1x256xf32>
    %27 = arith.mulf %25, %7 : vector<1x256xf32>
    %28 = arith.mulf %24, %23 : vector<1x256xf32>
    %29 = arith.addf %27, %28 : vector<1x256xf32>
    %30 = math.tanh %29 : vector<1x256xf32>
    %31 = arith.mulf %26, %30 : vector<1x256xf32>
    %c0_14 = arith.constant 0 : index
    %c0_15 = arith.constant 0 : index
    %32 = vector.load %arg13[%c0_14, %c0_15] : memref<4x256xf32, #tpu.memory_space<vmem>>, vector<1x256xf32>
    tpu.vector_store %arg13[%c0_14, %c0_15], %31 {strides = array<i32>} : memref<4x256xf32, #tpu.memory_space<vmem>>, vector<1x256xf32>,
    %c2_16 = arith.constant 2 : index
    %c0_17 = arith.constant 0 : index
    %33 = vector.load %arg13[%c2_16, %c0_17] : memref<4x256xf32, #tpu.memory_space<vmem>>, vector<1x256xf32>
    tpu.vector_store %arg13[%c2_16, %c0_17], %29 {strides = array<i32>} : memref<4x256xf32, #tpu.memory_space<vmem>>, vector<1x256xf32>,
    %34 = arith.truncf %31 : vector<1x256xf32> to vector<1x256xbf16>
    %c1 = arith.constant 1 : index
    %c0_18 = arith.constant 0 : index
    %35 = vector.load %arg13[%c1, %c0_18] : memref<4x256xf32, #tpu.memory_space<vmem>>, vector<1x256xf32>
    %c3 = arith.constant 3 : index
    %c0_19 = arith.constant 0 : index
    %36 = vector.load %arg13[%c3, %c0_19] : memref<4x256xf32, #tpu.memory_space<vmem>>, vector<1x256xf32>
    %c0_20 = arith.constant 0 : index
    %c0_21 = arith.constant 0 : index
    %37 = vector.load %arg6[%c0_20, %c0_21] : memref<256x1024xbf16, #tpu.memory_space<vmem>>, vector<256x1024xbf16>
    %cst_22 = arith.constant dense<0.000000e+00> : vector<1x1024xf32>
    %38 = tpu.matmul %34, %37, %cst_22 {dimension_numbers = #tpu.dot_dimension_numbers<[1], [0], [0], [1], [0, 0, 1, 1], [], []>} : vector<1x256xbf16>, vector<256x1024xbf16>, vector<1x1024xf32> -> vector<1x1024xf32>
    %39 = arith.truncf %35 : vector<1x256xf32> to vector<1x256xbf16>
    %c0_23 = arith.constant 0 : index
    %c0_24 = arith.constant 0 : index
    %40 = vector.load %arg7[%c0_23, %c0_24] : memref<256x1024xbf16, #tpu.memory_space<vmem>>, vector<256x1024xbf16>
    %cst_25 = arith.constant dense<0.000000e+00> : vector<1x1024xf32>
    %41 = tpu.matmul %39, %40, %cst_25 {dimension_numbers = #tpu.dot_dimension_numbers<[1], [0], [0], [1], [0, 0, 1, 1], [], []>} : vector<1x256xbf16>, vector<256x1024xbf16>, vector<1x1024xf32> -> vector<1x1024xf32>
    %42 = arith.addf %38, %41 : vector<1x1024xf32>
    %c0_26 = arith.constant 0 : index
    %c0_27 = arith.constant 0 : index
    %43 = vector.load %arg8[%c0_26, %c0_27] : memref<1x1024xf32, #tpu.memory_space<vmem>>, vector<1x1024xf32>
    %44 = arith.addf %42, %43 : vector<1x1024xf32>
    %45 = vector.extract_strided_slice %44 {offsets = [0, 0], sizes = [1, 768], strides = [1, 1]} : vector<1x1024xf32> to vector<1x768xf32>
    %46 = arith.negf %45 : vector<1x768xf32>
    %47 = math.exp %46 : vector<1x768xf32>
    %cst_28 = arith.constant 1.000000e+00 : f32
    %48 = vector.broadcast %cst_28 : f32 to vector<1x768xf32>
    %49 = arith.addf %48, %47 : vector<1x768xf32>
    %50 = arith.divf %48, %49 : vector<1x768xf32>
    %51 = vector.extract_strided_slice %44 {offsets = [0, 768], sizes = [1, 256], strides = [1, 1]} : vector<1x1024xf32> to vector<1x256xf32>
    %52 = math.tanh %51 : vector<1x256xf32>
    %53 = vector.extract_strided_slice %50 {offsets = [0, 0], sizes = [1, 256], strides = [1, 1]} : vector<1x768xf32> to vector<1x256xf32>
    %54 = vector.extract_strided_slice %50 {offsets = [0, 256], sizes = [1, 256], strides = [1, 1]} : vector<1x768xf32> to vector<1x256xf32>
    %55 = vector.extract_strided_slice %50 {offsets = [0, 512], sizes = [1, 256], strides = [1, 1]} : vector<1x768xf32> to vector<1x256xf32>
    %56 = arith.mulf %54, %36 : vector<1x256xf32>
    %57 = arith.mulf %53, %52 : vector<1x256xf32>
    %58 = arith.addf %56, %57 : vector<1x256xf32>
    %59 = math.tanh %58 : vector<1x256xf32>
    %60 = arith.mulf %55, %59 : vector<1x256xf32>
    %c1_29 = arith.constant 1 : index
    %c0_30 = arith.constant 0 : index
    %61 = vector.load %arg13[%c1_29, %c0_30] : memref<4x256xf32, #tpu.memory_space<vmem>>, vector<1x256xf32>
    tpu.vector_store %arg13[%c1_29, %c0_30], %60 {strides = array<i32>} : memref<4x256xf32, #tpu.memory_space<vmem>>, vector<1x256xf32>,
    %c3_31 = arith.constant 3 : index
    %c0_32 = arith.constant 0 : index
    %62 = vector.load %arg13[%c3_31, %c0_32] : memref<4x256xf32, #tpu.memory_space<vmem>>, vector<1x256xf32>
    tpu.vector_store %arg13[%c3_31, %c0_32], %58 {strides = array<i32>} : memref<4x256xf32, #tpu.memory_space<vmem>>, vector<1x256xf32>,
    %63 = arith.truncf %60 : vector<1x256xf32> to vector<1x256xbf16>
    %c0_33 = arith.constant 0 : index
    %c0_34 = arith.constant 0 : index
    %64 = vector.load %arg9[%c0_33, %c0_34] : memref<256x128xbf16, #tpu.memory_space<vmem>>, vector<256x128xbf16>
    %cst_35 = arith.constant dense<0.000000e+00> : vector<1x128xf32>
    %65 = tpu.matmul %63, %64, %cst_35 {dimension_numbers = #tpu.dot_dimension_numbers<[1], [0], [0], [1], [0, 0, 1, 1], [], []>} : vector<1x256xbf16>, vector<256x128xbf16>, vector<1x128xf32> -> vector<1x128xf32>
    %c0_36 = arith.constant 0 : index
    %c0_37 = arith.constant 0 : index
    %66 = vector.load %arg10[%c0_36, %c0_37] : memref<1x128xf32, #tpu.memory_space<vmem>>, vector<1x128xf32>
    %67 = arith.addf %65, %66 : vector<1x128xf32>
    %68 = vector.shape_cast %67 : vector<1x128xf32> to vector<1x1x128xf32>
    %c0_38 = arith.constant 0 : index
    %c0_39 = arith.constant 0 : index
    %c0_40 = arith.constant 0 : index
    %69 = vector.load %arg11[%c0_38, %c0_39, %c0_40] : memref<1x1x128xf32, #tpu.memory_space<vmem>>, vector<1x1x128xf32>
    tpu.vector_store %arg11[%c0_38, %c0_39, %c0_40], %68 {strides = array<i32>} : memref<1x1x128xf32, #tpu.memory_space<vmem>>, vector<1x1x128xf32>,
    %c0_41 = arith.constant 0 : index
    %c0_42 = arith.constant 0 : index
    %70 = vector.load %arg13[%c0_41, %c0_42] : memref<4x256xf32, #tpu.memory_space<vmem>>, vector<4x256xf32>
    %c0_43 = arith.constant 0 : index
    %c0_44 = arith.constant 0 : index
    %71 = vector.load %arg12[%c0_43, %c0_44] : memref<4x256xf32, #tpu.memory_space<vmem>>, vector<4x256xf32>
    tpu.vector_store %arg12[%c0_43, %c0_44], %70 {strides = array<i32>} : memref<4x256xf32, #tpu.memory_space<vmem>>, vector<4x256xf32>,
    return
  }
  func.func @transform_0(%arg0: i32) -> (i32, i32, i32) {
    %c0_i32 = arith.constant 0 : i32
    %c0_i32_0 = arith.constant 0 : i32
    %c0_i32_1 = arith.constant 0 : i32
    return %arg0, %c0_i32, %c0_i32_0 : i32, i32, i32
  }
  func.func @transform_1(%arg0: i32) -> (i32, i32) {
    %c0_i32 = arith.constant 0 : i32
    %c0_i32_0 = arith.constant 0 : i32
    %c0_i32_1 = arith.constant 0 : i32
    return %c0_i32, %c0_i32_0 : i32, i32
  }
  func.func @transform_2(%arg0: i32) -> (i32, i32) {
    %c0_i32 = arith.constant 0 : i32
    %c0_i32_0 = arith.constant 0 : i32
    %c0_i32_1 = arith.constant 0 : i32
    return %c0_i32, %c0_i32_0 : i32, i32
  }
  func.func @transform_3(%arg0: i32) -> (i32, i32) {
    %c0_i32 = arith.constant 0 : i32
    %c0_i32_0 = arith.constant 0 : i32
    %c0_i32_1 = arith.constant 0 : i32
    return %c0_i32, %c0_i32_0 : i32, i32
  }
  func.func @transform_4(%arg0: i32) -> (i32, i32) {
    %c0_i32 = arith.constant 0 : i32
    %c0_i32_0 = arith.constant 0 : i32
    %c0_i32_1 = arith.constant 0 : i32
    return %c0_i32, %c0_i32_0 : i32, i32
  }
  func.func @transform_5(%arg0: i32) -> (i32, i32) {
    %c0_i32 = arith.constant 0 : i32
    %c0_i32_0 = arith.constant 0 : i32
    %c0_i32_1 = arith.constant 0 : i32
    return %c0_i32, %c0_i32_0 : i32, i32
  }
  func.func @transform_6(%arg0: i32) -> (i32, i32) {
    %c0_i32 = arith.constant 0 : i32
    %c0_i32_0 = arith.constant 0 : i32
    %c0_i32_1 = arith.constant 0 : i32
    return %c0_i32, %c0_i32_0 : i32, i32
  }
  func.func @transform_7(%arg0: i32) -> (i32, i32) {
    %c0_i32 = arith.constant 0 : i32
    %c0_i32_0 = arith.constant 0 : i32
    %c0_i32_1 = arith.constant 0 : i32
    return %c0_i32, %c0_i32_0 : i32, i32
  }
  func.func @transform_8(%arg0: i32) -> (i32, i32) {
    %c0_i32 = arith.constant 0 : i32
    %c0_i32_0 = arith.constant 0 : i32
    %c0_i32_1 = arith.constant 0 : i32
    return %c0_i32, %c0_i32_0 : i32, i32
  }
  func.func @transform_9(%arg0: i32) -> (i32, i32) {
    %c0_i32 = arith.constant 0 : i32
    %c0_i32_0 = arith.constant 0 : i32
    %c0_i32_1 = arith.constant 0 : i32
    return %c0_i32, %c0_i32_0 : i32, i32
  }
  func.func @transform_10(%arg0: i32) -> (i32, i32, i32) {
    %c0_i32 = arith.constant 0 : i32
    %c0_i32_0 = arith.constant 0 : i32
    %c0_i32_1 = arith.constant 0 : i32
    return %arg0, %c0_i32, %c0_i32_0 : i32, i32, i32
  }
  func.func @transform_11(%arg0: i32) -> (i32, i32) {
    %c0_i32 = arith.constant 0 : i32
    %c0_i32_0 = arith.constant 0 : i32
    %c0_i32_1 = arith.constant 0 : i32
    return %c0_i32, %c0_i32_0 : i32, i32
  }
}

</mosaic_0001>

<bundles_post_ra>
// kernel: lstm_transformer_forward_seq.1
= control target key start
LH: loop header
LB: loop body
LE: loop exit
PB: predicated region body
PF: predicated region fallthrough
CT: control target
= control target key end

     0   :  { %s6692_s0 = inlined_call_operand.vmem [shape: f32[8,1,256], index: 0, kind: input, shape index: {}]   ;;  %s6693_s1 = inlined_call_operand.vmem [shape: f32[4,256], index: 1, kind: input, shape index: {}]   ;;  %s6694_s2 = inlined_call_operand.vmem [shape: bf16[256,1024], index: 2, kind: input, shape index: {}]   ;;  %s6695_s3 = inlined_call_operand.hbm [shape: bf16[256,1024], index: 3, kind: input, shape index: {}]   ;;  %s6696_s4 = inlined_call_operand.vmem [shape: f32[1,1024], index: 4, kind: input, shape index: {}]   ;;  %s6697_s5 = inlined_call_operand.hbm [shape: bf16[256,1024], index: 5, kind: input, shape index: {}]   ;;  %s6698_s6 = inlined_call_operand.hbm [shape: bf16[256,1024], index: 6, kind: input, shape index: {}]   ;;  %s6699_s7 = inlined_call_operand.vmem [shape: f32[1,1024], index: 7, kind: input, shape index: {}]   ;;  %s6700_s8 = inlined_call_operand.vmem [shape: bf16[256,128], index: 8, kind: input, shape index: {}]   ;;  %s6701_s9 = inlined_call_operand.vmem [shape: f32[1,128], index: 9, kind: input, shape index: {}]   ;;  %s6702_s10 = inlined_call_operand.hbm [shape: f32[8,1,128], index: 10, kind: output, shape index: {0}]   ;;  %s6703_s11 = inlined_call_operand.hbm [shape: f32[4,256], index: 11, kind: output, shape index: {1}]  }
   0x1   :  { %6715 = sst [smem:[#allocation22_spill]] %s6702_s10 }
   0x2   :  { %17 = vsyncpa [#allocation4], 0 }
   0x3   :  { %18 = vsyncpa [#allocation7], 0 }
   0x4   :  { %19 = vsyncpa [#allocation5], 0 }
   0x5   :  { %21 = vsyncpa [#allocation5 + $0x1], 0 }
   0x6   :  { %22 = vsyncpa [#allocation11], 0  ;;  %s5794_s17 = smov 0   ;;  %s5796_s18 = smov 0  }
   0x7   :  { %s5798_s19 = smov 0   ;;  %s5800_s20 = smov 0  }
   0x8 LB: > { %6716 = sst [smem:[#allocation16_spill]] %s5712_s17  ;;  %s5815_s21 = sadd.s32 4294967295, %s5724_s20   ;;  %s5724_s20 = sphi %s5800_s20, %s6746_s20   ;;  %s5720_s19 = sphi %s5798_s19, %s6748_s19   ;;  %s5716_s18 = sphi %s5796_s18, %s6750_s18   ;;  %s5712_s17 = sphi %s5794_s17, %s6749_s17  }
   0x9   : > { %6717 = sst [smem:[#allocation17_spill]] %s5720_s19  ;;  %s4801_s22 = sadd.s32 4294967294, %s5724_s20  }
   0xa   : > { %6718 = sst [smem:[#allocation18_spill]] %s5724_s20  ;;  %s5819_s23 = sadd.s32 1, %s5724_s20  }
   0xb   : > { %6719 = sst [smem:[#allocation19_spill]] %s5819_s23  ;;  %s250_s24 = sadd.s32 1, %s5720_s19 }
   0xc   : > { %s247_s25 = ssub.s32 %s5724_s20, %s5819_s23  ;;  %p260_p0 = scmp.ne.s32.totalorder %s5720_s19, %s5716_s18 }
   0xd   : > { %p248_p1 = scmp.eq.s32.totalorder %s247_s25, 0  ;;  %p6707_p2 = scmp.eq.s32.totalorder %s5815_s21, 7 }
   0xe   : > { %p266_p3 = scmp.ne.s32.totalorder %s5716_s18, %s5712_s17  ;;  %p267_p4 = scmp.eq.s32.totalorder %s4801_s22, 7 }
   0xf   : > { %s5830_s26 = scalar_select %p248_p1, %s5720_s19, %s250_s24  }
  0x10   : > { %p5834_p5 = por %p6707_p2, %p260_p0  ;;  %p5838_p6 = por %p267_p4, %p266_p3 }
  0x11   : > { %6720 = sst [smem:[#allocation20_spill]] %s5830_s26  ;;  %p4802_p7 = scmp.ge.s32.totalorder %s5724_s20, 1 }
  0x12   : > { %s6721_s27 = scalar_select %p5834_p5, 1, 0 }
  0x13   : > { %s6722_s28 = scalar_select %p5838_p6, 1, 0 }
  0x14   : > { %p295_p8 = scmp.lt.s32.totalorder %s5724_s20, 9  ;;  %p6708_p10 = scmp.eq.s32.totalorder %s5815_s21, 0 }
  0x15   : > { %6723 = sst [smem:[#allocation21_spill]] %s6722_s28  ;;  %s5726_s30 = smov [#allocation6]  }
  0x16   : > { %p5846_p11 = pnand %p4802_p7, %p295_p8  ;;  %s329_s12 = sshll.u32 %s5726_s30, 4  ;;  %s5852_s12 = int_to_ptr.vmem [resolvable:$true] %s329_s12 }
  0x17   : > { %s5727_s14 = smov [#allocation3]   ;;  %s5728_s16 = smov [#allocation8]  }
  0x18   : > { %s6724_s29 = scalar_select %p5846_p11, 1, 0 }
  0x19   : > { %p5398_p12 = pneg %p5846_p11  ;;  %s313_s15 = sshll.u32 %s5727_s14, 4  ;;  %s5860_s15 = int_to_ptr.vmem [resolvable:$true] %s313_s15 }
  0x1a   : > { %s5862_s22 = sshll.u32 %s5728_s16, 4  ;;  %s5540_s26 = scalar_lea.hbm %s6697_s5, 16384  ;;  %s343_s22 = int_to_ptr.vmem [resolvable:$true] %s5862_s22 }
  0x1b   : > { %p5856_p13 = pnand %p6708_p10, %p5398_p12  ;;  %p5541_p0 = scmp.ne.s32.totalorder %s6697_s5, %s5540_s26 }
  0x1c   : > { %p5547_p7 = scmp.lt.u32.totalorder %s5540_s26, %s6697_s5 }
  0x1d   : > { %p5872_p1 = pneg %p5856_p13 }
  0x1f   : > { %p5543_p3 = pnand %p5872_p1, %p5541_p0 }
  0x21   : > { %p5544_p4 = pneg %p5543_p3 }
  0x23   : > { %p5549_p8 = pnand %p5547_p7, %p5544_p4 }
  0x25   : > { %5552 = shalt.err (!%p5549_p8)
}
  0x26   : > { %s5553_s19 = scalar_lea.vmem %s5852_s12, 16384  ;;  %p5561_p10 = scmp.lt.s32.totalorder %s5852_s12, %s5852_s12 }
  0x27   : > { %p5554_p12 = scmp.ne.s32.totalorder %s5852_s12, %s5553_s19  ;;  %p5562_p6 = scmp.lt.s32.totalorder %s5553_s19, %s5553_s19 }
  0x29   : > { %p5556_p2 = pnand %p5554_p12, %p5872_p1  ;;  %p5563_p0 = por %p5562_p6, %p5561_p10 }
  0x2b   : > { %p5557_p9 = pneg %p5556_p2 }
  0x2d   : > { %p5564_p3 = pnand %p5563_p0, %p5557_p9 }
  0x2f   : > { %5567 = shalt.err (!%p5564_p3)
}
  0x30   : > { %s5729_s24 = smov 512   ;;  %s5730_s26 = smov 32  }
  0x31   : > { %5404 = dma.hbm_to_vmem [thread:$0]  (!%p5856_p13), %s6697_s5, 16384, %s5852_s12, [#allocation7], %s5729_s24, %s5729_s24, %s5730_s26  }
  0x32   : > { %s5568_s19 = scalar_lea.hbm %s6695_s3, 16384 }
  0x33   : > { %p5569_p2 = scmp.ne.s32.totalorder %s6695_s3, %s5568_s19  ;;  %p5575_p10 = scmp.lt.u32.totalorder %s5568_s19, %s6695_s3 }
  0x35   : > { %p5571_p6 = pnand %p5569_p2, %p5872_p1 }
  0x37   : > { %p5572_p9 = pneg %p5571_p6 }
  0x39   : > { %p5577_p4 = pnand %p5575_p10, %p5572_p9 }
  0x3b   : > { %5580 = shalt.err (!%p5577_p4)
}
  0x3c   : > { %s5581_s12 = scalar_lea.vmem %s5860_s15, 16384  ;;  %p5589_p0 = scmp.lt.s32.totalorder %s5860_s15, %s5860_s15 }
  0x3d   : > { %p5582_p7 = scmp.ne.s32.totalorder %s5860_s15, %s5581_s12  ;;  %p5590_p3 = scmp.lt.s32.totalorder %s5581_s12, %s5581_s12 }
  0x3f   : > { %p5584_p8 = pnand %p5582_p7, %p5872_p1  ;;  %p5591_p2 = por %p5590_p3, %p5589_p0 }
  0x41   : > { %p5585_p12 = pneg %p5584_p8 }
  0x43   : > { %p5592_p6 = pnand %p5591_p2, %p5585_p12 }
  0x45   : > { %5595 = shalt.err (!%p5592_p6)
}
  0x46   : > { %5401 = dma.hbm_to_vmem [thread:$0]  (!%p5856_p13), %s6695_s3, 16384, %s5860_s15, [#allocation4], %s5729_s24, %s5729_s24, %s5730_s26  }
  0x47   : > { %s5596_s25 = scalar_lea.hbm %s6698_s6, 16384 }
  0x48   : > { %p5597_p9 = scmp.ne.s32.totalorder %s6698_s6, %s5596_s25  ;;  %p5603_p7 = scmp.lt.u32.totalorder %s5596_s25, %s6698_s6 }
  0x4a   : > { %p5599_p10 = pnand %p5597_p9, %p5872_p1 }
  0x4c   : > { %p5600_p4 = pneg %p5599_p10 }
  0x4e   : > { %p5605_p8 = pnand %p5603_p7, %p5600_p4 }
  0x50   : > { %5608 = shalt.err (!%p5605_p8)
}
  0x51   : > { %s5609_s12 = scalar_lea.vmem %s343_s22, 16384  ;;  %p5617_p2 = scmp.lt.s32.totalorder %s343_s22, %s343_s22 }
  0x52   : > { %p5610_p12 = scmp.ne.s32.totalorder %s343_s22, %s5609_s12  ;;  %p5618_p6 = scmp.lt.s32.totalorder %s5609_s12, %s5609_s12 }
  0x54   : > { %p5612_p0 = pnand %p5610_p12, %p5872_p1  ;;  %p5619_p5 = por %p5618_p6, %p5617_p2 }
  0x56   : > { %p5613_p3 = pneg %p5612_p0 }
  0x58   : > { %p5620_p11 = pnand %p5619_p5, %p5613_p3 }
  0x5a   : > { %5623 = shalt.err (!%p5620_p11)
}
  0x5b   : > { %5407 = dma.hbm_to_vmem [thread:$0]  (!%p5856_p13), %s6698_s6, 16384, %s343_s22, [#allocation7], %s5729_s24, %s5729_s24, %s5730_s26  }
  0x5c   : > { %p6727_p9 = scmp.ne.s32.totalorder %s6724_s29, 0 }
  0x5d   : > { %p6728_p1 = scmp.eq.s32.totalorder (!%p6727_p9), %s5815_s21, 0 }
  0x5e   : > { %374 = sbr.rel (%p6727_p9) target bundleno = 1176 (0x498), region = 60 }
  0x65   : > { %5695 = dma.done.wait (%p6728_p1), [#allocation4], 16384   ;;  %p6729_p10 = pmov %p6728_p1 }
  0x66   : > { %p6730_p5 = pmov %p6728_p1 }
  0x67   : > { %5697 = vsyncadd (%p6729_p10), [#allocation4], 4294950912 }
  0x68   : > { %5699 = dma.done.wait (%p6730_p5), [#allocation7], 32768   ;;  %p6731_p11 = pmov %p6728_p1 }
  0x69   : > { %s416_s23 = sand.u32 1, %s5716_s18   ;;  %p420_p13 = scmp.lt.s32.totalorder %s5815_s21, 7 }
  0x6a   : > { %5701 = vsyncadd (%p6731_p11), [#allocation7], 4294934528  ;;  %s5964_s17 = scalar_lea.vmem [#allocation9], %s416_s23  ;;  %p6732_p4 = scmp.ne.s32.totalorder %s5815_s21, 0 }
  0x6b   : > { %s421_s29 = scalar_select %p420_p13, %s5815_s21, 7 }
  0x6c   : > { %428 = sbr.rel (%p6732_p4) target bundleno = 115 (0x73), region = 76  ;;  %v429_v0 = vld [vmem:[%s6693_s1] sm:$0xff] (!%p6732_p4) }
  0x6d   : > { %s4811_s13 = sshll.u32 %s421_s29, 1  ;;  %430 = vst [vmem:[#allocation2] sm:$0xff] (!%p6732_p4), %v429_v0 }
  0x6e   : > { %s5960_s26 = scalar_lea.vmem %s6692_s0, %s4811_s13 }
  0x73 PF: > { %v589_v1 = vld [vmem:[#allocation3] sm:$0xff]  ;;  %v590_v3 = vld [vmem:[#allocation3 + $0x8] sm:$0xff]  ;;  %v433_v33 = vlaneseq  ;;  %s5732_s10 = smov [#allocation10]   ;;  %p6735_p8 = scmp.eq.s32.totalorder %s5815_s21, 7 }
  0x74   : > { %v593_v2 = vld [vmem:[#allocation3 + $0x20] sm:$0xff]  ;;  %v594_v5 = vld [vmem:[#allocation3 + $0x28] sm:$0xff]  ;;  %v5977_v57 = vld [vmem:[#allocation2] ss:$4 sm:$0x3]  ;;  %s4704_s29 = sshll.u32 %s5732_s10, 4  ;;  %s4705_s29 = int_to_ptr.vmem [resolvable:$true] %s4704_s29 }
  0x75   : > { %v4814_v4 = vcombine.high %v589_v1, %v593_v2  ;;  %v4813_v6 = vcombine.low %v589_v1, %v593_v2  ;;  %v597_v7 = vld [vmem:[#allocation3 + $0x40] sm:$0xff]  ;;  %v4816_v9 = vcombine.high %v590_v3, %v594_v5  ;;  %v4815_v10 = vcombine.low %v590_v3, %v594_v5  ;;  %v598_v12 = vld [vmem:[#allocation3 + $0x48] sm:$0xff]  ;;  %s5624_s13 = scalar_lea.vmem %s4705_s29, 128  ;;  %p5631_p3 = scmp.lt.s32.totalorder %s4705_s29, %s4705_s29 }
  0x76   : > { %v601_v8 = vld [vmem:[#allocation3 + $0x60] sm:$0xff]  ;;  %v602_v13 = vld [vmem:[#allocation3 + $0x68] sm:$0xff]  ;;  %v5972_v42 = vshrl.u32 %v433_v33, 7  ;;  %vm6497_vm0 = vcmp.lt.s32.totalorder %v433_v33, 256  ;;  %p5625_p7 = scmp.ne.s32.totalorder %s4705_s29, %s5624_s13  ;;  %p5632_p2 = scmp.lt.s32.totalorder %s5624_s13, %s5624_s13 }
  0x77   : > { %v4822_v11 = vcombine.high %v597_v7, %v601_v8  ;;  %v605_v14 = vld [vmem:[#allocation3 + $0x80] sm:$0xff]  ;;  %1357 = vmatprep.subr.bf16.mxu0 %v4814_v4  ;;  %v4824_v15 = vcombine.high %v598_v12, %v602_v13  ;;  %v606_v17 = vld [vmem:[#allocation3 + $0x88] sm:$0xff]  ;;  %1398 = vmatprep.subr.bf16.mxu1 %v4816_v9  ;;  %v4821_v19 = vcombine.low %v597_v7, %v601_v8 }
  0x78   : > { %v609_v16 = vld [vmem:[#allocation3 + $0xa0] sm:$0xff]  ;;  %v610_v18 = vld [vmem:[#allocation3 + $0xa8] sm:$0xff]  ;;  %1358 = vmatpush1.bf16.msra.mxu0 %v4813_v6  ;;  %1399 = vmatpush1.bf16.msra.mxu1 %v4815_v10  ;;  %v4823_v20 = vcombine.low %v598_v12, %v602_v13  ;;  %v5975_v51 = vsub.s32 1, %v5972_v42  ;;  %p5626_p12 = pnand %p5625_p7, %p6735_p8  ;;  %p5633_p6 = por %p5632_p2, %p5631_p3 }
  0x79   : > { %1359 = vmatprep.subr.bf16.mxu0 %v4822_v11  ;;  %v4830_v21 = vcombine.high %v605_v14, %v609_v16  ;;  %1400 = vmatprep.subr.bf16.mxu1 %v4824_v15  ;;  %v4832_v22 = vcombine.high %v606_v17, %v610_v18  ;;  %v613_v23 = vld [vmem:[#allocation3 + $0xc0] sm:$0xff]  ;;  %v614_v25 = vld [vmem:[#allocation3 + $0xc8] sm:$0xff]  ;;  %v4829_v27 = vcombine.low %v605_v14, %v609_v16 }
  0x7a   : > { %v617_v24 = vld [vmem:[#allocation3 + $0xe0] sm:$0xff]  ;;  %v618_v26 = vld [vmem:[#allocation3 + $0xe8] sm:$0xff]  ;;  %v4831_v28 = vcombine.low %v606_v17, %v610_v18  ;;  %v584_v61 = vrot.slane %v5977_v57, %v5975_v51  ;;  %p5627_p0 = pneg %p5626_p12 }
  0x7b   : > { %v4838_v29 = vcombine.high %v613_v23, %v617_v24  ;;  %v4840_v30 = vcombine.high %v614_v25, %v618_v26  ;;  %v621_v31 = vld [vmem:[#allocation3 + $0x100] sm:$0xff]  ;;  %v622_v34 = vld [vmem:[#allocation3 + $0x108] sm:$0xff]  ;;  %v4837_v36 = vcombine.low %v613_v23, %v617_v24  ;;  %v4839_v37 = vcombine.low %v614_v25, %v618_v26 }
  0x7c   : > { %1360 = vmatpush1.bf16.msra.mxu0 %v4821_v19  ;;  %1401 = vmatpush1.bf16.msra.mxu1 %v4823_v20  ;;  %v625_v32 = vld [vmem:[#allocation3 + $0x120] sm:$0xff]  ;;  %v626_v35 = vld [vmem:[#allocation3 + $0x128] sm:$0xff]  ;;  %v5981_v1 = vpack.c.bf16 %v584_v61, %v584_v61  ;;  %p5634_p9 = pnand %p5633_p6, %p5627_p0 }
  0x7d   : > { %1361 = vmatprep.subr.bf16.mxu0 %v4830_v21  ;;  %1402 = vmatprep.subr.bf16.mxu1 %v4832_v22  ;;  %v4846_v38 = vcombine.high %v621_v31, %v625_v32  ;;  %v4848_v39 = vcombine.high %v622_v34, %v626_v35  ;;  %v629_v40 = vld [vmem:[#allocation3 + $0x140] sm:$0xff]  ;;  %v630_v43 = vld [vmem:[#allocation3 + $0x148] sm:$0xff]  ;;  %v4845_v45 = vcombine.low %v621_v31, %v625_v32 }
  0x7e   : > { %v633_v41 = vld [vmem:[#allocation3 + $0x160] sm:$0xff]  ;;  %v634_v44 = vld [vmem:[#allocation3 + $0x168] sm:$0xff]  ;;  %v4847_v46 = vcombine.low %v622_v34, %v626_v35  ;;  %1389 = vmatprep.mubr.bf16.mxu0 %v5981_v1  ;;  %1430 = vmatprep.mubr.bf16.mxu1 %v5981_v1 }
  0x7f   : > { %v4854_v47 = vcombine.high %v629_v40, %v633_v41  ;;  %v4856_v48 = vcombine.high %v630_v43, %v634_v44  ;;  %v637_v49 = vld [vmem:[#allocation3 + $0x180] sm:$0xff]  ;;  %v638_v52 = vld [vmem:[#allocation3 + $0x188] sm:$0xff]  ;;  %v4853_v54 = vcombine.low %v629_v40, %v633_v41  ;;  %v4855_v55 = vcombine.low %v630_v43, %v634_v44 }
  0x80   : > { %1362 = vmatpush1.bf16.msra.mxu0 %v4829_v27  ;;  %1403 = vmatpush1.bf16.msra.mxu1 %v4831_v28  ;;  %v641_v50 = vld [vmem:[#allocation3 + $0x1a0] sm:$0xff]  ;;  %v642_v53 = vld [vmem:[#allocation3 + $0x1a8] sm:$0xff] }
  0x81   : > { %1363 = vmatprep.subr.bf16.mxu0 %v4838_v29  ;;  %1404 = vmatprep.subr.bf16.mxu1 %v4840_v30  ;;  %v4862_v56 = vcombine.high %v637_v49, %v641_v50  ;;  %v4864_v58 = vcombine.high %v638_v52, %v642_v53  ;;  %v645_v59 = vld [vmem:[#allocation3 + $0x1c0] sm:$0xff]  ;;  %v646_v62 = vld [vmem:[#allocation3 + $0x1c8] sm:$0xff]  ;;  %v4861_v0 = vcombine.low %v637_v49, %v641_v50 }
  0x82   : > { %v649_v60 = vld [vmem:[#allocation3 + $0x1e0] sm:$0xff]  ;;  %v650_v63 = vld [vmem:[#allocation3 + $0x1e8] sm:$0xff]  ;;  %v4863_v2 = vcombine.low %v638_v52, %v642_v53 }
  0x83   : > { %v4870_v3 = vcombine.high %v645_v59, %v649_v60  ;;  %v4872_v4 = vcombine.high %v646_v62, %v650_v63  ;;  %v653_v5 = vld [vmem:[#allocation3 + $0x200] sm:$0xff]  ;;  %v654_v7 = vld [vmem:[#allocation3 + $0x208] sm:$0xff]  ;;  %v4869_v9 = vcombine.low %v645_v59, %v649_v60  ;;  %v4871_v10 = vcombine.low %v646_v62, %v650_v63 }
  0x84   : > { %1364 = vmatpush1.bf16.msra.mxu0 %v4837_v36  ;;  %1405 = vmatpush1.bf16.msra.mxu1 %v4839_v37  ;;  %v657_v6 = vld [vmem:[#allocation3 + $0x220] sm:$0xff]  ;;  %v658_v8 = vld [vmem:[#allocation3 + $0x228] sm:$0xff] }
  0x85   : > { %1365 = vmatprep.subr.bf16.mxu0 %v4846_v38  ;;  %1406 = vmatprep.subr.bf16.mxu1 %v4848_v39  ;;  %v4878_v11 = vcombine.high %v653_v5, %v657_v6  ;;  %v4880_v12 = vcombine.high %v654_v7, %v658_v8  ;;  %v661_v13 = vld [vmem:[#allocation3 + $0x240] sm:$0xff]  ;;  %v662_v15 = vld [vmem:[#allocation3 + $0x248] sm:$0xff]  ;;  %v4877_v17 = vcombine.low %v653_v5, %v657_v6  ;;  %v5986_v6 = vsub.s32 0, %v5972_v42 }
  0x86   : > { %v665_v14 = vld [vmem:[#allocation3 + $0x260] sm:$0xff]  ;;  %v666_v16 = vld [vmem:[#allocation3 + $0x268] sm:$0xff]  ;;  %v4879_v18 = vcombine.low %v654_v7, %v658_v8 }
  0x87   : > { %v4886_v19 = vcombine.high %v661_v13, %v665_v14  ;;  %v4888_v20 = vcombine.high %v662_v15, %v666_v16  ;;  %v669_v21 = vld [vmem:[#allocation3 + $0x280] sm:$0xff]  ;;  %v670_v23 = vld [vmem:[#allocation3 + $0x288] sm:$0xff]  ;;  %v4885_v25 = vcombine.low %v661_v13, %v665_v14  ;;  %v4887_v26 = vcombine.low %v662_v15, %v666_v16  ;;  %v592_v14 = vld [vmem:[#allocation3 + $0x18] sm:$0xff] }
  0x88   : > { %1366 = vmatpush1.bf16.msra.mxu0 %v4845_v45  ;;  %1407 = vmatpush1.bf16.msra.mxu1 %v4847_v46  ;;  %v673_v22 = vld [vmem:[#allocation3 + $0x2a0] sm:$0xff]  ;;  %v674_v24 = vld [vmem:[#allocation3 + $0x2a8] sm:$0xff]  ;;  %v580_v13 = vrot.slane %v5977_v57, %v5986_v6  ;;  %v596_v15 = vld [vmem:[#allocation3 + $0x38] sm:$0xff] }
  0x89   : > { %1367 = vmatprep.subr.bf16.mxu0 %v4854_v47  ;;  %1408 = vmatprep.subr.bf16.mxu1 %v4856_v48  ;;  %v4894_v27 = vcombine.high %v669_v21, %v673_v22  ;;  %v4896_v28 = vcombine.high %v670_v23, %v674_v24  ;;  %v677_v29 = vld [vmem:[#allocation3 + $0x2c0] sm:$0xff]  ;;  %v678_v31 = vld [vmem:[#allocation3 + $0x2c8] sm:$0xff]  ;;  %v4893_v34 = vcombine.low %v669_v21, %v673_v22  ;;  %v603_v21 = vld [vmem:[#allocation3 + $0x70] sm:$0xff] }
  0x8a   : > { %v681_v30 = vld [vmem:[#allocation3 + $0x2e0] sm:$0xff]  ;;  %v682_v32 = vld [vmem:[#allocation3 + $0x2e8] sm:$0xff]  ;;  %v4895_v35 = vcombine.low %v670_v23, %v674_v24  ;;  %v5990_v22 = vpack.c.bf16 %v580_v13, %v580_v13  ;;  %v600_v23 = vld [vmem:[#allocation3 + $0x58] sm:$0xff]  ;;  %v4819_v57 = vcombine.low %v592_v14, %v596_v15 }
  0x8b   : > { %v4902_v36 = vcombine.high %v677_v29, %v681_v30  ;;  %v4904_v37 = vcombine.high %v678_v31, %v682_v32  ;;  %v685_v38 = vld [vmem:[#allocation3 + $0x300] sm:$0xff]  ;;  %v686_v40 = vld [vmem:[#allocation3 + $0x308] sm:$0xff]  ;;  %v4901_v43 = vcombine.low %v677_v29, %v681_v30  ;;  %v4903_v44 = vcombine.low %v678_v31, %v682_v32  ;;  %v604_v24 = vld [vmem:[#allocation3 + $0x78] sm:$0xff] }
  0x8c   : > { %1368 = vmatpush1.bf16.msra.mxu0 %v4853_v54  ;;  %1409 = vmatpush1.bf16.msra.mxu1 %v4855_v55  ;;  %v689_v39 = vld [vmem:[#allocation3 + $0x320] sm:$0xff]  ;;  %v690_v41 = vld [vmem:[#allocation3 + $0x328] sm:$0xff]  ;;  %v608_v29 = vld [vmem:[#allocation3 + $0x98] sm:$0xff]  ;;  %v4828_v30 = vcombine.high %v600_v23, %v604_v24 }
  0x8d   : > { %1369 = vmatprep.subr.bf16.mxu0 %v4862_v56  ;;  %1410 = vmatprep.subr.bf16.mxu1 %v4864_v58  ;;  %v4910_v45 = vcombine.high %v685_v38, %v689_v39  ;;  %v4912_v46 = vcombine.high %v686_v40, %v690_v41  ;;  %v693_v47 = vld [vmem:[#allocation3 + $0x340] sm:$0xff]  ;;  %v694_v49 = vld [vmem:[#allocation3 + $0x348] sm:$0xff]  ;;  %v4909_v52 = vcombine.low %v685_v38, %v689_v39  ;;  %v612_v31 = vld [vmem:[#allocation3 + $0xb8] sm:$0xff] }
  0x8e   : > { %v697_v48 = vld [vmem:[#allocation3 + $0x360] sm:$0xff]  ;;  %v698_v50 = vld [vmem:[#allocation3 + $0x368] sm:$0xff]  ;;  %v4911_v53 = vcombine.low %v686_v40, %v690_v41  ;;  %v616_v38 = vld [vmem:[#allocation3 + $0xd8] sm:$0xff]  ;;  %v4836_v39 = vcombine.high %v608_v29, %v612_v31 }
  0x8f   : > { %v4918_v54 = vcombine.high %v693_v47, %v697_v48  ;;  %v4920_v55 = vcombine.high %v694_v49, %v698_v50  ;;  %v701_v56 = vld [vmem:[#allocation3 + $0x380] sm:$0xff]  ;;  %v702_v59 = vld [vmem:[#allocation3 + $0x388] sm:$0xff]  ;;  %v4917_v61 = vcombine.low %v693_v47, %v697_v48  ;;  %v4919_v62 = vcombine.low %v694_v49, %v698_v50  ;;  %v620_v40 = vld [vmem:[#allocation3 + $0xf8] sm:$0xff] }
  0x90   : > { %1370 = vmatpush1.bf16.msra.mxu0 %v4861_v0  ;;  %1411 = vmatpush1.bf16.msra.mxu1 %v4863_v2  ;;  %v705_v58 = vld [vmem:[#allocation3 + $0x3a0] sm:$0xff]  ;;  %v706_v60 = vld [vmem:[#allocation3 + $0x3a8] sm:$0xff]  ;;  %v624_v47 = vld [vmem:[#allocation3 + $0x118] sm:$0xff]  ;;  %v4844_v48 = vcombine.high %v616_v38, %v620_v40 }
  0x91   : > { %1371 = vmatprep.subr.bf16.mxu0 %v4870_v3  ;;  %1412 = vmatprep.subr.bf16.mxu1 %v4872_v4  ;;  %v4926_v63 = vcombine.high %v701_v56, %v705_v58  ;;  %v4928_v0 = vcombine.high %v702_v59, %v706_v60  ;;  %v709_v2 = vld [vmem:[#allocation3 + $0x3c0] sm:$0xff]  ;;  %v710_v4 = vld [vmem:[#allocation3 + $0x3c8] sm:$0xff]  ;;  %v4925_v7 = vcombine.low %v701_v56, %v705_v58  ;;  %v628_v49 = vld [vmem:[#allocation3 + $0x138] sm:$0xff] }
  0x92   : > { %v713_v3 = vld [vmem:[#allocation3 + $0x3e0] sm:$0xff]  ;;  %v714_v5 = vld [vmem:[#allocation3 + $0x3e8] sm:$0xff]  ;;  %v4927_v8 = vcombine.low %v702_v59, %v706_v60  ;;  %v4852_v56 = vcombine.high %v624_v47, %v628_v49  ;;  %v636_v58 = vld [vmem:[#allocation3 + $0x178] sm:$0xff]  ;;  %v4851_v60 = vcombine.low %v624_v47, %v628_v49 }
  0x93   : > { %v4933_v16 = vcombine.low %v709_v2, %v713_v3 }
  0x94   : > { %1372 = vmatpush1.bf16.msra.mxu0 %v4869_v9  ;;  %1413 = vmatpush1.bf16.msra.mxu1 %v4871_v10  ;;  %v4934_v9 = vcombine.high %v709_v2, %v713_v3  ;;  %v4936_v10 = vcombine.high %v710_v4, %v714_v5  ;;  %v640_v2 = vld [vmem:[#allocation3 + $0x198] sm:$0xff] }
  0x95   : > { %1373 = vmatprep.subr.bf16.mxu0 %v4878_v11  ;;  %1414 = vmatprep.subr.bf16.mxu1 %v4880_v12  ;;  %v591_v11 = vld [vmem:[#allocation3 + $0x10] sm:$0xff]  ;;  %v644_v3 = vld [vmem:[#allocation3 + $0x1b8] sm:$0xff] }
  0x96   : > { %v595_v12 = vld [vmem:[#allocation3 + $0x30] sm:$0xff] }
  0x98   : > { %1374 = vmatpush1.bf16.msra.mxu0 %v4877_v17  ;;  %1415 = vmatpush1.bf16.msra.mxu1 %v4879_v18  ;;  %v4935_v17 = vcombine.low %v710_v4, %v714_v5  ;;  %v4818_v18 = vcombine.high %v591_v11, %v595_v12 }
  0x99   : > { %1375 = vmatprep.subr.bf16.mxu0 %v4886_v19  ;;  %1416 = vmatprep.subr.bf16.mxu1 %v4888_v20  ;;  %v4820_v19 = vcombine.high %v592_v14, %v596_v15  ;;  %v599_v20 = vld [vmem:[#allocation3 + $0x50] sm:$0xff]  ;;  %v4867_v14 = vcombine.low %v640_v2, %v644_v3 }
  0x9a   : > { %v4825_v32 = vcombine.low %v599_v20, %v603_v21 }
  0x9c   : > { %1376 = vmatpush1.bf16.msra.mxu0 %v4885_v25  ;;  %1417 = vmatpush1.bf16.msra.mxu1 %v4887_v26  ;;  %v4817_v25 = vcombine.low %v591_v11, %v595_v12  ;;  %v4826_v26 = vcombine.high %v599_v20, %v603_v21  ;;  %v648_v11 = vld [vmem:[#allocation3 + $0x1d8] sm:$0xff] }
  0x9d   : > { %1377 = vmatprep.subr.bf16.mxu0 %v4894_v27  ;;  %1418 = vmatprep.subr.bf16.mxu1 %v4896_v28  ;;  %v607_v27 = vld [vmem:[#allocation3 + $0x90] sm:$0xff]  ;;  %v652_v12 = vld [vmem:[#allocation3 + $0x1f8] sm:$0xff] }
  0x9e   : > { %v611_v28 = vld [vmem:[#allocation3 + $0xb0] sm:$0xff]  ;;  %v660_v20 = vld [vmem:[#allocation3 + $0x238] sm:$0xff] }
  0x9f   : > { %v4833_v41 = vcombine.low %v607_v27, %v611_v28 }
  0xa0   : > { %1378 = vmatpush1.bf16.msra.mxu0 %v4893_v34  ;;  %1419 = vmatpush1.bf16.msra.mxu1 %v4895_v35  ;;  %v4827_v34 = vcombine.low %v600_v23, %v604_v24  ;;  %v4834_v35 = vcombine.high %v607_v27, %v611_v28  ;;  %v4875_v23 = vcombine.low %v648_v11, %v652_v12  ;;  %v664_v27 = vld [vmem:[#allocation3 + $0x258] sm:$0xff] }
  0xa1   : > { %1379 = vmatprep.subr.bf16.mxu0 %v4902_v36  ;;  %1420 = vmatprep.subr.bf16.mxu1 %v4904_v37  ;;  %v615_v36 = vld [vmem:[#allocation3 + $0xd0] sm:$0xff]  ;;  %v668_v28 = vld [vmem:[#allocation3 + $0x278] sm:$0xff] }
  0xa2   : > { %v619_v37 = vld [vmem:[#allocation3 + $0xf0] sm:$0xff] }
  0xa3   : > { %v4841_v50 = vcombine.low %v615_v36, %v619_v37 }
  0xa4   : > { %1380 = vmatpush1.bf16.msra.mxu0 %v4901_v43  ;;  %1421 = vmatpush1.bf16.msra.mxu1 %v4903_v44  ;;  %v4835_v43 = vcombine.low %v608_v29, %v612_v31  ;;  %v4842_v44 = vcombine.high %v615_v36, %v619_v37  ;;  %v672_v36 = vld [vmem:[#allocation3 + $0x298] sm:$0xff] }
  0xa5   : > { %1381 = vmatprep.subr.bf16.mxu0 %v4910_v45  ;;  %1422 = vmatprep.subr.bf16.mxu1 %v4912_v46  ;;  %v623_v45 = vld [vmem:[#allocation3 + $0x110] sm:$0xff]  ;;  %v676_v37 = vld [vmem:[#allocation3 + $0x2b8] sm:$0xff] }
  0xa6   : > { %v627_v46 = vld [vmem:[#allocation3 + $0x130] sm:$0xff] }
  0xa7   : > { %v4849_v59 = vcombine.low %v623_v45, %v627_v46 }
  0xa8   : > { %1382 = vmatpush1.bf16.msra.mxu0 %v4909_v52  ;;  %1423 = vmatpush1.bf16.msra.mxu1 %v4911_v53  ;;  %v4843_v52 = vcombine.low %v616_v38, %v620_v40  ;;  %v4850_v53 = vcombine.high %v623_v45, %v627_v46  ;;  %v680_v45 = vld [vmem:[#allocation3 + $0x2d8] sm:$0xff] }
  0xa9   : > { %1383 = vmatprep.subr.bf16.mxu0 %v4918_v54  ;;  %1424 = vmatprep.subr.bf16.mxu1 %v4920_v55  ;;  %v631_v54 = vld [vmem:[#allocation3 + $0x150] sm:$0xff]  ;;  %v632_v55 = vld [vmem:[#allocation3 + $0x158] sm:$0xff] }
  0xaa   : > { %v4859_v5 = vcombine.low %v632_v55, %v636_v58  ;;  %v684_v46 = vld [vmem:[#allocation3 + $0x2f8] sm:$0xff] }
  0xac   : > { %1384 = vmatpush1.bf16.msra.mxu0 %v4917_v61  ;;  %1425 = vmatpush1.bf16.msra.mxu1 %v4919_v62  ;;  %v4860_v62 = vcombine.high %v632_v55, %v636_v58 }
  0xad   : > { %1385 = vmatprep.subr.bf16.mxu0 %v4926_v63  ;;  %1426 = vmatprep.subr.bf16.mxu1 %v4928_v0  ;;  %v639_v63 = vld [vmem:[#allocation3 + $0x190] sm:$0xff] }
  0xae   : > { %v643_v0 = vld [vmem:[#allocation3 + $0x1b0] sm:$0xff] }
  0xaf   : > { %v4865_v13 = vcombine.low %v639_v63, %v643_v0 }
  0xb0   : > { %1386 = vmatpush1.bf16.msra.mxu0 %v4925_v7  ;;  %1427 = vmatpush1.bf16.msra.mxu1 %v4927_v8  ;;  %v4866_v7 = vcombine.high %v639_v63, %v643_v0  ;;  %v4868_v8 = vcombine.high %v640_v2, %v644_v3  ;;  %v700_v63 = vld [vmem:[#allocation3 + $0x378] sm:$0xff] }
  0xb1   : > { %1387 = vmatprep.subr.bf16.mxu0 %v4934_v9  ;;  %1428 = vmatprep.subr.bf16.mxu1 %v4936_v10  ;;  %v647_v9 = vld [vmem:[#allocation3 + $0x1d0] sm:$0xff] }
  0xb2   : > { %v651_v10 = vld [vmem:[#allocation3 + $0x1f0] sm:$0xff] }
  0xb3   : > { %v4874_v15 = vcombine.high %v647_v9, %v651_v10  ;;  %v4873_v21 = vcombine.low %v647_v9, %v651_v10  ;;  %v708_v9 = vld [vmem:[#allocation3 + $0x3b8] sm:$0xff] }
  0xb4   : > { %1388 = vmatpush1.bf16.msra.mxu0 %v4933_v16  ;;  %1429 = vmatpush1.bf16.msra.mxu1 %v4935_v17  ;;  %v4876_v16 = vcombine.high %v648_v11, %v652_v12  ;;  %v655_v17 = vld [vmem:[#allocation3 + $0x210] sm:$0xff] }
  0xb5   : > { %1439 = vmatprep.subr.bf16.mxu0 %v4818_v18  ;;  %1480 = vmatprep.subr.bf16.mxu1 %v4820_v19  ;;  %v659_v18 = vld [vmem:[#allocation3 + $0x230] sm:$0xff]  ;;  %v656_v19 = vld [vmem:[#allocation3 + $0x218] sm:$0xff] }
  0xb6   : > { %v4882_v24 = vcombine.high %v655_v17, %v659_v18  ;;  %v4881_v29 = vcombine.low %v655_v17, %v659_v18  ;;  %v716_v17 = vld [vmem:[#allocation3 + $0x3f8] sm:$0xff] }
  0xb7   : > { %1390 = vmatmul.mubr.bf16.vlgmr.msra.gmra.mrb[0].mxu0 %v5990_v22  ;;  %1431 = vmatmul.mubr.bf16.vlgmr.msra.gmra.mrb[0].mxu1 %v5990_v22 }
  0xb8   : > { %1440 = vmatpush1.bf16.msra.mxu0 %v4817_v25  ;;  %1481 = vmatpush1.bf16.msra.mxu1 %v4819_v57  ;;  %v4884_v25 = vcombine.high %v656_v19, %v660_v20  ;;  %v663_v57 = vld [vmem:[#allocation3 + $0x250] sm:$0xff] }
  0xb9   : > { %1441 = vmatprep.subr.bf16.mxu0 %v4826_v26  ;;  %1482 = vmatprep.subr.bf16.mxu1 %v4828_v30  ;;  %v667_v26 = vld [vmem:[#allocation3 + $0x270] sm:$0xff]  ;;  %v4883_v30 = vcombine.low %v656_v19, %v660_v20 }
  0xba   : > { %1471 = vmatprep.mubr.bf16.mxu0 %v5981_v1  ;;  %1512 = vmatprep.mubr.bf16.mxu1 %v5981_v1  ;;  %v635_v1 = vld [vmem:[#allocation3 + $0x170] sm:$0xff]  ;;  %v4890_v31 = vcombine.high %v663_v57, %v667_v26  ;;  %v4889_v38 = vcombine.low %v663_v57, %v667_v26  ;;  %v453_v57 = vld [vmem:[%s6694_s2 + $0x28] sm:$0xff]  ;;  %v6009_v26 = vld [vmem:[%s5960_s26] sm:$0x3] }
  0xbb   : > { %v4858_v61 = vcombine.high %v631_v54, %v635_v1  ;;  %v4857_v4 = vcombine.low %v631_v54, %v635_v1  ;;  %v688_v54 = vld [vmem:[#allocation3 + $0x318] sm:$0xff] }
  0xbc   : > { %1442 = vmatpush1.bf16.msra.mxu0 %v4825_v32  ;;  %1483 = vmatpush1.bf16.msra.mxu1 %v4827_v34  ;;  %v4892_v32 = vcombine.high %v664_v27, %v668_v28  ;;  %v671_v34 = vld [vmem:[#allocation3 + $0x290] sm:$0xff]  ;;  %v692_v1 = vld [vmem:[#allocation3 + $0x338] sm:$0xff] }
  0xbd   : > { %1443 = vmatprep.subr.bf16.mxu0 %v4834_v35  ;;  %1484 = vmatprep.subr.bf16.mxu1 %v4836_v39  ;;  %v675_v35 = vld [vmem:[#allocation3 + $0x2b0] sm:$0xff]  ;;  %v4891_v39 = vcombine.low %v664_v27, %v668_v28  ;;  %v4915_v2 = vcombine.low %v688_v54, %v692_v1 }
  0xbe   : > { %v4898_v40 = vcombine.high %v671_v34, %v675_v35  ;;  %v4897_v47 = vcombine.low %v671_v34, %v675_v35  ;;  %v440_v34 = vrot.slane %v6009_v26, %v5975_v51  ;;  %v457_v35 = vld [vmem:[%s6694_s2 + $0x48] sm:$0xff] }
  0xc0   : > { %1444 = vmatpush1.bf16.msra.mxu0 %v4833_v41  ;;  %1485 = vmatpush1.bf16.msra.mxu1 %v4835_v43  ;;  %v4900_v41 = vcombine.high %v672_v36, %v676_v37  ;;  %v679_v43 = vld [vmem:[#allocation3 + $0x2d0] sm:$0xff] }
  0xc1   : > { %1445 = vmatprep.subr.bf16.mxu0 %v4842_v44  ;;  %1486 = vmatprep.subr.bf16.mxu1 %v4844_v48  ;;  %v683_v44 = vld [vmem:[#allocation3 + $0x2f0] sm:$0xff]  ;;  %v4899_v48 = vcombine.low %v672_v36, %v676_v37  ;;  %v461_v36 = vld [vmem:[%s6694_s2 + $0x68] sm:$0xff] }
  0xc2   : > { %v4906_v49 = vcombine.high %v679_v43, %v683_v44  ;;  %v4905_v55 = vcombine.low %v679_v43, %v683_v44  ;;  %v468_v43 = vld [vmem:[%s6694_s2 + $0xa0] sm:$0xff]  ;;  %v6031_v44 = vpack.c.bf16 %v440_v34, %v440_v34  ;;  %v517_v34 = vld [vmem:[%s6694_s2 + $0x228] sm:$0xff] }
  0xc4   : > { %1446 = vmatpush1.bf16.msra.mxu0 %v4841_v50  ;;  %1487 = vmatpush1.bf16.msra.mxu1 %v4843_v52  ;;  %v4908_v50 = vcombine.high %v680_v45, %v684_v46  ;;  %v687_v52 = vld [vmem:[#allocation3 + $0x310] sm:$0xff] }
  0xc5   : > { %1447 = vmatprep.subr.bf16.mxu0 %v4850_v53  ;;  %1488 = vmatprep.subr.bf16.mxu1 %v4852_v56  ;;  %v691_v53 = vld [vmem:[#allocation3 + $0x330] sm:$0xff]  ;;  %v4907_v56 = vcombine.low %v680_v45, %v684_v46  ;;  %v465_v45 = vld [vmem:[%s6694_s2 + $0x88] sm:$0xff] }
  0xc6   : > { %v4914_v58 = vcombine.high %v687_v52, %v691_v53  ;;  %v4913_v0 = vcombine.low %v687_v52, %v691_v53  ;;  %v469_v46 = vld [vmem:[%s6694_s2 + $0xa8] sm:$0xff]  ;;  %v472_v52 = vld [vmem:[%s6694_s2 + $0xc0] sm:$0xff] }
  0xc7   : > { %v476_v53 = vld [vmem:[%s6694_s2 + $0xe0] sm:$0xff] }
  0xc8   : > { %1448 = vmatpush1.bf16.msra.mxu0 %v4849_v59  ;;  %1489 = vmatpush1.bf16.msra.mxu1 %v4851_v60  ;;  %v4916_v59 = vcombine.high %v688_v54, %v692_v1  ;;  %v695_v60 = vld [vmem:[#allocation3 + $0x350] sm:$0xff]  ;;  %v477_v54 = vld [vmem:[%s6694_s2 + $0xe8] sm:$0xff] }
  0xc9   : > { %1449 = vmatprep.subr.bf16.mxu0 %v4858_v61  ;;  %1490 = vmatprep.subr.bf16.mxu1 %v4860_v62  ;;  %v699_v61 = vld [vmem:[#allocation3 + $0x370] sm:$0xff]  ;;  %v696_v62 = vld [vmem:[#allocation3 + $0x358] sm:$0xff] }
  0xca   : > { %v4922_v3 = vcombine.high %v695_v60, %v699_v61  ;;  %v4921_v10 = vcombine.low %v695_v60, %v699_v61  ;;  %v4923_v11 = vcombine.low %v696_v62, %v700_v63  ;;  %v484_v60 = vld [vmem:[%s6694_s2 + $0x120] sm:$0xff]  ;;  %v481_v61 = vld [vmem:[%s6694_s2 + $0x108] sm:$0xff] }
  0xcc   : > { %1450 = vmatpush1.bf16.msra.mxu0 %v4857_v4  ;;  %1491 = vmatpush1.bf16.msra.mxu1 %v4859_v5  ;;  %v4924_v4 = vcombine.high %v696_v62, %v700_v63  ;;  %v703_v5 = vld [vmem:[#allocation3 + $0x390] sm:$0xff]  ;;  %v485_v62 = vld [vmem:[%s6694_s2 + $0x128] sm:$0xff]  ;;  %v4965_v63 = vcombine.low %v472_v52, %v476_v53 }
  0xcd   : > { %1451 = vmatprep.subr.bf16.mxu0 %v4866_v7  ;;  %1492 = vmatprep.subr.bf16.mxu1 %v4868_v8  ;;  %v707_v7 = vld [vmem:[#allocation3 + $0x3b0] sm:$0xff]  ;;  %v704_v8 = vld [vmem:[#allocation3 + $0x398] sm:$0xff] }
  0xce   : > { %v4930_v12 = vcombine.high %v703_v5, %v707_v7  ;;  %v4929_v18 = vcombine.low %v703_v5, %v707_v7  ;;  %v4931_v19 = vcombine.low %v704_v8, %v708_v9  ;;  %v492_v5 = vld [vmem:[%s6694_s2 + $0x160] sm:$0xff]  ;;  %v489_v7 = vld [vmem:[%s6694_s2 + $0x148] sm:$0xff] }
  0xd0   : > { %1452 = vmatpush1.bf16.msra.mxu0 %v4865_v13  ;;  %1493 = vmatpush1.bf16.msra.mxu1 %v4867_v14  ;;  %v4932_v13 = vcombine.high %v704_v8, %v708_v9  ;;  %v711_v14 = vld [vmem:[#allocation3 + $0x3d0] sm:$0xff]  ;;  %v493_v8 = vld [vmem:[%s6694_s2 + $0x168] sm:$0xff] }
  0xd1   : > { %1453 = vmatprep.subr.bf16.mxu0 %v4874_v15  ;;  %1494 = vmatprep.subr.bf16.mxu1 %v4876_v16  ;;  %v715_v15 = vld [vmem:[#allocation3 + $0x3f0] sm:$0xff]  ;;  %v712_v16 = vld [vmem:[#allocation3 + $0x3d8] sm:$0xff] }
  0xd2   : > { %v4938_v20 = vcombine.high %v711_v14, %v715_v15  ;;  %v4937_v27 = vcombine.low %v711_v14, %v715_v15  ;;  %v4939_v28 = vcombine.low %v712_v16, %v716_v17  ;;  %v500_v14 = vld [vmem:[%s6694_s2 + $0x1a0] sm:$0xff]  ;;  %v497_v15 = vld [vmem:[%s6694_s2 + $0x188] sm:$0xff] }
  0xd4   : > { %1454 = vmatpush1.bf16.msra.mxu0 %v4873_v21  ;;  %1495 = vmatpush1.bf16.msra.mxu1 %v4875_v23  ;;  %v4940_v21 = vcombine.high %v712_v16, %v716_v17  ;;  %v448_v23 = vld [vmem:[%s6694_s2] sm:$0xff]  ;;  %v501_v16 = vld [vmem:[%s6694_s2 + $0x1a8] sm:$0xff] }
  0xd5   : > { %1455 = vmatprep.subr.bf16.mxu0 %v4882_v24  ;;  %1496 = vmatprep.subr.bf16.mxu1 %v4884_v25  ;;  %v452_v24 = vld [vmem:[%s6694_s2 + $0x20] sm:$0xff]  ;;  %v449_v25 = vld [vmem:[%s6694_s2 + $0x8] sm:$0xff] }
  0xd6   : > { %v4941_v37 = vcombine.low %v448_v23, %v452_v24 }
  0xd8   : > { %1456 = vmatpush1.bf16.msra.mxu0 %v4881_v29  ;;  %1497 = vmatpush1.bf16.msra.mxu1 %v4883_v30  ;;  %v4942_v29 = vcombine.high %v448_v23, %v452_v24  ;;  %v4944_v30 = vcombine.high %v449_v25, %v453_v57  ;;  %v508_v23 = vld [vmem:[%s6694_s2 + $0x1e0] sm:$0xff]  ;;  %v505_v24 = vld [vmem:[%s6694_s2 + $0x1c8] sm:$0xff] }
  0xd9   : > { %1457 = vmatprep.subr.bf16.mxu0 %v4890_v31  ;;  %1498 = vmatprep.subr.bf16.mxu1 %v4892_v32  ;;  %v456_v31 = vld [vmem:[%s6694_s2 + $0x40] sm:$0xff] }
  0xda   : > { %v460_v32 = vld [vmem:[%s6694_s2 + $0x60] sm:$0xff] }
  0xdc   : > { %1458 = vmatpush1.bf16.msra.mxu0 %v4889_v38  ;;  %1499 = vmatpush1.bf16.msra.mxu1 %v4891_v39  ;;  %v4943_v38 = vcombine.low %v449_v25, %v453_v57  ;;  %v4950_v39 = vcombine.high %v456_v31, %v460_v32  ;;  %v509_v25 = vld [vmem:[%s6694_s2 + $0x1e8] sm:$0xff] }
  0xdd   : > { %1459 = vmatprep.subr.bf16.mxu0 %v4898_v40  ;;  %1500 = vmatprep.subr.bf16.mxu1 %v4900_v41  ;;  %v4952_v40 = vcombine.high %v457_v35, %v461_v36  ;;  %v464_v41 = vld [vmem:[%s6694_s2 + $0x80] sm:$0xff] }
  0xde   : > { %v4957_v1 = vcombine.low %v464_v41, %v468_v43 }
  0xe0   : > { %1460 = vmatpush1.bf16.msra.mxu0 %v4897_v47  ;;  %1501 = vmatpush1.bf16.msra.mxu1 %v4899_v48  ;;  %v4949_v47 = vcombine.low %v456_v31, %v460_v32  ;;  %v4951_v48 = vcombine.low %v457_v35, %v461_v36  ;;  %v516_v31 = vld [vmem:[%s6694_s2 + $0x220] sm:$0xff]  ;;  %v513_v32 = vld [vmem:[%s6694_s2 + $0x208] sm:$0xff]  ;;  %v4999_v36 = vcombine.low %v505_v24, %v509_v25 }
  0xe1   : > { %1461 = vmatprep.subr.bf16.mxu0 %v4906_v49  ;;  %1502 = vmatprep.subr.bf16.mxu1 %v4908_v50  ;;  %v4958_v49 = vcombine.high %v464_v41, %v468_v43  ;;  %v4960_v50 = vcombine.high %v465_v45, %v469_v46  ;;  %v521_v41 = vld [vmem:[%s6694_s2 + $0x248] sm:$0xff] }
  0xe2   : > { %v525_v43 = vld [vmem:[%s6694_s2 + $0x268] sm:$0xff] }
  0xe4   : > { %1462 = vmatpush1.bf16.msra.mxu0 %v4905_v55  ;;  %1503 = vmatpush1.bf16.msra.mxu1 %v4907_v56  ;;  %v4959_v55 = vcombine.low %v465_v45, %v469_v46  ;;  %v4966_v56 = vcombine.high %v472_v52, %v476_v53  ;;  %v5007_v46 = vcombine.low %v513_v32, %v517_v34  ;;  %v529_v52 = vld [vmem:[%s6694_s2 + $0x288] sm:$0xff] }
  0xe5   : > { %1463 = vmatprep.subr.bf16.mxu0 %v4914_v58  ;;  %1504 = vmatprep.subr.bf16.mxu1 %v4916_v59  ;;  %v480_v59 = vld [vmem:[%s6694_s2 + $0x100] sm:$0xff]  ;;  %v533_v53 = vld [vmem:[%s6694_s2 + $0x2a8] sm:$0xff] }
  0xe6   : > { %v4973_v9 = vcombine.low %v480_v59, %v484_v60 }
  0xe8   : > { %1464 = vmatpush1.bf16.msra.mxu0 %v4913_v0  ;;  %1505 = vmatpush1.bf16.msra.mxu1 %v4915_v2  ;;  %v4974_v2 = vcombine.high %v480_v59, %v484_v60  ;;  %v537_v59 = vld [vmem:[%s6694_s2 + $0x2c8] sm:$0xff] }
  0xe9   : > { %1465 = vmatprep.subr.bf16.mxu0 %v4922_v3  ;;  %1506 = vmatprep.subr.bf16.mxu1 %v4924_v4  ;;  %v4976_v3 = vcombine.high %v481_v61, %v485_v62  ;;  %v488_v4 = vld [vmem:[%s6694_s2 + $0x140] sm:$0xff]  ;;  %v541_v60 = vld [vmem:[%s6694_s2 + $0x2e8] sm:$0xff] }
  0xea   : > { %v4981_v17 = vcombine.low %v488_v4, %v492_v5 }
  0xec   : > { %1466 = vmatpush1.bf16.msra.mxu0 %v4921_v10  ;;  %1507 = vmatpush1.bf16.msra.mxu1 %v4923_v11  ;;  %v4975_v10 = vcombine.low %v481_v61, %v485_v62  ;;  %v4982_v11 = vcombine.high %v488_v4, %v492_v5  ;;  %v5023_v62 = vcombine.low %v529_v52, %v533_v53  ;;  %v545_v4 = vld [vmem:[%s6694_s2 + $0x308] sm:$0xff] }
  0xed   : > { %1467 = vmatprep.subr.bf16.mxu0 %v4930_v12  ;;  %1508 = vmatprep.subr.bf16.mxu1 %v4932_v13  ;;  %v4984_v12 = vcombine.high %v489_v7, %v493_v8  ;;  %v496_v13 = vld [vmem:[%s6694_s2 + $0x180] sm:$0xff]  ;;  %v549_v5 = vld [vmem:[%s6694_s2 + $0x328] sm:$0xff] }
  0xee   : > { %v4989_v57 = vcombine.low %v496_v13, %v500_v14 }
  0xf0   : > { %1468 = vmatpush1.bf16.msra.mxu0 %v4929_v18  ;;  %1509 = vmatpush1.bf16.msra.mxu1 %v4931_v19  ;;  %v4983_v18 = vcombine.low %v489_v7, %v493_v8  ;;  %v4990_v19 = vcombine.high %v496_v13, %v500_v14  ;;  %v5031_v8 = vcombine.low %v537_v59, %v541_v60  ;;  %v553_v13 = vld [vmem:[%s6694_s2 + $0x348] sm:$0xff] }
  0xf1   : > { %1469 = vmatprep.subr.bf16.mxu0 %v4938_v20  ;;  %1510 = vmatprep.subr.bf16.mxu1 %v4940_v21  ;;  %v4992_v20 = vcombine.high %v497_v15, %v501_v16  ;;  %v504_v21 = vld [vmem:[%s6694_s2 + $0x1c0] sm:$0xff]  ;;  %v557_v14 = vld [vmem:[%s6694_s2 + $0x368] sm:$0xff] }
  0xf2   : > { %v4997_v35 = vcombine.low %v504_v21, %v508_v23 }
  0xf4   : > { %1470 = vmatpush1.bf16.msra.mxu0 %v4937_v27  ;;  %1511 = vmatpush1.bf16.msra.mxu1 %v4939_v28  ;;  %v4991_v27 = vcombine.low %v497_v15, %v501_v16  ;;  %v4998_v28 = vcombine.high %v504_v21, %v508_v23  ;;  %v5039_v16 = vcombine.low %v545_v4, %v549_v5  ;;  %v561_v21 = vld [vmem:[%s6694_s2 + $0x388] sm:$0xff] }
  0xf5   : > { %2161 = vmatprep.subr.bf16.mxu0 %v4942_v29  ;;  %2202 = vmatprep.subr.bf16.mxu1 %v4944_v30  ;;  %v5000_v29 = vcombine.high %v505_v24, %v509_v25  ;;  %v512_v30 = vld [vmem:[%s6694_s2 + $0x200] sm:$0xff]  ;;  %v565_v23 = vld [vmem:[%s6694_s2 + $0x3a8] sm:$0xff]  ;;  %v5047_v25 = vcombine.low %v553_v13, %v557_v14 }
  0xf6   : > { %v5005_v45 = vcombine.low %v512_v30, %v516_v31 }
  0xf7   : > { %1472 = vmatmul.mubr.bf16.vlgmr.msra.gmra.mrb[4].mxu0 %v5990_v22  ;;  %1513 = vmatmul.mubr.bf16.vlgmr.msra.gmra.mrb[4].mxu1 %v5990_v22  ;;  %v473_v22 = vld [vmem:[%s6694_s2 + $0xc8] sm:$0xff] }
  0xf8   : > { %2162 = vmatpush1.bf16.msra.mxu0 %v4941_v37  ;;  %2203 = vmatpush1.bf16.msra.mxu1 %v4943_v38  ;;  %v4968_v58 = vcombine.high %v473_v22, %v477_v54  ;;  %v4967_v0 = vcombine.low %v473_v22, %v477_v54  ;;  %v5006_v37 = vcombine.high %v512_v30, %v516_v31  ;;  %v569_v30 = vld [vmem:[%s6694_s2 + $0x3c8] sm:$0xff] }
  0xf9   : > { %2163 = vmatprep.subr.bf16.mxu0 %v4950_v39  ;;  %2204 = vmatprep.subr.bf16.mxu1 %v4952_v40  ;;  %v5008_v38 = vcombine.high %v513_v32, %v517_v34  ;;  %v520_v39 = vld [vmem:[%s6694_s2 + $0x240] sm:$0xff]  ;;  %v5015_v54 = vcombine.low %v521_v41, %v525_v43  ;;  %v573_v31 = vld [vmem:[%s6694_s2 + $0x3e8] sm:$0xff]  ;;  %v5055_v34 = vcombine.low %v561_v21, %v565_v23 }
  0xfa   : > { %2193 = vmatprep.mubr.bf16.mxu0 %v6031_v44  ;;  %2234 = vmatprep.mubr.bf16.mxu1 %v6031_v44  ;;  %v524_v40 = vld [vmem:[%s6694_s2 + $0x260] sm:$0xff] }
  0xfb   : > { %v5013_v22 = vcombine.low %v520_v39, %v524_v40 }
  0xfc   : > { %2164 = vmatpush1.bf16.msra.mxu0 %v4949_v47  ;;  %2205 = vmatpush1.bf16.msra.mxu1 %v4951_v48  ;;  %v5014_v47 = vcombine.high %v520_v39, %v524_v40  ;;  %v5016_v48 = vcombine.high %v521_v41, %v525_v43  ;;  %v436_v39 = vrot.slane %v6009_v26, %v5986_v6  ;;  %v451_v40 = vld [vmem:[%s6694_s2 + $0x18] sm:$0xff]  ;;  %v458_v26 = vld [vmem:[%s6694_s2 + $0x50] sm:$0xff] }
  0xfd   : > { %2165 = vmatprep.subr.bf16.mxu0 %v4958_v49  ;;  %2206 = vmatprep.subr.bf16.mxu1 %v4960_v50  ;;  %v528_v49 = vld [vmem:[%s6694_s2 + $0x280] sm:$0xff]  ;;  %v455_v41 = vld [vmem:[%s6694_s2 + $0x38] sm:$0xff] }
  0xfe   : > { %v532_v50 = vld [vmem:[%s6694_s2 + $0x2a0] sm:$0xff] }
  0xff   : > { %v5021_v61 = vcombine.low %v528_v49, %v532_v50 }
 0x100   : > { %2166 = vmatpush1.bf16.msra.mxu0 %v4957_v1  ;;  %2207 = vmatpush1.bf16.msra.mxu1 %v4959_v55  ;;  %v5022_v1 = vcombine.high %v528_v49, %v532_v50  ;;  %v5024_v55 = vcombine.high %v529_v52, %v533_v53  ;;  %v6219_v49 = vpack.c.bf16 %v436_v39, %v436_v39  ;;  %v459_v50 = vld [vmem:[%s6694_s2 + $0x58] sm:$0xff] }
 0x101   : > { %2167 = vmatprep.subr.bf16.mxu0 %v4966_v56  ;;  %2208 = vmatprep.subr.bf16.mxu1 %v4968_v58  ;;  %v536_v56 = vld [vmem:[%s6694_s2 + $0x2c0] sm:$0xff]  ;;  %v463_v52 = vld [vmem:[%s6694_s2 + $0x78] sm:$0xff] }
 0x102   : > { %v540_v58 = vld [vmem:[%s6694_s2 + $0x2e0] sm:$0xff] }
 0x103   : > { %v5029_v7 = vcombine.low %v536_v56, %v540_v58 }
 0x104   : > { %2168 = vmatpush1.bf16.msra.mxu0 %v4965_v63  ;;  %2209 = vmatpush1.bf16.msra.mxu1 %v4967_v0  ;;  %v5030_v63 = vcombine.high %v536_v56, %v540_v58  ;;  %v5032_v0 = vcombine.high %v537_v59, %v541_v60  ;;  %v470_v56 = vld [vmem:[%s6694_s2 + $0xb0] sm:$0xff]  ;;  %v467_v58 = vld [vmem:[%s6694_s2 + $0x98] sm:$0xff] }
 0x105   : > { %2169 = vmatprep.subr.bf16.mxu0 %v4974_v2  ;;  %2210 = vmatprep.subr.bf16.mxu1 %v4976_v3  ;;  %v544_v2 = vld [vmem:[%s6694_s2 + $0x300] sm:$0xff]  ;;  %v471_v59 = vld [vmem:[%s6694_s2 + $0xb8] sm:$0xff] }
 0x106   : > { %v548_v3 = vld [vmem:[%s6694_s2 + $0x320] sm:$0xff] }
 0x107   : > { %v5037_v15 = vcombine.low %v544_v2, %v548_v3 }
 0x108   : > { %2170 = vmatpush1.bf16.msra.mxu0 %v4973_v9  ;;  %2211 = vmatpush1.bf16.msra.mxu1 %v4975_v10  ;;  %v5038_v9 = vcombine.high %v544_v2, %v548_v3  ;;  %v5040_v10 = vcombine.high %v545_v4, %v549_v5  ;;  %v478_v2 = vld [vmem:[%s6694_s2 + $0xf0] sm:$0xff]  ;;  %v475_v3 = vld [vmem:[%s6694_s2 + $0xd8] sm:$0xff] }
 0x109   : > { %2171 = vmatprep.subr.bf16.mxu0 %v4982_v11  ;;  %2212 = vmatprep.subr.bf16.mxu1 %v4984_v12  ;;  %v552_v11 = vld [vmem:[%s6694_s2 + $0x340] sm:$0xff]  ;;  %v479_v4 = vld [vmem:[%s6694_s2 + $0xf8] sm:$0xff] }
 0x10a   : > { %v556_v12 = vld [vmem:[%s6694_s2 + $0x360] sm:$0xff] }
 0x10b   : > { %v5045_v24 = vcombine.low %v552_v11, %v556_v12 }
 0x10c   : > { %2172 = vmatpush1.bf16.msra.mxu0 %v4981_v17  ;;  %2213 = vmatpush1.bf16.msra.mxu1 %v4983_v18  ;;  %v5046_v17 = vcombine.high %v552_v11, %v556_v12  ;;  %v5048_v18 = vcombine.high %v553_v13, %v557_v14  ;;  %v486_v11 = vld [vmem:[%s6694_s2 + $0x130] sm:$0xff]  ;;  %v487_v12 = vld [vmem:[%s6694_s2 + $0x138] sm:$0xff]  ;;  %v4971_v14 = vcombine.low %v475_v3, %v479_v4 }
 0x10d   : > { %2173 = vmatprep.subr.bf16.mxu0 %v4990_v19  ;;  %2214 = vmatprep.subr.bf16.mxu1 %v4992_v20  ;;  %v560_v19 = vld [vmem:[%s6694_s2 + $0x380] sm:$0xff] }
 0x10e   : > { %v564_v20 = vld [vmem:[%s6694_s2 + $0x3a0] sm:$0xff] }
 0x10f   : > { %v5053_v32 = vcombine.low %v560_v19, %v564_v20 }
 0x110   : > { %2174 = vmatpush1.bf16.msra.mxu0 %v4989_v57  ;;  %2215 = vmatpush1.bf16.msra.mxu1 %v4991_v27  ;;  %v5054_v57 = vcombine.high %v560_v19, %v564_v20  ;;  %v5056_v27 = vcombine.high %v561_v21, %v565_v23  ;;  %v491_v19 = vld [vmem:[%s6694_s2 + $0x158] sm:$0xff] }
 0x111   : > { %2175 = vmatprep.subr.bf16.mxu0 %v4998_v28  ;;  %2216 = vmatprep.subr.bf16.mxu1 %v5000_v29  ;;  %v568_v28 = vld [vmem:[%s6694_s2 + $0x3c0] sm:$0xff]  ;;  %v495_v20 = vld [vmem:[%s6694_s2 + $0x178] sm:$0xff] }
 0x112   : > { %v572_v29 = vld [vmem:[%s6694_s2 + $0x3e0] sm:$0xff] }
 0x113   : > { %v5061_v43 = vcombine.low %v568_v28, %v572_v29 }
 0x114   : > { %2176 = vmatpush1.bf16.msra.mxu0 %v4997_v35  ;;  %2217 = vmatpush1.bf16.msra.mxu1 %v4999_v36  ;;  %v5062_v35 = vcombine.high %v568_v28, %v572_v29  ;;  %v5064_v36 = vcombine.high %v569_v30, %v573_v31  ;;  %v499_v28 = vld [vmem:[%s6694_s2 + $0x198] sm:$0xff] }
 0x115   : > { %2177 = vmatprep.subr.bf16.mxu0 %v5006_v37  ;;  %2218 = vmatprep.subr.bf16.mxu1 %v5008_v38  ;;  %v450_v37 = vld [vmem:[%s6694_s2 + $0x10] sm:$0xff]  ;;  %v503_v29 = vld [vmem:[%s6694_s2 + $0x1b8] sm:$0xff] }
 0x116   : > { %v454_v38 = vld [vmem:[%s6694_s2 + $0x30] sm:$0xff] }
 0x117   : > { %v4945_v53 = vcombine.low %v450_v37, %v454_v38 }
 0x118   : > { %2178 = vmatpush1.bf16.msra.mxu0 %v5005_v45  ;;  %2219 = vmatpush1.bf16.msra.mxu1 %v5007_v46  ;;  %v5063_v45 = vcombine.low %v569_v30, %v573_v31  ;;  %v4946_v46 = vcombine.high %v450_v37, %v454_v38  ;;  %v4987_v31 = vcombine.low %v491_v19, %v495_v20  ;;  %v507_v37 = vld [vmem:[%s6694_s2 + $0x1d8] sm:$0xff] }
 0x119   : > { %2179 = vmatprep.subr.bf16.mxu0 %v5014_v47  ;;  %2220 = vmatprep.subr.bf16.mxu1 %v5016_v48  ;;  %v4948_v47 = vcombine.high %v451_v40, %v455_v41  ;;  %v462_v48 = vld [vmem:[%s6694_s2 + $0x70] sm:$0xff]  ;;  %v511_v38 = vld [vmem:[%s6694_s2 + $0x1f8] sm:$0xff] }
 0x11a   : > { %v4953_v60 = vcombine.low %v458_v26, %v462_v48 }
 0x11c   : > { %2180 = vmatpush1.bf16.msra.mxu0 %v5013_v22  ;;  %2221 = vmatpush1.bf16.msra.mxu1 %v5015_v54  ;;  %v4947_v22 = vcombine.low %v451_v40, %v455_v41  ;;  %v4954_v54 = vcombine.high %v458_v26, %v462_v48  ;;  %v4995_v40 = vcombine.low %v499_v28, %v503_v29  ;;  %v519_v26 = vld [vmem:[%s6694_s2 + $0x238] sm:$0xff] }
 0x11d   : > { %2181 = vmatprep.subr.bf16.mxu0 %v5022_v1  ;;  %2222 = vmatprep.subr.bf16.mxu1 %v5024_v55  ;;  %v4956_v1 = vcombine.high %v459_v50, %v463_v52  ;;  %v466_v55 = vld [vmem:[%s6694_s2 + $0x90] sm:$0xff] }
 0x11e   : > { %v4961_v5 = vcombine.low %v466_v55, %v470_v56 }
 0x120   : > { %2182 = vmatpush1.bf16.msra.mxu0 %v5021_v61  ;;  %2223 = vmatpush1.bf16.msra.mxu1 %v5023_v62  ;;  %v4955_v61 = vcombine.low %v459_v50, %v463_v52  ;;  %v4962_v62 = vcombine.high %v466_v55, %v470_v56  ;;  %v5003_v50 = vcombine.low %v507_v37, %v511_v38  ;;  %v527_v55 = vld [vmem:[%s6694_s2 + $0x278] sm:$0xff] }
 0x121   : > { %2183 = vmatprep.subr.bf16.mxu0 %v5030_v63  ;;  %2224 = vmatprep.subr.bf16.mxu1 %v5032_v0  ;;  %v4964_v63 = vcombine.high %v467_v58, %v471_v59  ;;  %v474_v0 = vld [vmem:[%s6694_s2 + $0xd0] sm:$0xff] }
 0x122   : > { %v4969_v13 = vcombine.low %v474_v0, %v478_v2 }
 0x124   : > { %2184 = vmatpush1.bf16.msra.mxu0 %v5029_v7  ;;  %2225 = vmatpush1.bf16.msra.mxu1 %v5031_v8  ;;  %v4963_v7 = vcombine.low %v467_v58, %v471_v59  ;;  %v4970_v8 = vcombine.high %v474_v0, %v478_v2  ;;  %v535_v0 = vld [vmem:[%s6694_s2 + $0x2b8] sm:$0xff] }
 0x125   : > { %2185 = vmatprep.subr.bf16.mxu0 %v5038_v9  ;;  %2226 = vmatprep.subr.bf16.mxu1 %v5040_v10  ;;  %v4972_v9 = vcombine.high %v475_v3, %v479_v4  ;;  %v482_v10 = vld [vmem:[%s6694_s2 + $0x110] sm:$0xff] }
 0x126   : > { %v4977_v21 = vcombine.low %v482_v10, %v486_v11 }
 0x128   : > { %2186 = vmatpush1.bf16.msra.mxu0 %v5037_v15  ;;  %2227 = vmatpush1.bf16.msra.mxu1 %v5039_v16  ;;  %v4978_v15 = vcombine.high %v482_v10, %v486_v11  ;;  %v543_v10 = vld [vmem:[%s6694_s2 + $0x2f8] sm:$0xff] }
 0x129   : > { %2187 = vmatprep.subr.bf16.mxu0 %v5046_v17  ;;  %2228 = vmatprep.subr.bf16.mxu1 %v5048_v18  ;;  %v490_v17 = vld [vmem:[%s6694_s2 + $0x150] sm:$0xff] }
 0x12a   : > { %v494_v18 = vld [vmem:[%s6694_s2 + $0x170] sm:$0xff] }
 0x12b   : > { %v4985_v30 = vcombine.low %v490_v17, %v494_v18 }
 0x12c   : > { %2188 = vmatpush1.bf16.msra.mxu0 %v5045_v24  ;;  %2229 = vmatpush1.bf16.msra.mxu1 %v5047_v25  ;;  %v4986_v24 = vcombine.high %v490_v17, %v494_v18  ;;  %v4988_v25 = vcombine.high %v491_v19, %v495_v20  ;;  %v551_v17 = vld [vmem:[%s6694_s2 + $0x338] sm:$0xff] }
 0x12d   : > { %2189 = vmatprep.subr.bf16.mxu0 %v5054_v57  ;;  %2230 = vmatprep.subr.bf16.mxu1 %v5056_v27  ;;  %v498_v57 = vld [vmem:[%s6694_s2 + $0x190] sm:$0xff] }
 0x12e   : > { %v502_v27 = vld [vmem:[%s6694_s2 + $0x1b0] sm:$0xff] }
 0x12f   : > { %v4993_v39 = vcombine.low %v498_v57, %v502_v27 }
 0x130   : > { %2190 = vmatpush1.bf16.msra.mxu0 %v5053_v32  ;;  %2231 = vmatpush1.bf16.msra.mxu1 %v5055_v34  ;;  %v4994_v32 = vcombine.high %v498_v57, %v502_v27  ;;  %v4996_v34 = vcombine.high %v499_v28, %v503_v29  ;;  %v559_v57 = vld [vmem:[%s6694_s2 + $0x378] sm:$0xff] }
 0x131   : > { %2191 = vmatprep.subr.bf16.mxu0 %v5062_v35  ;;  %2232 = vmatprep.subr.bf16.mxu1 %v5064_v36  ;;  %v506_v35 = vld [vmem:[%s6694_s2 + $0x1d0] sm:$0xff] }
 0x132   : > { %v510_v36 = vld [vmem:[%s6694_s2 + $0x1f0] sm:$0xff] }
 0x133   : > { %v5002_v41 = vcombine.high %v506_v35, %v510_v36  ;;  %v5001_v48 = vcombine.low %v506_v35, %v510_v36  ;;  %v567_v35 = vld [vmem:[%s6694_s2 + $0x3b8] sm:$0xff] }
 0x134   : > { %2192 = vmatpush1.bf16.msra.mxu0 %v5061_v43  ;;  %2233 = vmatpush1.bf16.msra.mxu1 %v5063_v45  ;;  %v5004_v43 = vcombine.high %v507_v37, %v511_v38  ;;  %v514_v45 = vld [vmem:[%s6694_s2 + $0x210] sm:$0xff] }
 0x135   : > { %2243 = vmatprep.subr.bf16.mxu0 %v4946_v46  ;;  %2284 = vmatprep.subr.bf16.mxu1 %v4948_v47  ;;  %v518_v46 = vld [vmem:[%s6694_s2 + $0x230] sm:$0xff]  ;;  %v515_v47 = vld [vmem:[%s6694_s2 + $0x218] sm:$0xff] }
 0x136   : > { %v5010_v52 = vcombine.high %v514_v45, %v518_v46  ;;  %v5009_v56 = vcombine.low %v514_v45, %v518_v46  ;;  %v5011_v58 = vcombine.low %v515_v47, %v519_v26  ;;  %v575_v45 = vld [vmem:[%s6694_s2 + $0x3f8] sm:$0xff] }
 0x137   : > { %2194 = vmatmul.mubr.bf16.vlgmr.msra.gmra.mrb[8].mxu0 %v6219_v49  ;;  %2235 = vmatmul.mubr.bf16.vlgmr.msra.gmra.mrb[8].mxu1 %v6219_v49 }
 0x138   : > { %2244 = vmatpush1.bf16.msra.mxu0 %v4945_v53  ;;  %2285 = vmatpush1.bf16.msra.mxu1 %v4947_v22  ;;  %v5012_v53 = vcombine.high %v515_v47, %v519_v26  ;;  %v522_v22 = vld [vmem:[%s6694_s2 + $0x250] sm:$0xff] }
 0x139   : > { %2245 = vmatprep.subr.bf16.mxu0 %v4954_v54  ;;  %2286 = vmatprep.subr.bf16.mxu1 %v4956_v1  ;;  %v526_v54 = vld [vmem:[%s6694_s2 + $0x270] sm:$0xff]  ;;  %v523_v1 = vld [vmem:[%s6694_s2 + $0x258] sm:$0xff] }
 0x13a   : > { %2275 = vmatprep.mubr.bf16.mxu0 %v6031_v44  ;;  %2316 = vmatprep.mubr.bf16.mxu1 %v6031_v44  ;;  %v483_v44 = vld [vmem:[%s6694_s2 + $0x118] sm:$0xff]  ;;  %v5018_v59 = vcombine.high %v522_v22, %v526_v54  ;;  %v5017_v2 = vcombine.low %v522_v22, %v526_v54  ;;  %v5019_v3 = vcombine.low %v523_v1, %v527_v55  ;;  %v2628_v22 = vld [vmem:[#allocation8 + $0x28] sm:$0xff]  ;;  %v6399_v54 = vld [vmem:[#allocation2 + $0x1] ss:$4 sm:$0x3] }
 0x13b   : > { %v4980_v16 = vcombine.high %v483_v44, %v487_v12  ;;  %v4979_v23 = vcombine.low %v483_v44, %v487_v12 }
 0x13c   : > { %2246 = vmatpush1.bf16.msra.mxu0 %v4953_v60  ;;  %2287 = vmatpush1.bf16.msra.mxu1 %v4955_v61  ;;  %v5020_v60 = vcombine.high %v523_v1, %v527_v55  ;;  %v530_v61 = vld [vmem:[%s6694_s2 + $0x290] sm:$0xff] }
 0x13d   : > { %2247 = vmatprep.subr.bf16.mxu0 %v4962_v62  ;;  %2288 = vmatprep.subr.bf16.mxu1 %v4964_v63  ;;  %v534_v62 = vld [vmem:[%s6694_s2 + $0x2b0] sm:$0xff]  ;;  %v531_v63 = vld [vmem:[%s6694_s2 + $0x298] sm:$0xff] }
 0x13e   : > { %v5026_v4 = vcombine.high %v530_v61, %v534_v62  ;;  %v5025_v11 = vcombine.low %v530_v61, %v534_v62  ;;  %v5027_v44 = vcombine.low %v531_v63, %v535_v0  ;;  %v2618_v61 = vrot.slane %v6399_v54, %v5975_v51  ;;  %v2632_v62 = vld [vmem:[#allocation8 + $0x48] sm:$0xff] }
 0x140   : > { %2248 = vmatpush1.bf16.msra.mxu0 %v4961_v5  ;;  %2289 = vmatpush1.bf16.msra.mxu1 %v4963_v7  ;;  %v5028_v5 = vcombine.high %v531_v63, %v535_v0  ;;  %v538_v7 = vld [vmem:[%s6694_s2 + $0x2d0] sm:$0xff] }
 0x141   : > { %2249 = vmatprep.subr.bf16.mxu0 %v4970_v8  ;;  %2290 = vmatprep.subr.bf16.mxu1 %v4972_v9  ;;  %v542_v8 = vld [vmem:[%s6694_s2 + $0x2f0] sm:$0xff]  ;;  %v539_v9 = vld [vmem:[%s6694_s2 + $0x2d8] sm:$0xff] }
 0x142   : > { %v5034_v12 = vcombine.high %v538_v7, %v542_v8  ;;  %v5033_v18 = vcombine.low %v538_v7, %v542_v8  ;;  %v5035_v19 = vcombine.low %v539_v9, %v543_v10  ;;  %v2636_v63 = vld [vmem:[#allocation8 + $0x68] sm:$0xff]  ;;  %v2643_v7 = vld [vmem:[#allocation8 + $0xa0] sm:$0xff]  ;;  %v6403_v8 = vpack.c.bf16 %v2618_v61, %v2618_v61 }
 0x144   : > { %2250 = vmatpush1.bf16.msra.mxu0 %v4969_v13  ;;  %2291 = vmatpush1.bf16.msra.mxu1 %v4971_v14  ;;  %v5036_v13 = vcombine.high %v539_v9, %v543_v10  ;;  %v546_v14 = vld [vmem:[%s6694_s2 + $0x310] sm:$0xff] }
 0x145   : > { %2251 = vmatprep.subr.bf16.mxu0 %v4978_v15  ;;  %2292 = vmatprep.subr.bf16.mxu1 %v4980_v16  ;;  %v550_v15 = vld [vmem:[%s6694_s2 + $0x330] sm:$0xff]  ;;  %v547_v16 = vld [vmem:[%s6694_s2 + $0x318] sm:$0xff] }
 0x146   : > { %v5042_v20 = vcombine.high %v546_v14, %v550_v15  ;;  %v5041_v27 = vcombine.low %v546_v14, %v550_v15  ;;  %v5043_v28 = vcombine.low %v547_v16, %v551_v17  ;;  %v2640_v9 = vld [vmem:[#allocation8 + $0x88] sm:$0xff]  ;;  %v2647_v14 = vld [vmem:[#allocation8 + $0xc0] sm:$0xff] }
 0x147   : > { %v2644_v10 = vld [vmem:[#allocation8 + $0xa8] sm:$0xff]  ;;  %v2651_v15 = vld [vmem:[#allocation8 + $0xe0] sm:$0xff] }
 0x148   : > { %2252 = vmatpush1.bf16.msra.mxu0 %v4977_v21  ;;  %2293 = vmatpush1.bf16.msra.mxu1 %v4979_v23  ;;  %v5044_v21 = vcombine.high %v547_v16, %v551_v17  ;;  %v554_v23 = vld [vmem:[%s6694_s2 + $0x350] sm:$0xff] }
 0x149   : > { %2253 = vmatprep.subr.bf16.mxu0 %v4986_v24  ;;  %2294 = vmatprep.subr.bf16.mxu1 %v4988_v25  ;;  %v558_v24 = vld [vmem:[%s6694_s2 + $0x370] sm:$0xff]  ;;  %v555_v25 = vld [vmem:[%s6694_s2 + $0x358] sm:$0xff] }
 0x14a   : > { %v5050_v29 = vcombine.high %v554_v23, %v558_v24  ;;  %v5049_v36 = vcombine.low %v554_v23, %v558_v24  ;;  %v5051_v37 = vcombine.low %v555_v25, %v559_v57  ;;  %v2648_v16 = vld [vmem:[#allocation8 + $0xc8] sm:$0xff]  ;;  %v2659_v23 = vld [vmem:[#allocation8 + $0x120] sm:$0xff] }
 0x14b   : > { %v2652_v17 = vld [vmem:[#allocation8 + $0xe8] sm:$0xff] }
 0x14c   : > { %2254 = vmatpush1.bf16.msra.mxu0 %v4985_v30  ;;  %2295 = vmatpush1.bf16.msra.mxu1 %v4987_v31  ;;  %v5052_v30 = vcombine.high %v555_v25, %v559_v57  ;;  %v562_v31 = vld [vmem:[%s6694_s2 + $0x390] sm:$0xff]  ;;  %v5099_v57 = vcombine.low %v2647_v14, %v2651_v15 }
 0x14d   : > { %2255 = vmatprep.subr.bf16.mxu0 %v4994_v32  ;;  %2296 = vmatprep.subr.bf16.mxu1 %v4996_v34  ;;  %v566_v32 = vld [vmem:[%s6694_s2 + $0x3b0] sm:$0xff]  ;;  %v563_v34 = vld [vmem:[%s6694_s2 + $0x398] sm:$0xff] }
 0x14e   : > { %v5058_v38 = vcombine.high %v562_v31, %v566_v32  ;;  %v5057_v46 = vcombine.low %v562_v31, %v566_v32  ;;  %v5059_v47 = vcombine.low %v563_v34, %v567_v35  ;;  %v2656_v24 = vld [vmem:[#allocation8 + $0x108] sm:$0xff]  ;;  %v2667_v31 = vld [vmem:[#allocation8 + $0x160] sm:$0xff] }
 0x14f   : > { %v2660_v25 = vld [vmem:[#allocation8 + $0x128] sm:$0xff] }
 0x150   : > { %2256 = vmatpush1.bf16.msra.mxu0 %v4993_v39  ;;  %2297 = vmatpush1.bf16.msra.mxu1 %v4995_v40  ;;  %v5060_v39 = vcombine.high %v563_v34, %v567_v35  ;;  %v570_v40 = vld [vmem:[%s6694_s2 + $0x3d0] sm:$0xff] }
 0x151   : > { %2257 = vmatprep.subr.bf16.mxu0 %v5002_v41  ;;  %2298 = vmatprep.subr.bf16.mxu1 %v5004_v43  ;;  %v574_v41 = vld [vmem:[%s6694_s2 + $0x3f0] sm:$0xff]  ;;  %v571_v43 = vld [vmem:[%s6694_s2 + $0x3d8] sm:$0xff] }
 0x152   : > { %v5066_v26 = vcombine.high %v570_v40, %v574_v41  ;;  %v5065_v1 = vcombine.low %v570_v40, %v574_v41  ;;  %v5067_v55 = vcombine.low %v571_v43, %v575_v45  ;;  %v2664_v32 = vld [vmem:[#allocation8 + $0x148] sm:$0xff]  ;;  %v2675_v40 = vld [vmem:[#allocation8 + $0x1a0] sm:$0xff] }
 0x153   : > { %v2668_v34 = vld [vmem:[#allocation8 + $0x168] sm:$0xff] }
 0x154   : > { %2258 = vmatpush1.bf16.msra.mxu0 %v5001_v48  ;;  %2299 = vmatpush1.bf16.msra.mxu1 %v5003_v50  ;;  %v5068_v48 = vcombine.high %v571_v43, %v575_v45  ;;  %v2623_v50 = vld [vmem:[#allocation8] sm:$0xff]  ;;  %v2672_v41 = vld [vmem:[#allocation8 + $0x188] sm:$0xff] }
 0x155   : > { %2259 = vmatprep.subr.bf16.mxu0 %v5010_v52  ;;  %2300 = vmatprep.subr.bf16.mxu1 %v5012_v53  ;;  %v2627_v52 = vld [vmem:[#allocation8 + $0x20] sm:$0xff]  ;;  %v2624_v53 = vld [vmem:[#allocation8 + $0x8] sm:$0xff] }
 0x156   : > { %v5075_v0 = vcombine.low %v2623_v50, %v2627_v52  ;;  %v2676_v43 = vld [vmem:[#allocation8 + $0x1a8] sm:$0xff] }
 0x158   : > { %2260 = vmatpush1.bf16.msra.mxu0 %v5009_v56  ;;  %2301 = vmatpush1.bf16.msra.mxu1 %v5011_v58  ;;  %v5076_v56 = vcombine.high %v2623_v50, %v2627_v52  ;;  %v5078_v58 = vcombine.high %v2624_v53, %v2628_v22  ;;  %v2679_v50 = vld [vmem:[#allocation8 + $0x1c0] sm:$0xff] }
 0x159   : > { %2261 = vmatprep.subr.bf16.mxu0 %v5018_v59  ;;  %2302 = vmatprep.subr.bf16.mxu1 %v5020_v60  ;;  %v2631_v59 = vld [vmem:[#allocation8 + $0x40] sm:$0xff] }
 0x15a   : > { %v2635_v60 = vld [vmem:[#allocation8 + $0x60] sm:$0xff] }
 0x15b   : > { %v2683_v52 = vld [vmem:[#allocation8 + $0x1e0] sm:$0xff] }
 0x15c   : > { %2262 = vmatpush1.bf16.msra.mxu0 %v5017_v2  ;;  %2303 = vmatpush1.bf16.msra.mxu1 %v5019_v3  ;;  %v5077_v2 = vcombine.low %v2624_v53, %v2628_v22  ;;  %v5084_v3 = vcombine.high %v2631_v59, %v2635_v60 }
 0x15d   : > { %2263 = vmatprep.subr.bf16.mxu0 %v5026_v4  ;;  %2304 = vmatprep.subr.bf16.mxu1 %v5028_v5  ;;  %v5086_v4 = vcombine.high %v2632_v62, %v2636_v63  ;;  %v2639_v5 = vld [vmem:[#allocation8 + $0x80] sm:$0xff] }
 0x160   : > { %2264 = vmatpush1.bf16.msra.mxu0 %v5025_v11  ;;  %2305 = vmatpush1.bf16.msra.mxu1 %v5027_v44  ;;  %v5083_v11 = vcombine.low %v2631_v59, %v2635_v60  ;;  %v5085_v44 = vcombine.low %v2632_v62, %v2636_v63  ;;  %v5125_v62 = vcombine.low %v2672_v41, %v2676_v43 }
 0x161   : > { %2265 = vmatprep.subr.bf16.mxu0 %v5034_v12  ;;  %2306 = vmatprep.subr.bf16.mxu1 %v5036_v13  ;;  %v5092_v12 = vcombine.high %v2639_v5, %v2643_v7  ;;  %v5094_v13 = vcombine.high %v2640_v9, %v2644_v10  ;;  %v5132_v63 = vcombine.high %v2679_v50, %v2683_v52 }
 0x164   : > { %2266 = vmatpush1.bf16.msra.mxu0 %v5033_v18  ;;  %2307 = vmatpush1.bf16.msra.mxu1 %v5035_v19  ;;  %v5091_v18 = vcombine.low %v2639_v5, %v2643_v7  ;;  %v5100_v19 = vcombine.high %v2647_v14, %v2651_v15  ;;  %v2688_v5 = vld [vmem:[#allocation8 + $0x208] sm:$0xff] }
 0x165   : > { %2267 = vmatprep.subr.bf16.mxu0 %v5042_v20  ;;  %2308 = vmatprep.subr.bf16.mxu1 %v5044_v21  ;;  %v5102_v20 = vcombine.high %v2648_v16, %v2652_v17  ;;  %v2655_v21 = vld [vmem:[#allocation8 + $0x100] sm:$0xff]  ;;  %v2692_v7 = vld [vmem:[#allocation8 + $0x228] sm:$0xff] }
 0x166   : > { %v5107_v35 = vcombine.low %v2655_v21, %v2659_v23  ;;  %v2696_v14 = vld [vmem:[#allocation8 + $0x248] sm:$0xff] }
 0x167   : > { %v2700_v15 = vld [vmem:[#allocation8 + $0x268] sm:$0xff] }
 0x168   : > { %2268 = vmatpush1.bf16.msra.mxu0 %v5041_v27  ;;  %2309 = vmatpush1.bf16.msra.mxu1 %v5043_v28  ;;  %v5101_v27 = vcombine.low %v2648_v16, %v2652_v17  ;;  %v5108_v28 = vcombine.high %v2655_v21, %v2659_v23  ;;  %v5141_v17 = vcombine.low %v2688_v5, %v2692_v7  ;;  %v2704_v21 = vld [vmem:[#allocation8 + $0x288] sm:$0xff] }
 0x169   : > { %2269 = vmatprep.subr.bf16.mxu0 %v5050_v29  ;;  %2310 = vmatprep.subr.bf16.mxu1 %v5052_v30  ;;  %v5110_v29 = vcombine.high %v2656_v24, %v2660_v25  ;;  %v2663_v30 = vld [vmem:[#allocation8 + $0x140] sm:$0xff]  ;;  %v2708_v23 = vld [vmem:[#allocation8 + $0x2a8] sm:$0xff] }
 0x16a   : > { %v5115_v45 = vcombine.low %v2663_v30, %v2667_v31 }
 0x16c   : > { %2270 = vmatpush1.bf16.msra.mxu0 %v5049_v36  ;;  %2311 = vmatpush1.bf16.msra.mxu1 %v5051_v37  ;;  %v5109_v36 = vcombine.low %v2656_v24, %v2660_v25  ;;  %v5116_v37 = vcombine.high %v2663_v30, %v2667_v31  ;;  %v5149_v25 = vcombine.low %v2696_v14, %v2700_v15  ;;  %v2712_v30 = vld [vmem:[#allocation8 + $0x2c8] sm:$0xff] }
 0x16d   : > { %2271 = vmatprep.subr.bf16.mxu0 %v5058_v38  ;;  %2312 = vmatprep.subr.bf16.mxu1 %v5060_v39  ;;  %v5118_v38 = vcombine.high %v2664_v32, %v2668_v34  ;;  %v2671_v39 = vld [vmem:[#allocation8 + $0x180] sm:$0xff]  ;;  %v2716_v31 = vld [vmem:[#allocation8 + $0x2e8] sm:$0xff] }
 0x16e   : > { %v5123_v59 = vcombine.low %v2671_v39, %v2675_v40 }
 0x170   : > { %2272 = vmatpush1.bf16.msra.mxu0 %v5057_v46  ;;  %2313 = vmatpush1.bf16.msra.mxu1 %v5059_v47  ;;  %v5117_v46 = vcombine.low %v2664_v32, %v2668_v34  ;;  %v5124_v47 = vcombine.high %v2671_v39, %v2675_v40  ;;  %v5157_v34 = vcombine.low %v2704_v21, %v2708_v23  ;;  %v2720_v39 = vld [vmem:[#allocation8 + $0x308] sm:$0xff] }
 0x171   : > { %2273 = vmatprep.subr.bf16.mxu0 %v5066_v26  ;;  %2314 = vmatprep.subr.bf16.mxu1 %v5068_v48  ;;  %v5126_v48 = vcombine.high %v2672_v41, %v2676_v43  ;;  %v2724_v40 = vld [vmem:[#allocation8 + $0x328] sm:$0xff]  ;;  %v5165_v43 = vcombine.low %v2712_v30, %v2716_v31 }
 0x174   : > { %2274 = vmatpush1.bf16.msra.mxu0 %v5065_v1  ;;  %2315 = vmatpush1.bf16.msra.mxu1 %v5067_v55  ;;  %v2680_v1 = vld [vmem:[#allocation8 + $0x1c8] sm:$0xff] }
 0x175   : > { %3391 = vmatprep.subr.bf16.mxu0 %v5076_v56  ;;  %3432 = vmatprep.subr.bf16.mxu1 %v5078_v58  ;;  %v2684_v55 = vld [vmem:[#allocation8 + $0x1e8] sm:$0xff] }
 0x177   : > { %2276 = vmatmul.mubr.bf16.vlgmr.msra.gmra.mrb[12].mxu0 %v6219_v49  ;;  %2317 = vmatmul.mubr.bf16.vlgmr.msra.gmra.mrb[12].mxu1 %v6219_v49  ;;  %v5093_v49 = vcombine.low %v2640_v9, %v2644_v10  ;;  %v5131_v9 = vcombine.low %v2679_v50, %v2683_v52  ;;  %v5133_v10 = vcombine.low %v2680_v1, %v2684_v55  ;;  %v2728_v50 = vld [vmem:[#allocation8 + $0x348] sm:$0xff] }
 0x178   : > { %3392 = vmatpush1.bf16.msra.mxu0 %v5075_v0  ;;  %3433 = vmatpush1.bf16.msra.mxu1 %v5077_v2  ;;  %v5134_v2 = vcombine.high %v2680_v1, %v2684_v55  ;;  %v2732_v52 = vld [vmem:[#allocation8 + $0x368] sm:$0xff]  ;;  %v5173_v55 = vcombine.low %v2720_v39, %v2724_v40 }
 0x179   : > { %3393 = vmatprep.subr.bf16.mxu0 %v5084_v3  ;;  %3434 = vmatprep.subr.bf16.mxu1 %v5086_v4  ;;  %v2687_v3 = vld [vmem:[#allocation8 + $0x200] sm:$0xff] }
 0x17a   : > { %3423 = vmatprep.mubr.bf16.mxu0 %v6403_v8  ;;  %3464 = vmatprep.mubr.bf16.mxu1 %v6403_v8  ;;  %v2691_v4 = vld [vmem:[#allocation8 + $0x220] sm:$0xff] }
 0x17b   : > { %v5139_v16 = vcombine.low %v2687_v3, %v2691_v4 }
 0x17c   : > { %3394 = vmatpush1.bf16.msra.mxu0 %v5083_v11  ;;  %3435 = vmatpush1.bf16.msra.mxu1 %v5085_v44  ;;  %v5140_v11 = vcombine.high %v2687_v3, %v2691_v4  ;;  %v5142_v44 = vcombine.high %v2688_v5, %v2692_v7  ;;  %v2743_v5 = vld [vmem:[#allocation8 + $0x3c0] sm:$0xff] }
 0x17d   : > { %3395 = vmatprep.subr.bf16.mxu0 %v5092_v12  ;;  %3436 = vmatprep.subr.bf16.mxu1 %v5094_v13  ;;  %v2695_v12 = vld [vmem:[#allocation8 + $0x240] sm:$0xff] }
 0x17e   : > { %v2699_v13 = vld [vmem:[#allocation8 + $0x260] sm:$0xff] }
 0x17f   : > { %v5147_v24 = vcombine.low %v2695_v12, %v2699_v13  ;;  %v2747_v7 = vld [vmem:[#allocation8 + $0x3e0] sm:$0xff] }
 0x180   : > { %3396 = vmatpush1.bf16.msra.mxu0 %v5091_v18  ;;  %3437 = vmatpush1.bf16.msra.mxu1 %v5093_v49  ;;  %v5148_v18 = vcombine.high %v2695_v12, %v2699_v13  ;;  %v5150_v49 = vcombine.high %v2696_v14, %v2700_v15  ;;  %v5196_v12 = vcombine.high %v2743_v5, %v2747_v7  ;;  %v2625_v14 = vld [vmem:[#allocation8 + $0x10] sm:$0xff] }
 0x181   : > { %3397 = vmatprep.subr.bf16.mxu0 %v5100_v19  ;;  %3438 = vmatprep.subr.bf16.mxu1 %v5102_v20  ;;  %v2703_v19 = vld [vmem:[#allocation8 + $0x280] sm:$0xff]  ;;  %v2629_v15 = vld [vmem:[#allocation8 + $0x30] sm:$0xff] }
 0x182   : > { %v2707_v20 = vld [vmem:[#allocation8 + $0x2a0] sm:$0xff] }
 0x183   : > { %v5155_v32 = vcombine.low %v2703_v19, %v2707_v20 }
 0x184   : > { %3398 = vmatpush1.bf16.msra.mxu0 %v5099_v57  ;;  %3439 = vmatpush1.bf16.msra.mxu1 %v5101_v27  ;;  %v5156_v57 = vcombine.high %v2703_v19, %v2707_v20  ;;  %v5158_v27 = vcombine.high %v2704_v21, %v2708_v23  ;;  %v5080_v20 = vcombine.high %v2625_v14, %v2629_v15  ;;  %v2633_v23 = vld [vmem:[#allocation8 + $0x50] sm:$0xff] }
 0x185   : > { %3399 = vmatprep.subr.bf16.mxu0 %v5108_v28  ;;  %3440 = vmatprep.subr.bf16.mxu1 %v5110_v29  ;;  %v2711_v28 = vld [vmem:[#allocation8 + $0x2c0] sm:$0xff] }
 0x186   : > { %v2715_v29 = vld [vmem:[#allocation8 + $0x2e0] sm:$0xff] }
 0x187   : > { %v5163_v41 = vcombine.low %v2711_v28, %v2715_v29 }
 0x188   : > { %3400 = vmatpush1.bf16.msra.mxu0 %v5107_v35  ;;  %3441 = vmatpush1.bf16.msra.mxu1 %v5109_v36  ;;  %v5164_v35 = vcombine.high %v2711_v28, %v2715_v29  ;;  %v5166_v36 = vcombine.high %v2712_v30, %v2716_v31  ;;  %v5079_v28 = vcombine.low %v2625_v14, %v2629_v15  ;;  %v2641_v31 = vld [vmem:[#allocation8 + $0x90] sm:$0xff] }
 0x189   : > { %3401 = vmatprep.subr.bf16.mxu0 %v5116_v37  ;;  %3442 = vmatprep.subr.bf16.mxu1 %v5118_v38  ;;  %v2719_v37 = vld [vmem:[#allocation8 + $0x300] sm:$0xff] }
 0x18a   : > { %v6409_v26 = vpop.f32.mrb[0].mxu0  ;;  %v6411_v53 = vpop.f32.mrb[0].mxu1  ;;  %v2723_v38 = vld [vmem:[#allocation8 + $0x320] sm:$0xff] }
 0x18b   : > { %v6413_v22 = vpop.f32.mrb[1].mxu0  ;;  %v6415_v56 = vpop.f32.mrb[1].mxu1  ;;  %v5171_v1 = vcombine.low %v2719_v37, %v2723_v38 }
 0x18c   : > { %v1395_v58 = vpop.f32.mrb[2].mxu0  ;;  %3402 = vmatpush1.bf16.msra.mxu0 %v5115_v45  ;;  %v1436_v60 = vpop.f32.mrb[2].mxu1  ;;  %3443 = vmatpush1.bf16.msra.mxu1 %v5117_v46  ;;  %v5172_v45 = vcombine.high %v2719_v37, %v2723_v38  ;;  %v5174_v46 = vcombine.high %v2720_v39, %v2724_v40  ;;  %v2649_v40 = vld [vmem:[#allocation8 + $0xd0] sm:$0xff] }
 0x18d   : > { %v1396_v61 = vpop.f32.mrb[3].mxu0  ;;  %3403 = vmatprep.subr.bf16.mxu0 %v5124_v47  ;;  %v1437_v0 = vpop.f32.mrb[3].mxu1  ;;  %3444 = vmatprep.subr.bf16.mxu1 %v5126_v48  ;;  %v2727_v47 = vld [vmem:[#allocation8 + $0x340] sm:$0xff] }
 0x18e   : > { %v2731_v48 = vld [vmem:[#allocation8 + $0x360] sm:$0xff] }
 0x18f   : > { %v5180_v58 = vcombine.high %v2727_v47, %v2731_v48  ;;  %v2735_v60 = vld [vmem:[#allocation8 + $0x380] sm:$0xff]  ;;  %v5179_v0 = vcombine.low %v2727_v47, %v2731_v48 }
 0x190   : > { %3404 = vmatpush1.bf16.msra.mxu0 %v5123_v59  ;;  %3445 = vmatpush1.bf16.msra.mxu1 %v5125_v62  ;;  %v5182_v59 = vcombine.high %v2728_v50, %v2732_v52  ;;  %v2739_v61 = vld [vmem:[#allocation8 + $0x3a0] sm:$0xff]  ;;  %v2736_v62 = vld [vmem:[#allocation8 + $0x388] sm:$0xff] }
 0x191   : > { %3405 = vmatprep.subr.bf16.mxu0 %v5132_v63  ;;  %3446 = vmatprep.subr.bf16.mxu1 %v5134_v2  ;;  %v2740_v63 = vld [vmem:[#allocation8 + $0x3a8] sm:$0xff]  ;;  %v5181_v2 = vcombine.low %v2728_v50, %v2732_v52  ;;  %v5188_v3 = vcombine.high %v2735_v60, %v2739_v61  ;;  %v2657_v52 = vld [vmem:[#allocation8 + $0x110] sm:$0xff] }
 0x192   : > { %v5190_v4 = vcombine.high %v2736_v62, %v2740_v63 }
 0x194   : > { %3406 = vmatpush1.bf16.msra.mxu0 %v5131_v9  ;;  %3447 = vmatpush1.bf16.msra.mxu1 %v5133_v10  ;;  %v2744_v9 = vld [vmem:[#allocation8 + $0x3c8] sm:$0xff] }
 0x195   : > { %3407 = vmatprep.subr.bf16.mxu0 %v5140_v11  ;;  %3448 = vmatprep.subr.bf16.mxu1 %v5142_v44  ;;  %v2748_v10 = vld [vmem:[#allocation8 + $0x3e8] sm:$0xff]  ;;  %v5187_v11 = vcombine.low %v2735_v60, %v2739_v61  ;;  %v5189_v44 = vcombine.low %v2736_v62, %v2740_v63  ;;  %v2665_v62 = vld [vmem:[#allocation8 + $0x150] sm:$0xff] }
 0x196   : > { %v5198_v13 = vcombine.high %v2744_v9, %v2748_v10  ;;  %v5197_v19 = vcombine.low %v2744_v9, %v2748_v10  ;;  %v2669_v63 = vld [vmem:[#allocation8 + $0x170] sm:$0xff] }
 0x197   : > { %v2673_v9 = vld [vmem:[#allocation8 + $0x190] sm:$0xff] }
 0x198   : > { %3408 = vmatpush1.bf16.msra.mxu0 %v5139_v16  ;;  %3449 = vmatpush1.bf16.msra.mxu1 %v5141_v17  ;;  %v2614_v16 = vrot.slane %v6399_v54, %v5986_v6  ;;  %v2626_v17 = vld [vmem:[#allocation8 + $0x18] sm:$0xff]  ;;  %v2677_v10 = vld [vmem:[#allocation8 + $0x1b0] sm:$0xff] }
 0x199   : > { %3409 = vmatprep.subr.bf16.mxu0 %v5148_v18  ;;  %3450 = vmatprep.subr.bf16.mxu1 %v5150_v49  ;;  %v2630_v18 = vld [vmem:[#allocation8 + $0x38] sm:$0xff]  ;;  %v5195_v49 = vcombine.low %v2743_v5, %v2747_v7  ;;  %v5120_v5 = vcombine.high %v2665_v62, %v2669_v63  ;;  %v5128_v14 = vcombine.high %v2673_v9, %v2677_v10 }
 0x19a   : > { %v5082_v21 = vcombine.high %v2626_v17, %v2630_v18  ;;  %v5081_v54 = vcombine.low %v2626_v17, %v2630_v18  ;;  %v2681_v17 = vld [vmem:[#allocation8 + $0x1d0] sm:$0xff] }
 0x19b   : > { %v2685_v18 = vld [vmem:[#allocation8 + $0x1f0] sm:$0xff] }
 0x19c   : > { %3410 = vmatpush1.bf16.msra.mxu0 %v5147_v24  ;;  %3451 = vmatpush1.bf16.msra.mxu1 %v5149_v25  ;;  %v2637_v24 = vld [vmem:[#allocation8 + $0x70] sm:$0xff]  ;;  %v6419_v25 = vpack.c.bf16 %v2614_v16, %v2614_v16 }
 0x19d   : > { %3411 = vmatprep.subr.bf16.mxu0 %v5156_v57  ;;  %3452 = vmatprep.subr.bf16.mxu1 %v5158_v27  ;;  %v2634_v57 = vld [vmem:[#allocation8 + $0x58] sm:$0xff]  ;;  %v5088_v29 = vcombine.high %v2633_v23, %v2637_v24 }
 0x19e   : > { %v2638_v27 = vld [vmem:[#allocation8 + $0x78] sm:$0xff] }
 0x19f   : > { %v5090_v30 = vcombine.high %v2634_v57, %v2638_v27  ;;  %v5089_v37 = vcombine.low %v2634_v57, %v2638_v27  ;;  %v5127_v57 = vcombine.low %v2673_v9, %v2677_v10  ;;  %v2721_v10 = vld [vmem:[#allocation8 + $0x310] sm:$0xff] }
 0x1a0   : > { %3412 = vmatpush1.bf16.msra.mxu0 %v5155_v32  ;;  %3453 = vmatpush1.bf16.msra.mxu1 %v5157_v34  ;;  %v2645_v32 = vld [vmem:[#allocation8 + $0xb0] sm:$0xff]  ;;  %v2642_v34 = vld [vmem:[#allocation8 + $0x98] sm:$0xff] }
 0x1a1   : > { %3413 = vmatprep.subr.bf16.mxu0 %v5164_v35  ;;  %3454 = vmatprep.subr.bf16.mxu1 %v5166_v36  ;;  %v2646_v35 = vld [vmem:[#allocation8 + $0xb8] sm:$0xff]  ;;  %v5087_v36 = vcombine.low %v2633_v23, %v2637_v24  ;;  %v5096_v38 = vcombine.high %v2641_v31, %v2645_v32 }
 0x1a2   : > { %v5098_v39 = vcombine.high %v2642_v34, %v2646_v35  ;;  %v5097_v47 = vcombine.low %v2642_v34, %v2646_v35  ;;  %v2693_v34 = vld [vmem:[#allocation8 + $0x230] sm:$0xff]  ;;  %v2690_v35 = vld [vmem:[#allocation8 + $0x218] sm:$0xff] }
 0x1a4   : > { %3414 = vmatpush1.bf16.msra.mxu0 %v5163_v41  ;;  %3455 = vmatpush1.bf16.msra.mxu1 %v5165_v43  ;;  %v2653_v41 = vld [vmem:[#allocation8 + $0xf0] sm:$0xff]  ;;  %v2650_v43 = vld [vmem:[#allocation8 + $0xd8] sm:$0xff] }
 0x1a5   : > { %3415 = vmatprep.subr.bf16.mxu0 %v5172_v45  ;;  %3456 = vmatprep.subr.bf16.mxu1 %v5174_v46  ;;  %v2654_v45 = vld [vmem:[#allocation8 + $0xf8] sm:$0xff]  ;;  %v5095_v46 = vcombine.low %v2641_v31, %v2645_v32  ;;  %v5104_v48 = vcombine.high %v2649_v40, %v2653_v41  ;;  %v2689_v32 = vld [vmem:[#allocation8 + $0x210] sm:$0xff] }
 0x1a6   : > { %v5106_v50 = vcombine.high %v2650_v43, %v2654_v45  ;;  %v5105_v60 = vcombine.low %v2650_v43, %v2654_v45  ;;  %v2701_v43 = vld [vmem:[#allocation8 + $0x270] sm:$0xff]  ;;  %v2698_v45 = vld [vmem:[#allocation8 + $0x258] sm:$0xff] }
 0x1a8   : > { %3416 = vmatpush1.bf16.msra.mxu0 %v5171_v1  ;;  %3457 = vmatpush1.bf16.msra.mxu1 %v5173_v55  ;;  %v2661_v1 = vld [vmem:[#allocation8 + $0x130] sm:$0xff]  ;;  %v2658_v55 = vld [vmem:[#allocation8 + $0x118] sm:$0xff] }
 0x1a9   : > { %3417 = vmatprep.subr.bf16.mxu0 %v5180_v58  ;;  %3458 = vmatprep.subr.bf16.mxu1 %v5182_v59  ;;  %v2662_v58 = vld [vmem:[#allocation8 + $0x138] sm:$0xff]  ;;  %v5103_v59 = vcombine.low %v2649_v40, %v2653_v41  ;;  %v5112_v61 = vcombine.high %v2657_v52, %v2661_v1  ;;  %v2697_v41 = vld [vmem:[#allocation8 + $0x250] sm:$0xff] }
 0x1ac   : > { %3418 = vmatpush1.bf16.msra.mxu0 %v5179_v0  ;;  %3459 = vmatpush1.bf16.msra.mxu1 %v5181_v2  ;;  %v2666_v0 = vld [vmem:[#allocation8 + $0x158] sm:$0xff] }
 0x1ad   : > { %3419 = vmatprep.subr.bf16.mxu0 %v5188_v3  ;;  %3460 = vmatprep.subr.bf16.mxu1 %v5190_v4  ;;  %v2670_v2 = vld [vmem:[#allocation8 + $0x178] sm:$0xff]  ;;  %v5111_v3 = vcombine.low %v2657_v52, %v2661_v1  ;;  %v5113_v4 = vcombine.low %v2658_v55, %v2662_v58  ;;  %v2705_v1 = vld [vmem:[#allocation8 + $0x290] sm:$0xff] }
 0x1ae   : > { %v5122_v7 = vcombine.high %v2666_v0, %v2670_v2 }
 0x1b0   : > { %3420 = vmatpush1.bf16.msra.mxu0 %v5187_v11  ;;  %3461 = vmatpush1.bf16.msra.mxu1 %v5189_v44  ;;  %v2674_v11 = vld [vmem:[#allocation8 + $0x198] sm:$0xff] }
 0x1b1   : > { %3421 = vmatprep.subr.bf16.mxu0 %v5196_v12  ;;  %3462 = vmatprep.subr.bf16.mxu1 %v5198_v13  ;;  %v2678_v44 = vld [vmem:[#allocation8 + $0x1b8] sm:$0xff]  ;;  %v5119_v12 = vcombine.low %v2665_v62, %v2669_v63  ;;  %v5121_v13 = vcombine.low %v2666_v0, %v2670_v2  ;;  %v2713_v63 = vld [vmem:[#allocation8 + $0x2d0] sm:$0xff] }
 0x1b2   : > { %v5130_v16 = vcombine.high %v2674_v11, %v2678_v44  ;;  %v2717_v0 = vld [vmem:[#allocation8 + $0x2f0] sm:$0xff]  ;;  %v2714_v2 = vld [vmem:[#allocation8 + $0x2d8] sm:$0xff] }
 0x1b4   : > { %3422 = vmatpush1.bf16.msra.mxu0 %v5195_v49  ;;  %3463 = vmatpush1.bf16.msra.mxu1 %v5197_v19 }
 0x1b5   : > { %3473 = vmatprep.subr.bf16.mxu0 %v5080_v20  ;;  %3514 = vmatprep.subr.bf16.mxu1 %v5082_v21  ;;  %v2682_v20 = vld [vmem:[#allocation8 + $0x1d8] sm:$0xff] }
 0x1b6   : > { %v2686_v21 = vld [vmem:[#allocation8 + $0x1f8] sm:$0xff] }
 0x1b7   : > { %3424 = vmatmul.mubr.bf16.vlgmr.msra.gmra.mrb[16].mxu0 %v6419_v25  ;;  %3465 = vmatmul.mubr.bf16.vlgmr.msra.gmra.mrb[16].mxu1 %v6419_v25  ;;  %v5138_v31 = vcombine.high %v2682_v20, %v2686_v21 }
 0x1b8   : > { %3474 = vmatpush1.bf16.msra.mxu0 %v5079_v28  ;;  %3515 = vmatpush1.bf16.msra.mxu1 %v5081_v54  ;;  %v5129_v54 = vcombine.low %v2674_v11, %v2678_v44  ;;  %v2725_v11 = vld [vmem:[#allocation8 + $0x330] sm:$0xff]  ;;  %v2722_v44 = vld [vmem:[#allocation8 + $0x318] sm:$0xff] }
 0x1b9   : > { %3475 = vmatprep.subr.bf16.mxu0 %v5088_v29  ;;  %3516 = vmatprep.subr.bf16.mxu1 %v5090_v30  ;;  %v5136_v29 = vcombine.high %v2681_v17, %v2685_v18 }
 0x1ba   : > { %3505 = vmatprep.mubr.bf16.mxu0 %v6403_v8  ;;  %3546 = vmatprep.mubr.bf16.mxu1 %v6403_v8  ;;  %v5114_v8 = vcombine.high %v2658_v55, %v2662_v58  ;;  %v2709_v55 = vld [vmem:[#allocation8 + $0x2b0] sm:$0xff]  ;;  %v2706_v58 = vld [vmem:[#allocation8 + $0x298] sm:$0xff] }
 0x1bc   : > { %3476 = vmatpush1.bf16.msra.mxu0 %v5087_v36  ;;  %3517 = vmatpush1.bf16.msra.mxu1 %v5089_v37  ;;  %v2694_v36 = vld [vmem:[#allocation8 + $0x238] sm:$0xff]  ;;  %v5135_v37 = vcombine.low %v2681_v17, %v2685_v18  ;;  %v2729_v18 = vld [vmem:[#allocation8 + $0x350] sm:$0xff] }
 0x1bd   : > { %3477 = vmatprep.subr.bf16.mxu0 %v5096_v38  ;;  %3518 = vmatprep.subr.bf16.mxu1 %v5098_v39  ;;  %v5137_v38 = vcombine.low %v2682_v20, %v2686_v21  ;;  %v5144_v39 = vcombine.high %v2689_v32, %v2693_v34  ;;  %v5146_v40 = vcombine.high %v2690_v35, %v2694_v36  ;;  %v2733_v20 = vld [vmem:[#allocation8 + $0x370] sm:$0xff]  ;;  %v2730_v21 = vld [vmem:[#allocation8 + $0x358] sm:$0xff] }
 0x1c0   : > { %3478 = vmatpush1.bf16.msra.mxu0 %v5095_v46  ;;  %3519 = vmatpush1.bf16.msra.mxu1 %v5097_v47  ;;  %v2702_v46 = vld [vmem:[#allocation8 + $0x278] sm:$0xff]  ;;  %v5143_v47 = vcombine.low %v2689_v32, %v2693_v34  ;;  %v5183_v34 = vcombine.low %v2729_v18, %v2733_v20 }
 0x1c1   : > { %3479 = vmatprep.subr.bf16.mxu0 %v5104_v48  ;;  %3520 = vmatprep.subr.bf16.mxu1 %v5106_v50  ;;  %v5145_v48 = vcombine.low %v2690_v35, %v2694_v36  ;;  %v5152_v50 = vcombine.high %v2697_v41, %v2701_v43  ;;  %v5154_v52 = vcombine.high %v2698_v45, %v2702_v46  ;;  %v2742_v32 = vld [vmem:[#allocation8 + $0x3b8] sm:$0xff] }
 0x1c4   : > { %3480 = vmatpush1.bf16.msra.mxu0 %v5103_v59  ;;  %3521 = vmatpush1.bf16.msra.mxu1 %v5105_v60  ;;  %v2710_v59 = vld [vmem:[#allocation8 + $0x2b8] sm:$0xff]  ;;  %v5151_v60 = vcombine.low %v2697_v41, %v2701_v43 }
 0x1c5   : > { %3481 = vmatprep.subr.bf16.mxu0 %v5112_v61  ;;  %3522 = vmatprep.subr.bf16.mxu1 %v5114_v8  ;;  %v5153_v61 = vcombine.low %v2698_v45, %v2702_v46  ;;  %v5160_v8 = vcombine.high %v2705_v1, %v2709_v55  ;;  %v5162_v62 = vcombine.high %v2706_v58, %v2710_v59  ;;  %v2750_v41 = vld [vmem:[#allocation8 + $0x3f8] sm:$0xff] }
 0x1c8   : > { %3482 = vmatpush1.bf16.msra.mxu0 %v5111_v3  ;;  %3523 = vmatpush1.bf16.msra.mxu1 %v5113_v4  ;;  %v2718_v3 = vld [vmem:[#allocation8 + $0x2f8] sm:$0xff]  ;;  %v5159_v4 = vcombine.low %v2705_v1, %v2709_v55  ;;  %v2487_v1 = vld [vmem:[#allocation6 + $0x28] sm:$0xff] }
 0x1c9   : > { %3483 = vmatprep.subr.bf16.mxu0 %v5120_v5  ;;  %3524 = vmatprep.subr.bf16.mxu1 %v5122_v7  ;;  %v5161_v5 = vcombine.low %v2706_v58, %v2710_v59  ;;  %v5168_v7 = vcombine.high %v2713_v63, %v2717_v0  ;;  %v5170_v9 = vcombine.high %v2714_v2, %v2718_v3 }
 0x1ca   : > { %v6425_v15 = vpop.f32.mrb[4].mxu0  ;;  %v6427_v49 = vpop.f32.mrb[4].mxu1 }
 0x1cb   : > { %v6429_v19 = vpop.f32.mrb[5].mxu0  ;;  %v6431_v23 = vpop.f32.mrb[5].mxu1 }
 0x1cc   : > { %v1477_v24 = vpop.f32.mrb[6].mxu0  ;;  %3484 = vmatpush1.bf16.msra.mxu0 %v5119_v12  ;;  %v1518_v27 = vpop.f32.mrb[6].mxu1  ;;  %3525 = vmatpush1.bf16.msra.mxu1 %v5121_v13  ;;  %v2726_v12 = vld [vmem:[#allocation8 + $0x338] sm:$0xff]  ;;  %v5167_v13 = vcombine.low %v2713_v63, %v2717_v0  ;;  %v2495_v63 = vld [vmem:[#allocation6 + $0x68] sm:$0xff] }
 0x1cd   : > { %v1478_v28 = vpop.f32.mrb[7].mxu0  ;;  %3485 = vmatprep.subr.bf16.mxu0 %v5128_v14  ;;  %v1519_v30 = vpop.f32.mrb[7].mxu1  ;;  %3526 = vmatprep.subr.bf16.mxu1 %v5130_v16  ;;  %v5169_v14 = vcombine.low %v2714_v2, %v2718_v3  ;;  %v5176_v16 = vcombine.high %v2721_v10, %v2725_v11  ;;  %v5178_v17 = vcombine.high %v2722_v44, %v2726_v12  ;;  %v2734_v24 = vld [vmem:[#allocation8 + $0x378] sm:$0xff] }
 0x1ce   : > { %v5177_v27 = vcombine.low %v2722_v44, %v2726_v12  ;;  %v5184_v28 = vcombine.high %v2729_v18, %v2733_v20  ;;  %v2741_v30 = vld [vmem:[#allocation8 + $0x3b0] sm:$0xff]  ;;  %v5185_v35 = vcombine.low %v2730_v21, %v2734_v24  ;;  %v2511_v18 = vld [vmem:[#allocation6 + $0xe8] sm:$0xff] }
 0x1d0   : > { %3486 = vmatpush1.bf16.msra.mxu0 %v5127_v57  ;;  %3527 = vmatpush1.bf16.msra.mxu1 %v5129_v54  ;;  %v5175_v57 = vcombine.low %v2721_v10, %v2725_v11  ;;  %v5186_v54 = vcombine.high %v2730_v21, %v2734_v24  ;;  %v2503_v10 = vld [vmem:[#allocation6 + $0xa8] sm:$0xff] }
 0x1d1   : > { %3487 = vmatprep.subr.bf16.mxu0 %v5136_v29  ;;  %3528 = vmatprep.subr.bf16.mxu1 %v5138_v31  ;;  %v2737_v29 = vld [vmem:[#allocation8 + $0x390] sm:$0xff]  ;;  %v2738_v31 = vld [vmem:[#allocation8 + $0x398] sm:$0xff] }
 0x1d2   : > { %v5192_v36 = vcombine.high %v2737_v29, %v2741_v30  ;;  %v5191_v43 = vcombine.low %v2737_v29, %v2741_v30  ;;  %v5193_v45 = vcombine.low %v2738_v31, %v2742_v32 }
 0x1d4   : > { %3488 = vmatpush1.bf16.msra.mxu0 %v5135_v37  ;;  %3529 = vmatpush1.bf16.msra.mxu1 %v5137_v38  ;;  %v5194_v37 = vcombine.high %v2738_v31, %v2742_v32  ;;  %v2745_v38 = vld [vmem:[#allocation8 + $0x3d0] sm:$0xff] }
 0x1d5   : > { %3489 = vmatprep.subr.bf16.mxu0 %v5144_v39  ;;  %3530 = vmatprep.subr.bf16.mxu1 %v5146_v40  ;;  %v2749_v39 = vld [vmem:[#allocation8 + $0x3f0] sm:$0xff]  ;;  %v2746_v40 = vld [vmem:[#allocation8 + $0x3d8] sm:$0xff] }
 0x1d6   : > { %v5200_v46 = vcombine.high %v2745_v38, %v2749_v39  ;;  %v5199_v55 = vcombine.low %v2745_v38, %v2749_v39  ;;  %v5201_v58 = vcombine.low %v2746_v40, %v2750_v41 }
 0x1d8   : > { %3490 = vmatpush1.bf16.msra.mxu0 %v5143_v47  ;;  %3531 = vmatpush1.bf16.msra.mxu1 %v5145_v48  ;;  %v5202_v47 = vcombine.high %v2746_v40, %v2750_v41  ;;  %v2482_v48 = vld [vmem:[#allocation6] sm:$0xff] }
 0x1d9   : > { %3491 = vmatprep.subr.bf16.mxu0 %v5152_v50  ;;  %3532 = vmatprep.subr.bf16.mxu1 %v5154_v52  ;;  %v2486_v50 = vld [vmem:[#allocation6 + $0x20] sm:$0xff]  ;;  %v2483_v52 = vld [vmem:[#allocation6 + $0x8] sm:$0xff] }
 0x1da   : > { %v5204_v59 = vcombine.high %v2482_v48, %v2486_v50  ;;  %v5203_v0 = vcombine.low %v2482_v48, %v2486_v50  ;;  %v5205_v2 = vcombine.low %v2483_v52, %v2487_v1 }
 0x1dc   : > { %3492 = vmatpush1.bf16.msra.mxu0 %v5151_v60  ;;  %3533 = vmatpush1.bf16.msra.mxu1 %v5153_v61  ;;  %v5206_v60 = vcombine.high %v2483_v52, %v2487_v1  ;;  %v2490_v61 = vld [vmem:[#allocation6 + $0x40] sm:$0xff] }
 0x1dd   : > { %3493 = vmatprep.subr.bf16.mxu0 %v5160_v8  ;;  %3534 = vmatprep.subr.bf16.mxu1 %v5162_v62  ;;  %v2494_v8 = vld [vmem:[#allocation6 + $0x60] sm:$0xff]  ;;  %v2491_v62 = vld [vmem:[#allocation6 + $0x48] sm:$0xff] }
 0x1de   : > { %v5212_v3 = vcombine.high %v2490_v61, %v2494_v8  ;;  %v5211_v11 = vcombine.low %v2490_v61, %v2494_v8  ;;  %v5213_v44 = vcombine.low %v2491_v62, %v2495_v63 }
 0x1e0   : > { %3494 = vmatpush1.bf16.msra.mxu0 %v5159_v4  ;;  %3535 = vmatpush1.bf16.msra.mxu1 %v5161_v5  ;;  %v5214_v4 = vcombine.high %v2491_v62, %v2495_v63  ;;  %v2498_v5 = vld [vmem:[#allocation6 + $0x80] sm:$0xff]  ;;  %v2539_v62 = vld [vmem:[#allocation6 + $0x1c8] sm:$0xff] }
 0x1e1   : > { %3495 = vmatprep.subr.bf16.mxu0 %v5168_v7  ;;  %3536 = vmatprep.subr.bf16.mxu1 %v5170_v9  ;;  %v2502_v7 = vld [vmem:[#allocation6 + $0xa0] sm:$0xff]  ;;  %v2499_v9 = vld [vmem:[#allocation6 + $0x88] sm:$0xff] }
 0x1e2   : > { %v5220_v12 = vcombine.high %v2498_v5, %v2502_v7  ;;  %v5219_v20 = vcombine.low %v2498_v5, %v2502_v7  ;;  %v5221_v21 = vcombine.low %v2499_v9, %v2503_v10  ;;  %v2543_v63 = vld [vmem:[#allocation6 + $0x1e8] sm:$0xff] }
 0x1e4   : > { %3496 = vmatpush1.bf16.msra.mxu0 %v5167_v13  ;;  %3537 = vmatpush1.bf16.msra.mxu1 %v5169_v14  ;;  %v5222_v13 = vcombine.high %v2499_v9, %v2503_v10  ;;  %v2506_v14 = vld [vmem:[#allocation6 + $0xc0] sm:$0xff] }
 0x1e5   : > { %3497 = vmatprep.subr.bf16.mxu0 %v5176_v16  ;;  %3538 = vmatprep.subr.bf16.mxu1 %v5178_v17  ;;  %v2510_v16 = vld [vmem:[#allocation6 + $0xe0] sm:$0xff]  ;;  %v2507_v17 = vld [vmem:[#allocation6 + $0xc8] sm:$0xff] }
 0x1e6   : > { %v5228_v24 = vcombine.high %v2506_v14, %v2510_v16  ;;  %v5227_v29 = vcombine.low %v2506_v14, %v2510_v16  ;;  %v5229_v30 = vcombine.low %v2507_v17, %v2511_v18  ;;  %v2551_v14 = vld [vmem:[#allocation6 + $0x228] sm:$0xff] }
 0x1e8   : > { %3498 = vmatpush1.bf16.msra.mxu0 %v5175_v57  ;;  %3539 = vmatpush1.bf16.msra.mxu1 %v5177_v27  ;;  %v2514_v57 = vld [vmem:[#allocation6 + $0x100] sm:$0xff] }
 0x1e9   : > { %3499 = vmatprep.subr.bf16.mxu0 %v5184_v28  ;;  %3540 = vmatprep.subr.bf16.mxu1 %v5186_v54  ;;  %v2518_v27 = vld [vmem:[#allocation6 + $0x120] sm:$0xff]  ;;  %v2515_v28 = vld [vmem:[#allocation6 + $0x108] sm:$0xff] }
 0x1ea   : > { %v2519_v54 = vld [vmem:[#allocation6 + $0x128] sm:$0xff]  ;;  %v5236_v31 = vcombine.high %v2514_v57, %v2518_v27  ;;  %v5235_v38 = vcombine.low %v2514_v57, %v2518_v27 }
 0x1eb   : > { %v5238_v32 = vcombine.high %v2515_v28, %v2519_v54  ;;  %v5237_v39 = vcombine.low %v2515_v28, %v2519_v54 }
 0x1ec   : > { %3500 = vmatpush1.bf16.msra.mxu0 %v5183_v34  ;;  %3541 = vmatpush1.bf16.msra.mxu1 %v5185_v35  ;;  %v2522_v34 = vld [vmem:[#allocation6 + $0x140] sm:$0xff] }
 0x1ed   : > { %3501 = vmatprep.subr.bf16.mxu0 %v5192_v36  ;;  %3542 = vmatprep.subr.bf16.mxu1 %v5194_v37  ;;  %v2526_v35 = vld [vmem:[#allocation6 + $0x160] sm:$0xff]  ;;  %v2523_v36 = vld [vmem:[#allocation6 + $0x148] sm:$0xff] }
 0x1ee   : > { %v2527_v37 = vld [vmem:[#allocation6 + $0x168] sm:$0xff]  ;;  %v5244_v40 = vcombine.high %v2522_v34, %v2526_v35  ;;  %v5243_v48 = vcombine.low %v2522_v34, %v2526_v35 }
 0x1ef   : > { %v5246_v41 = vcombine.high %v2523_v36, %v2527_v37  ;;  %v5245_v50 = vcombine.low %v2523_v36, %v2527_v37 }
 0x1f0   : > { %3502 = vmatpush1.bf16.msra.mxu0 %v5191_v43  ;;  %3543 = vmatpush1.bf16.msra.mxu1 %v5193_v45  ;;  %v2530_v43 = vld [vmem:[#allocation6 + $0x180] sm:$0xff] }
 0x1f1   : > { %3503 = vmatprep.subr.bf16.mxu0 %v5200_v46  ;;  %3544 = vmatprep.subr.bf16.mxu1 %v5202_v47  ;;  %v2534_v45 = vld [vmem:[#allocation6 + $0x1a0] sm:$0xff]  ;;  %v2531_v46 = vld [vmem:[#allocation6 + $0x188] sm:$0xff] }
 0x1f2   : > { %v2535_v47 = vld [vmem:[#allocation6 + $0x1a8] sm:$0xff]  ;;  %v5252_v52 = vcombine.high %v2530_v43, %v2534_v45  ;;  %v5251_v5 = vcombine.low %v2530_v43, %v2534_v45 }
 0x1f3   : > { %v5253_v10 = vcombine.low %v2531_v46, %v2535_v47 }
 0x1f4   : > { %3504 = vmatpush1.bf16.msra.mxu0 %v5199_v55  ;;  %3545 = vmatpush1.bf16.msra.mxu1 %v5201_v58  ;;  %v5254_v55 = vcombine.high %v2531_v46, %v2535_v47  ;;  %v2538_v58 = vld [vmem:[#allocation6 + $0x1c0] sm:$0xff] }
 0x1f5   : > { %4195 = vmatprep.subr.bf16.mxu0 %v5204_v59  ;;  %4236 = vmatprep.subr.bf16.mxu1 %v5206_v60  ;;  %v2542_v59 = vld [vmem:[#allocation6 + $0x1e0] sm:$0xff] }
 0x1f6   : > { %v5259_v16 = vcombine.low %v2538_v58, %v2542_v59 }
 0x1f7   : > { %3506 = vmatmul.mubr.bf16.vlgmr.msra.gmra.mrb[20].mxu0 %v6419_v25  ;;  %3547 = vmatmul.mubr.bf16.vlgmr.msra.gmra.mrb[20].mxu1 %v6419_v25  ;;  %v5230_v25 = vcombine.high %v2507_v17, %v2511_v18  ;;  %v5261_v17 = vcombine.low %v2539_v62, %v2543_v63 }
 0x1f8   : > { %4196 = vmatpush1.bf16.msra.mxu0 %v5203_v0  ;;  %4237 = vmatpush1.bf16.msra.mxu1 %v5205_v2 }
 0x1f9   : > { %4197 = vmatprep.subr.bf16.mxu0 %v5212_v3  ;;  %4238 = vmatprep.subr.bf16.mxu1 %v5214_v4 }
 0x1fc   : > { %4198 = vmatpush1.bf16.msra.mxu0 %v5211_v11  ;;  %4239 = vmatpush1.bf16.msra.mxu1 %v5213_v44  ;;  %v5260_v11 = vcombine.high %v2538_v58, %v2542_v59 }
 0x1fd   : > { %4199 = vmatprep.subr.bf16.mxu0 %v5220_v12  ;;  %4240 = vmatprep.subr.bf16.mxu1 %v5222_v13  ;;  %v2546_v12 = vld [vmem:[#allocation6 + $0x200] sm:$0xff] }
 0x1fe   : > { %v2550_v13 = vld [vmem:[#allocation6 + $0x220] sm:$0xff] }
 0x1ff   : > { %v5267_v57 = vcombine.low %v2546_v12, %v2550_v13 }
 0x200   : > { %4200 = vmatpush1.bf16.msra.mxu0 %v5219_v20  ;;  %4241 = vmatpush1.bf16.msra.mxu1 %v5221_v21  ;;  %v2554_v20 = vld [vmem:[#allocation6 + $0x240] sm:$0xff] }
 0x201   : > { %4201 = vmatprep.subr.bf16.mxu0 %v5228_v24  ;;  %4242 = vmatprep.subr.bf16.mxu1 %v5230_v25  ;;  %v2558_v21 = vld [vmem:[#allocation6 + $0x260] sm:$0xff]  ;;  %v2555_v24 = vld [vmem:[#allocation6 + $0x248] sm:$0xff] }
 0x202   : > { %v2559_v25 = vld [vmem:[#allocation6 + $0x268] sm:$0xff]  ;;  %v5276_v28 = vcombine.high %v2554_v20, %v2558_v21  ;;  %v5275_v34 = vcombine.low %v2554_v20, %v2558_v21  ;;  %v2325_v20 = vld [vmem:[%s6696_s4] sm:$0xff]  ;;  %v2337_v21 = vsub.s32 2, %v5972_v42 }
 0x203   : > { %v5278_v54 = vcombine.high %v2555_v24, %v2559_v25  ;;  %v5277_v35 = vcombine.low %v2555_v24, %v2559_v25 }
 0x204   : > { %4202 = vmatpush1.bf16.msra.mxu0 %v5227_v29  ;;  %4243 = vmatpush1.bf16.msra.mxu1 %v5229_v30  ;;  %v2562_v29 = vld [vmem:[#allocation6 + $0x280] sm:$0xff] }
 0x205   : > { %4203 = vmatprep.subr.bf16.mxu0 %v5236_v31  ;;  %4244 = vmatprep.subr.bf16.mxu1 %v5238_v32  ;;  %v2566_v30 = vld [vmem:[#allocation6 + $0x2a0] sm:$0xff]  ;;  %v2563_v31 = vld [vmem:[#allocation6 + $0x288] sm:$0xff] }
 0x206   : > { %v2567_v32 = vld [vmem:[#allocation6 + $0x2a8] sm:$0xff]  ;;  %v5284_v36 = vcombine.high %v2562_v29, %v2566_v30  ;;  %v5283_v43 = vcombine.low %v2562_v29, %v2566_v30  ;;  %v6454_v29 = vld [vmem:[#allocation6 + $0x30] sm:$0xff]  ;;  %v2330_v30 = vrot.slane %v2325_v20, %v5986_v6 }
 0x207   : > { %v5286_v37 = vcombine.high %v2563_v31, %v2567_v32  ;;  %v5285_v45 = vcombine.low %v2563_v31, %v2567_v32  ;;  %v6457_v31 = vld [vmem:[#allocation6 + $0x18] sm:$0xff] }
 0x208   : > { %4204 = vmatpush1.bf16.msra.mxu0 %v5235_v38  ;;  %4245 = vmatpush1.bf16.msra.mxu1 %v5237_v39  ;;  %v2570_v38 = vld [vmem:[#allocation6 + $0x2c0] sm:$0xff]  ;;  %v6459_v32 = vld [vmem:[#allocation6 + $0x38] sm:$0xff] }
 0x209   : > { %4205 = vmatprep.subr.bf16.mxu0 %v5244_v40  ;;  %4246 = vmatprep.subr.bf16.mxu1 %v5246_v41  ;;  %v2574_v39 = vld [vmem:[#allocation6 + $0x2e0] sm:$0xff]  ;;  %v2571_v40 = vld [vmem:[#allocation6 + $0x2c8] sm:$0xff] }
 0x20a   : > { %v2195_v1 = vpop.f32.mrb[8].mxu0  ;;  %v2236_v61 = vpop.f32.mrb[8].mxu1  ;;  %v2575_v41 = vld [vmem:[#allocation6 + $0x2e8] sm:$0xff]  ;;  %v5292_v46 = vcombine.high %v2570_v38, %v2574_v39 }
 0x20b   : > { %v6436_v60 = vadd.f32 %v2195_v1, %v6409_v26  ;;  %v2197_v8 = vpop.f32.mrb[9].mxu0  ;;  %v6439_v0 = vadd.f32 %v2236_v61, %v6411_v53  ;;  %v2238_v3 = vpop.f32.mrb[9].mxu1  ;;  %v5262_v53 = vcombine.high %v2539_v62, %v2543_v63  ;;  %v5294_v47 = vcombine.high %v2571_v40, %v2575_v41  ;;  %v2583_v1 = vld [vmem:[#allocation6 + $0x328] sm:$0xff]  ;;  %v2590_v62 = vld [vmem:[#allocation6 + $0x360] sm:$0xff] }
 0x20c   : > { %v6442_v2 = vadd.f32 %v2197_v8, %v6413_v22  ;;  %v2199_v4 = vpop.f32.mrb[10].mxu0  ;;  %4206 = vmatpush1.bf16.msra.mxu0 %v5243_v48  ;;  %v6445_v7 = vadd.f32 %v2238_v3, %v6415_v56  ;;  %v2240_v9 = vpop.f32.mrb[10].mxu1  ;;  %4247 = vmatpush1.bf16.msra.mxu1 %v5245_v50  ;;  %v2547_v22 = vld [vmem:[#allocation6 + $0x208] sm:$0xff]  ;;  %v5268_v56 = vcombine.high %v2546_v12, %v2550_v13  ;;  %v2578_v48 = vld [vmem:[#allocation6 + $0x300] sm:$0xff] }
 0x20d   : > { %v2200_v26 = vpop.f32.mrb[11].mxu0  ;;  %4207 = vmatprep.subr.bf16.mxu0 %v5252_v52  ;;  %v2241_v44 = vpop.f32.mrb[11].mxu1  ;;  %4248 = vmatprep.subr.bf16.mxu1 %v5254_v55  ;;  %v5270_v18 = vcombine.high %v2547_v22, %v2551_v14  ;;  %v5269_v27 = vcombine.low %v2547_v22, %v2551_v14  ;;  %v2582_v50 = vld [vmem:[#allocation6 + $0x320] sm:$0xff]  ;;  %v2579_v52 = vld [vmem:[#allocation6 + $0x308] sm:$0xff]  ;;  %v5291_v55 = vcombine.low %v2570_v38, %v2574_v39 }
 0x20e   : > { %v5293_v58 = vcombine.low %v2571_v40, %v2575_v41  ;;  %v5300_v59 = vcombine.high %v2578_v48, %v2582_v50  ;;  %v5302_v61 = vcombine.high %v2579_v52, %v2583_v1  ;;  %v2586_v8 = vld [vmem:[#allocation6 + $0x340] sm:$0xff]  ;;  %v2587_v63 = vld [vmem:[#allocation6 + $0x348] sm:$0xff]  ;;  %v5299_v4 = vcombine.low %v2578_v48, %v2582_v50 }
 0x20f   : > { %v2591_v3 = vld [vmem:[#allocation6 + $0x368] sm:$0xff]  ;;  %v5308_v9 = vcombine.high %v2586_v8, %v2590_v62  ;;  %v5307_v12 = vcombine.low %v2586_v8, %v2590_v62  ;;  %v5210_v40 = vcombine.high %v6457_v31, %v6459_v32  ;;  %v2367_v41 = vadd.f32 %v2330_v30, %v6436_v60 }
 0x210   : > { %4208 = vmatpush1.bf16.msra.mxu0 %v5251_v5  ;;  %4249 = vmatpush1.bf16.msra.mxu1 %v5253_v10  ;;  %v5301_v5 = vcombine.low %v2579_v52, %v2583_v1  ;;  %v5310_v26 = vcombine.high %v2587_v63, %v2591_v3  ;;  %v2594_v10 = vld [vmem:[#allocation6 + $0x380] sm:$0xff]  ;;  %v2595_v44 = vld [vmem:[#allocation6 + $0x388] sm:$0xff]  ;;  %v5309_v13 = vcombine.low %v2587_v63, %v2591_v3  ;;  %v2345_v60 = vsub.s32 4, %v5972_v42 }
 0x211   : > { %4209 = vmatprep.subr.bf16.mxu0 %v5260_v11  ;;  %4250 = vmatprep.subr.bf16.mxu1 %v5262_v53  ;;  %v2598_v11 = vld [vmem:[#allocation6 + $0x3a0] sm:$0xff]  ;;  %v2599_v53 = vld [vmem:[#allocation6 + $0x3a8] sm:$0xff] }
 0x212   : > { %v5316_v22 = vcombine.high %v2594_v10, %v2598_v11  ;;  %v5318_v14 = vcombine.high %v2595_v44, %v2599_v53  ;;  %v5315_v24 = vcombine.low %v2594_v10, %v2598_v11  ;;  %v5317_v25 = vcombine.low %v2595_v44, %v2599_v53 }
 0x213   : > { %v2346_v62 = vrot.slane %v2325_v20, %v2345_v60 }
 0x214   : > { %4210 = vmatpush1.bf16.msra.mxu0 %v5259_v16  ;;  %4251 = vmatpush1.bf16.msra.mxu1 %v5261_v17  ;;  %v2602_v16 = vld [vmem:[#allocation6 + $0x3c0] sm:$0xff] }
 0x215   : > { %4211 = vmatprep.subr.bf16.mxu0 %v5268_v56  ;;  %4252 = vmatprep.subr.bf16.mxu1 %v5270_v18  ;;  %v2606_v17 = vld [vmem:[#allocation6 + $0x3e0] sm:$0xff]  ;;  %v2603_v56 = vld [vmem:[#allocation6 + $0x3c8] sm:$0xff] }
 0x216   : > { %v2607_v18 = vld [vmem:[#allocation6 + $0x3e8] sm:$0xff] }
 0x218   : > { %4212 = vmatpush1.bf16.msra.mxu0 %v5267_v57  ;;  %4253 = vmatpush1.bf16.msra.mxu1 %v5269_v27  ;;  %v5324_v57 = vcombine.high %v2602_v16, %v2606_v17  ;;  %v2341_v27 = vsub.s32 3, %v5972_v42 }
 0x219   : > { %4213 = vmatprep.subr.bf16.mxu0 %v5276_v28  ;;  %4254 = vmatprep.subr.bf16.mxu1 %v5278_v54  ;;  %v5326_v28 = vcombine.high %v2603_v56, %v2607_v18  ;;  %v6452_v54 = vld [vmem:[#allocation6 + $0x10] sm:$0xff] }
 0x21a   : > { %v5208_v38 = vcombine.high %v6452_v54, %v6454_v29  ;;  %v2342_v39 = vrot.slane %v2325_v20, %v2341_v27  ;;  %v5207_v33 = vcombine.low %v6452_v54, %v6454_v29 }
 0x21c   : > { %4214 = vmatpush1.bf16.msra.mxu0 %v5275_v34  ;;  %4255 = vmatpush1.bf16.msra.mxu1 %v5277_v35  ;;  %v2338_v34 = vrot.slane %v2325_v20, %v2337_v21  ;;  %v5323_v35 = vcombine.low %v2602_v16, %v2606_v17 }
 0x21d   : > { %4215 = vmatprep.subr.bf16.mxu0 %v5284_v36  ;;  %4256 = vmatprep.subr.bf16.mxu1 %v5286_v37  ;;  %v2334_v36 = vrot.slane %v2325_v20, %v5975_v51  ;;  %v5325_v37 = vcombine.low %v2603_v56, %v2607_v18 }
 0x220   : > { %4216 = vmatpush1.bf16.msra.mxu0 %v5283_v43  ;;  %4257 = vmatpush1.bf16.msra.mxu1 %v5285_v45  ;;  %v2369_v43 = vadd.f32 %v2338_v34, %v6439_v0  ;;  %v2368_v45 = vadd.f32 %v2334_v36, %v6442_v2  ;;  %v2349_v2 = vsub.s32 5, %v5972_v42  ;;  %v5731_v34 = vmov 1966171168  }
 0x221   : > { %4217 = vmatprep.subr.bf16.mxu0 %v5292_v46  ;;  %4258 = vmatprep.subr.bf16.mxu1 %v5294_v47  ;;  %v2370_v46 = vadd.f32 %v2342_v39, %v6445_v7  ;;  %v5069_v47 = vmul.f32 -1.442695, %v2367_v41  ;;  %v2357_v7 = vsub.s32 7, %v5972_v42 }
 0x222   : > { %v5071_v48 = vmul.f32 -1.442695, %v2369_v43  ;;  %v5070_v50 = vmul.f32 -1.442695, %v2368_v45 }
 0x223   : > { %v5072_v52 = vmul.f32 -1.442695, %v2370_v46  ;;  %5476 = vpow2.f32 %v5069_v47  ;;  %v2358_v44 = vrot.slane %v2325_v20, %v2357_v7 }
 0x224   : > { %4218 = vmatpush1.bf16.msra.mxu0 %v5291_v55  ;;  %4259 = vmatpush1.bf16.msra.mxu1 %v5293_v58  ;;  %5478 = vpow2.f32 %v5071_v48  ;;  %v2353_v55 = vsub.s32 6, %v5972_v42 }
 0x225   : > { %4219 = vmatprep.subr.bf16.mxu0 %v5300_v59  ;;  %4260 = vmatprep.subr.bf16.mxu1 %v5302_v61  ;;  %5480 = vpow2.f32 %v5070_v50 }
 0x226   : > { %5482 = vpow2.f32 %v5072_v52 }
 0x228   : > { %4220 = vmatpush1.bf16.msra.mxu0 %v5299_v4  ;;  %4261 = vmatpush1.bf16.msra.mxu1 %v5301_v5  ;;  %v2354_v4 = vrot.slane %v2325_v20, %v2353_v55  ;;  %v2350_v5 = vrot.slane %v2325_v20, %v2349_v2 }
 0x229   : > { %4221 = vmatprep.subr.bf16.mxu0 %v5308_v9  ;;  %4262 = vmatprep.subr.bf16.mxu1 %v5310_v26 }
 0x22c   : > { %4222 = vmatpush1.bf16.msra.mxu0 %v5307_v12  ;;  %4263 = vmatpush1.bf16.msra.mxu1 %v5309_v13 }
 0x22d   : > { %4223 = vmatprep.subr.bf16.mxu0 %v5316_v22  ;;  %4264 = vmatprep.subr.bf16.mxu1 %v5318_v14  ;;  %v5477_v1 = vpop.eup %5476 }
 0x22e   : > { %v5479_v0 = vpop.eup %5478  ;;  %v2393_v61 = vadd.f32 1.0, %v5477_v1 }
 0x22f   : > { %v5481_v58 = vpop.eup %5480  ;;  %v2395_v8 = vadd.f32 1.0, %v5479_v0 }
 0x230   : > { %4224 = vmatpush1.bf16.msra.mxu0 %v5315_v24  ;;  %4265 = vmatpush1.bf16.msra.mxu1 %v5317_v25  ;;  %v5483_v59 = vpop.eup %5482  ;;  %v2394_v63 = vadd.f32 1.0, %v5481_v58  ;;  %5484 = vrcp.f32 %v2393_v61 }
 0x231   : > { %4225 = vmatprep.subr.bf16.mxu0 %v5324_v57  ;;  %4266 = vmatprep.subr.bf16.mxu1 %v5326_v28  ;;  %v2396_v9 = vadd.f32 1.0, %v5483_v59  ;;  %5486 = vrcp.f32 %v2395_v8 }
 0x232   : > { %5488 = vrcp.f32 %v2394_v63 }
 0x233   : > { %5490 = vrcp.f32 %v2396_v9 }
 0x234   : > { %4226 = vmatpush1.bf16.msra.mxu0 %v5323_v35  ;;  %4267 = vmatpush1.bf16.msra.mxu1 %v5325_v37  ;;  %v2438_v35 = vunpack.c.l.s4 %v5731_v34 }
 0x235   : > { %4277 = vmatprep.subr.bf16.mxu0 %v5208_v38  ;;  %4318 = vmatprep.subr.bf16.mxu1 %v5210_v40 }
 0x236   : > { %v2439_v46 = vunpack.c.0.s8 %v2438_v35 }
 0x238   : > { %v6493_v58 = vsub.s32 %v2439_v46, %v5972_v42  ;;  %v2524_v46 = vld [vmem:[#allocation6 + $0x150] sm:$0xff] }
 0x24a   : > { %v2277_v3 = vpop.f32.mrb[12].mxu0  ;;  %v2318_v10 = vpop.f32.mrb[12].mxu1 }
 0x24b   : > { %v2278_v26 = vadd.f32 %v2277_v3, %v6425_v15  ;;  %v2279_v11 = vpop.f32.mrb[13].mxu0  ;;  %v2319_v53 = vadd.f32 %v2318_v10, %v6427_v49  ;;  %v2320_v13 = vpop.f32.mrb[13].mxu1  ;;  %v447_v49 = vld [vmem:[#allocation2 + $0x2] ss:$4 sm:$0x3]  ;;  %v2492_v10 = vld [vmem:[#allocation6 + $0x50] sm:$0xff] }
 0x24c   : > { %v2280_v12 = vadd.f32 %v2279_v11, %v6429_v19  ;;  %v2281_v22 = vpop.f32.mrb[14].mxu0  ;;  %v2321_v16 = vadd.f32 %v2320_v13, %v6431_v23  ;;  %v2322_v17 = vpop.f32.mrb[14].mxu1  ;;  %v2417_v30 = vrot.slane %v447_v49, %v5986_v6  ;;  %v2421_v38 = vrot.slane %v447_v49, %v5975_v51  ;;  %v2496_v11 = vld [vmem:[#allocation6 + $0x70] sm:$0xff] }
 0x24d   : > { %v2371_v14 = vadd.f32 %v2346_v62, %v2278_v26  ;;  %v2282_v56 = vpop.f32.mrb[15].mxu0  ;;  %v2373_v15 = vadd.f32 %v2354_v4, %v2319_v53  ;;  %v2323_v24 = vpop.f32.mrb[15].mxu1  ;;  %v2497_v53 = vld [vmem:[#allocation6 + $0x78] sm:$0xff]  ;;  %v5209_v13 = vcombine.low %v6457_v31, %v6459_v32  ;;  %v5215_v29 = vcombine.low %v2492_v10, %v2496_v11  ;;  %v2512_v49 = vld [vmem:[#allocation6 + $0xf0] sm:$0xff] }
 0x24e   : > { %v2372_v18 = vadd.f32 %v2350_v5, %v2280_v12  ;;  %v2374_v20 = vadd.f32 %v2358_v44, %v2321_v16  ;;  %v5485_v19 = vpop.eup %5484  ;;  %v2493_v44 = vld [vmem:[#allocation6 + $0x58] sm:$0xff]  ;;  %v2500_v16 = vld [vmem:[#allocation6 + $0x90] sm:$0xff]  ;;  %v5216_v56 = vcombine.high %v2492_v10, %v2496_v11 }
 0x24f   : > { %v5073_v25 = vmul.f32 -1.442695, %v2371_v14  ;;  %5492 = vtanh.f32 %v2373_v15  ;;  %v5487_v28 = vpop.eup %5486  ;;  %v5218_v15 = vcombine.high %v2493_v44, %v2497_v53  ;;  %v2501_v24 = vld [vmem:[#allocation6 + $0x98] sm:$0xff]  ;;  %v5217_v31 = vcombine.low %v2493_v44, %v2497_v53  ;;  %v2540_v10 = vld [vmem:[#allocation6 + $0x1d0] sm:$0xff] }
 0x250   : > { %v5074_v57 = vmul.f32 -1.442695, %v2372_v18  ;;  %v5489_v23 = vpop.eup %5488  ;;  %v2424_v40 = vmul.f32 %v5487_v28, %v2417_v30  ;;  %v2504_v18 = vld [vmem:[#allocation6 + $0xb0] sm:$0xff]  ;;  %v2513_v28 = vld [vmem:[#allocation6 + $0xf8] sm:$0xff] }
 0x251   : > { %5494 = vpow2.f32 %v5073_v25  ;;  %v5491_v36 = vpop.eup %5490  ;;  %v2505_v25 = vld [vmem:[#allocation6 + $0xb8] sm:$0xff]  ;;  %v5224_v32 = vcombine.high %v2500_v16, %v2504_v18  ;;  %v5223_v30 = vcombine.low %v2500_v16, %v2504_v18  ;;  %v2544_v11 = vld [vmem:[#allocation6 + $0x1f0] sm:$0xff] }
 0x252   : > { %5496 = vpow2.f32 %v5074_v57  ;;  %v2425_v52 = vmul.f32 %v5491_v36, %v2421_v38  ;;  %v2508_v57 = vld [vmem:[#allocation6 + $0xd0] sm:$0xff]  ;;  %v2517_v38 = vld [vmem:[#allocation6 + $0x118] sm:$0xff] }
 0x253   : > { %5498 = vtanh.f32 %v2374_v20  ;;  %v5226_v20 = vcombine.high %v2501_v24, %v2505_v25  ;;  %v5232_v34 = vcombine.high %v2508_v57, %v2512_v49  ;;  %v2516_v36 = vld [vmem:[#allocation6 + $0x110] sm:$0xff]  ;;  %v2541_v44 = vld [vmem:[#allocation6 + $0x1d8] sm:$0xff] }
 0x254   : > { %v2545_v53 = vld [vmem:[#allocation6 + $0x1f8] sm:$0xff]  ;;  %v2548_v16 = vld [vmem:[#allocation6 + $0x210] sm:$0xff] }
 0x259   : > { %v5493_v37 = vpop.eup %5492 }
 0x25a   : > { %v2426_v41 = vmul.f32 %v5493_v37, %v5485_v19  ;;  %v2509_v19 = vld [vmem:[#allocation6 + $0xd8] sm:$0xff]  ;;  %v2520_v37 = vld [vmem:[#allocation6 + $0x130] sm:$0xff] }
 0x25b   : > { %v5495_v39 = vpop.eup %5494  ;;  %v5234_v35 = vcombine.high %v2509_v19, %v2513_v28 }
 0x25c   : > { %v5497_v43 = vpop.eup %5496  ;;  %v2397_v45 = vadd.f32 1.0, %v5495_v39  ;;  %v2428_v48 = vadd.f32 %v2426_v41, %v2424_v40  ;;  %v2521_v39 = vld [vmem:[#allocation6 + $0x138] sm:$0xff]  ;;  %v5231_v40 = vcombine.low %v2508_v57, %v2512_v49  ;;  %v5233_v41 = vcombine.low %v2509_v19, %v2513_v28  ;;  %v2560_v19 = vld [vmem:[#allocation6 + $0x270] sm:$0xff] }
 0x25d   : > { %v5499_v47 = vpop.eup %5498  ;;  %v2398_v50 = vadd.f32 1.0, %v5497_v43  ;;  %v5240_v43 = vcombine.high %v2516_v36, %v2520_v37  ;;  %v2557_v28 = vld [vmem:[#allocation6 + $0x258] sm:$0xff] }
 0x25e   : > { %5500 = vrcp.f32 %v2397_v45  ;;  %v2427_v1 = vmul.f32 %v5499_v47, %v5489_v23  ;;  %v5225_v23 = vcombine.low %v2501_v24, %v2505_v25  ;;  %v5242_v45 = vcombine.high %v2517_v38, %v2521_v39  ;;  %v2528_v47 = vld [vmem:[#allocation6 + $0x170] sm:$0xff] }
 0x25f   : > { %5502 = vtanh.f32 %v2428_v48  ;;  %v5263_v24 = vcombine.low %v2540_v10, %v2544_v11  ;;  %v5265_v25 = vcombine.low %v2541_v44, %v2545_v53 }
 0x260   : > { %5504 = vrcp.f32 %v2398_v50  ;;  %v2429_v0 = vadd.f32 %v2427_v1, %v2425_v52  ;;  %v2529_v50 = vld [vmem:[#allocation6 + $0x178] sm:$0xff]  ;;  %v5239_v52 = vcombine.low %v2516_v36, %v2520_v37  ;;  %v5241_v1 = vcombine.low %v2517_v38, %v2521_v39 }
 0x262   : > { %5506 = vtanh.f32 %v2429_v0  ;;  %v2459_v59 = vcombine.low %v2428_v48, %v2429_v0  ;;  %v2525_v48 = vld [vmem:[#allocation6 + $0x158] sm:$0xff]  ;;  %v5248_v0 = vcombine.high %v2524_v46, %v2528_v47 }
 0x264   : > { %v2466_v61 = vrot.slane %v2459_v59, %v6493_v58  ;;  %v5250_v59 = vcombine.high %v2525_v48, %v2529_v50 }
 0x266   : > { %v2473_v62 = vrot.slane %v2466_v61, %v6493_v58  ;;  %v2532_v61 = vld [vmem:[#allocation6 + $0x190] sm:$0xff] }
 0x268   : > { %v5501_v63 = vpop.eup %5500  ;;  %2475 = vst.msk [vmem:[#allocation2 + $0x2] ss:$4 sm:$0x3] %vm6497_vm0, %v2473_v62  ;;  %v2536_v62 = vld [vmem:[#allocation6 + $0x1b0] sm:$0xff] }
 0x269   : > { %v5503_v3 = vpop.eup %5502 }
 0x26a   : > { %v5505_v4 = vpop.eup %5504  ;;  %v2432_v5 = vmul.f32 %v5503_v3, %v5501_v63  ;;  %v2533_v63 = vld [vmem:[#allocation6 + $0x198] sm:$0xff] }
 0x26b   : > { %v2537_v3 = vld [vmem:[#allocation6 + $0x1b8] sm:$0xff] }
 0x26c   : > { %v5507_v9 = vpop.eup %5506  ;;  %v6508_v14 = vpack.c.bf16 %v2432_v5, %v2432_v5 }
 0x26d   : > { %v2433_v26 = vmul.f32 %v5507_v9, %v5505_v4  ;;  %v5247_v4 = vcombine.low %v2524_v46, %v2528_v47  ;;  %v5256_v9 = vcombine.high %v2532_v61, %v2536_v62 }
 0x26f   : > { %v2477_v12 = vpack.c.bf16 %v2433_v26, %v2433_v26  ;;  %v2436_v22 = vcombine.low %v2432_v5, %v2433_v26  ;;  %v5249_v5 = vcombine.low %v2525_v48, %v2529_v50  ;;  %v5258_v26 = vcombine.high %v2533_v63, %v2537_v3 }
 0x271   : > { %4227 = vmatprep.mubr.bf16.mxu0 %v2477_v12  ;;  %4268 = vmatprep.mubr.bf16.mxu1 %v2477_v12  ;;  %v2443_v17 = vrot.slane %v2436_v22, %v6493_v58  ;;  %v5266_v22 = vcombine.high %v2541_v44, %v2545_v53 }
 0x272   : > { %4228 = vmatmul.mubr.bf16.vlgmr.msra.gmra.mrb[24].mxu0 %v6508_v14  ;;  %4269 = vmatmul.mubr.bf16.vlgmr.msra.gmra.mrb[24].mxu1 %v6508_v14 }
 0x273   : > { %v2450_v54 = vrot.slane %v2443_v17, %v6493_v58  ;;  %4278 = vmatpush1.bf16.msra.mxu0 %v5207_v33  ;;  %4319 = vmatpush1.bf16.msra.mxu1 %v5209_v13  ;;  %v5257_v33 = vcombine.low %v2533_v63, %v2537_v3  ;;  %v5264_v13 = vcombine.high %v2540_v10, %v2544_v11  ;;  %v2552_v17 = vld [vmem:[#allocation6 + $0x230] sm:$0xff] }
 0x274   : > { %4309 = vmatprep.mubr.bf16.mxu0 %v2477_v12  ;;  %4350 = vmatprep.mubr.bf16.mxu1 %v2477_v12  ;;  %v5255_v12 = vcombine.low %v2532_v61, %v2536_v62  ;;  %v5271_v36 = vcombine.low %v2548_v16, %v2552_v17 }
 0x275   : > { %2456 = vst.msk [vmem:[#allocation2] ss:$4 sm:$0x3] %vm6497_vm0, %v2450_v54  ;;  %4279 = vmatprep.subr.bf16.mxu0 %v5216_v56  ;;  %4320 = vmatprep.subr.bf16.mxu1 %v5218_v15  ;;  %v2549_v56 = vld [vmem:[#allocation6 + $0x218] sm:$0xff] }
 0x276   : > { %v2553_v15 = vld [vmem:[#allocation6 + $0x238] sm:$0xff] }
 0x277   : > { %4280 = vmatpush1.bf16.msra.mxu0 %v5215_v29  ;;  %4321 = vmatpush1.bf16.msra.mxu1 %v5217_v31  ;;  %v5272_v31 = vcombine.high %v2548_v16, %v2552_v17  ;;  %v5273_v37 = vcombine.low %v2549_v56, %v2553_v15 }
 0x278   : > { %4281 = vmatprep.subr.bf16.mxu0 %v5224_v32  ;;  %4322 = vmatprep.subr.bf16.mxu1 %v5226_v20  ;;  %v5274_v32 = vcombine.high %v2549_v56, %v2553_v15  ;;  %v2556_v20 = vld [vmem:[#allocation6 + $0x250] sm:$0xff] }
 0x279   : > { %v5280_v38 = vcombine.high %v2556_v20, %v2560_v19  ;;  %v5279_v46 = vcombine.low %v2556_v20, %v2560_v19 }
 0x27b   : > { %4282 = vmatpush1.bf16.msra.mxu0 %v5223_v30  ;;  %4323 = vmatpush1.bf16.msra.mxu1 %v5225_v23  ;;  %v2561_v30 = vld [vmem:[#allocation6 + $0x278] sm:$0xff] }
 0x27c   : > { %4283 = vmatprep.subr.bf16.mxu0 %v5232_v34  ;;  %4324 = vmatprep.subr.bf16.mxu1 %v5234_v35  ;;  %v5282_v39 = vcombine.high %v2557_v28, %v2561_v30  ;;  %v5281_v47 = vcombine.low %v2557_v28, %v2561_v30  ;;  %v2604_v30 = vld [vmem:[#allocation6 + $0x3d0] sm:$0xff] }
 0x27f   : > { %4284 = vmatpush1.bf16.msra.mxu0 %v5231_v40  ;;  %4325 = vmatpush1.bf16.msra.mxu1 %v5233_v41  ;;  %v2564_v40 = vld [vmem:[#allocation6 + $0x290] sm:$0xff] }
 0x280   : > { %4285 = vmatprep.subr.bf16.mxu0 %v5240_v43  ;;  %4326 = vmatprep.subr.bf16.mxu1 %v5242_v45  ;;  %v2568_v41 = vld [vmem:[#allocation6 + $0x2b0] sm:$0xff]  ;;  %v2565_v43 = vld [vmem:[#allocation6 + $0x298] sm:$0xff] }
 0x281   : > { %v2569_v45 = vld [vmem:[#allocation6 + $0x2b8] sm:$0xff]  ;;  %v5288_v48 = vcombine.high %v2564_v40, %v2568_v41  ;;  %v5287_v61 = vcombine.low %v2564_v40, %v2568_v41 }
 0x282   : > { %v5290_v50 = vcombine.high %v2565_v43, %v2569_v45  ;;  %v5289_v62 = vcombine.low %v2565_v43, %v2569_v45 }
 0x283   : > { %4286 = vmatpush1.bf16.msra.mxu0 %v5239_v52  ;;  %4327 = vmatpush1.bf16.msra.mxu1 %v5241_v1  ;;  %v2572_v52 = vld [vmem:[#allocation6 + $0x2d0] sm:$0xff] }
 0x284   : > { %4287 = vmatprep.subr.bf16.mxu0 %v5248_v0  ;;  %4328 = vmatprep.subr.bf16.mxu1 %v5250_v59  ;;  %v2576_v1 = vld [vmem:[#allocation6 + $0x2f0] sm:$0xff]  ;;  %v2573_v0 = vld [vmem:[#allocation6 + $0x2d8] sm:$0xff] }
 0x285   : > { %v2577_v59 = vld [vmem:[#allocation6 + $0x2f8] sm:$0xff]  ;;  %v5296_v63 = vcombine.high %v2572_v52, %v2576_v1  ;;  %v5295_v10 = vcombine.low %v2572_v52, %v2576_v1 }
 0x286   : > { %v5298_v3 = vcombine.high %v2573_v0, %v2577_v59  ;;  %v5297_v11 = vcombine.low %v2573_v0, %v2577_v59  ;;  %v5460_v0 = vld [vmem:[%s6700_s8 + $0x40] sm:$0xff]   ;;  %v5462_v59 = vld [vmem:[%s6700_s8 + $0x48] sm:$0xff]  }
 0x287   : > { %4288 = vmatpush1.bf16.msra.mxu0 %v5247_v4  ;;  %4329 = vmatpush1.bf16.msra.mxu1 %v5249_v5  ;;  %v2580_v4 = vld [vmem:[#allocation6 + $0x310] sm:$0xff] }
 0x288   : > { %4289 = vmatprep.subr.bf16.mxu0 %v5256_v9  ;;  %4330 = vmatprep.subr.bf16.mxu1 %v5258_v26  ;;  %v2584_v5 = vld [vmem:[#allocation6 + $0x330] sm:$0xff]  ;;  %v2581_v9 = vld [vmem:[#allocation6 + $0x318] sm:$0xff] }
 0x289   : > { %v2585_v26 = vld [vmem:[#allocation6 + $0x338] sm:$0xff]  ;;  %v5304_v44 = vcombine.high %v2580_v4, %v2584_v5  ;;  %v5303_v16 = vcombine.low %v2580_v4, %v2584_v5  ;;  %v5467_v4 = vld [vmem:[%s6700_s8 + $0x18] sm:$0xff]  }
 0x28a   : > { %v6516_v18 = vpop.f32.mrb[16].mxu0  ;;  %v6518_v54 = vpop.f32.mrb[16].mxu1  ;;  %v5306_v53 = vcombine.high %v2581_v9, %v2585_v26  ;;  %v5305_v17 = vcombine.low %v2581_v9, %v2585_v26  ;;  %v5468_v5 = vld [vmem:[%s6700_s8 + $0x60] sm:$0xff]   ;;  %v5470_v26 = vld [vmem:[%s6700_s8 + $0x68] sm:$0xff]  }
 0x28b   : > { %4290 = vmatpush1.bf16.msra.mxu0 %v5255_v12  ;;  %4331 = vmatpush1.bf16.msra.mxu1 %v5257_v33  ;;  %v6520_v29 = vpop.f32.mrb[17].mxu0  ;;  %v6522_v57 = vpop.f32.mrb[17].mxu1  ;;  %v2588_v12 = vld [vmem:[#allocation6 + $0x350] sm:$0xff]  ;;  %v5469_v9 = vld [vmem:[%s6700_s8 + $0x20] sm:$0xff]  }
 0x28c   : > { %4291 = vmatprep.subr.bf16.mxu0 %v5264_v13  ;;  %4332 = vmatprep.subr.bf16.mxu1 %v5266_v22  ;;  %v3429_v49 = vpop.f32.mrb[18].mxu0  ;;  %v3470_v23 = vpop.f32.mrb[18].mxu1  ;;  %v2592_v33 = vld [vmem:[#allocation6 + $0x370] sm:$0xff]  ;;  %v2589_v13 = vld [vmem:[#allocation6 + $0x358] sm:$0xff] }
 0x28d   : > { %v3430_v34 = vpop.f32.mrb[19].mxu0  ;;  %v3471_v35 = vpop.f32.mrb[19].mxu1  ;;  %v2593_v22 = vld [vmem:[#allocation6 + $0x378] sm:$0xff]  ;;  %v5312_v56 = vcombine.high %v2588_v12, %v2592_v33  ;;  %v5311_v20 = vcombine.low %v2588_v12, %v2592_v33  ;;  %v2608_v23 = vld [vmem:[#allocation6 + $0x3f0] sm:$0xff] }
 0x28e   : > { %v5314_v15 = vcombine.high %v2589_v13, %v2593_v22  ;;  %v5313_v49 = vcombine.low %v2589_v13, %v2593_v22  ;;  %v2605_v34 = vld [vmem:[#allocation6 + $0x3d8] sm:$0xff]  ;;  %v5327_v40 = vcombine.low %v2604_v30, %v2608_v23  ;;  %v5475_v12 = vld [vmem:[%s6700_s8 + $0x38] sm:$0xff]  }
 0x28f   : > { %4292 = vmatpush1.bf16.msra.mxu0 %v5263_v24  ;;  %4333 = vmatpush1.bf16.msra.mxu1 %v5265_v25  ;;  %v2596_v24 = vld [vmem:[#allocation6 + $0x390] sm:$0xff]  ;;  %v2609_v35 = vld [vmem:[#allocation6 + $0x3f8] sm:$0xff] }
 0x290   : > { %4293 = vmatprep.subr.bf16.mxu0 %v5272_v31  ;;  %4334 = vmatprep.subr.bf16.mxu1 %v5274_v32  ;;  %v2600_v25 = vld [vmem:[#allocation6 + $0x3b0] sm:$0xff]  ;;  %v2597_v31 = vld [vmem:[#allocation6 + $0x398] sm:$0xff]  ;;  %v5329_v41 = vcombine.low %v2605_v34, %v2609_v35 }
 0x291   : > { %v2601_v32 = vld [vmem:[#allocation6 + $0x3b8] sm:$0xff]  ;;  %v5320_v19 = vcombine.high %v2596_v24, %v2600_v25 }
 0x292   : > { %v5322_v28 = vcombine.high %v2597_v31, %v2601_v32 }
 0x293   : > { %4294 = vmatpush1.bf16.msra.mxu0 %v5271_v36  ;;  %4335 = vmatpush1.bf16.msra.mxu1 %v5273_v37  ;;  %v5319_v36 = vcombine.low %v2596_v24, %v2600_v25  ;;  %v5321_v37 = vcombine.low %v2597_v31, %v2601_v32 }
 0x294   : > { %4295 = vmatprep.subr.bf16.mxu0 %v5280_v38  ;;  %4336 = vmatprep.subr.bf16.mxu1 %v5282_v39  ;;  %v5328_v38 = vcombine.high %v2604_v30, %v2608_v23  ;;  %v5330_v39 = vcombine.high %v2605_v34, %v2609_v35 }
 0x297   : > { %4296 = vmatpush1.bf16.msra.mxu0 %v5279_v46  ;;  %4337 = vmatpush1.bf16.msra.mxu1 %v5281_v47 }
 0x298   : > { %4297 = vmatprep.subr.bf16.mxu0 %v5288_v48  ;;  %4338 = vmatprep.subr.bf16.mxu1 %v5290_v50 }
 0x29b   : > { %4298 = vmatpush1.bf16.msra.mxu0 %v5287_v61  ;;  %4339 = vmatpush1.bf16.msra.mxu1 %v5289_v62  ;;  %v5463_v61 = vld [vmem:[%s6700_s8 + $0x8] sm:$0xff]   ;;  %v5464_v62 = vld [vmem:[%s6700_s8 + $0x50] sm:$0xff]  }
 0x29c   : > { %4299 = vmatprep.subr.bf16.mxu0 %v5296_v63  ;;  %4340 = vmatprep.subr.bf16.mxu1 %v5298_v3  ;;  %v5465_v63 = vld [vmem:[%s6700_s8 + $0x10] sm:$0xff]   ;;  %v5466_v3 = vld [vmem:[%s6700_s8 + $0x58] sm:$0xff]  }
 0x29f   : > { %4300 = vmatpush1.bf16.msra.mxu0 %v5295_v10  ;;  %4341 = vmatpush1.bf16.msra.mxu1 %v5297_v11  ;;  %v5471_v10 = vld [vmem:[%s6700_s8 + $0x28] sm:$0xff]   ;;  %v5472_v11 = vld [vmem:[%s6700_s8 + $0x70] sm:$0xff]  }
 0x2a0   : > { %4301 = vmatprep.subr.bf16.mxu0 %v5304_v44  ;;  %4342 = vmatprep.subr.bf16.mxu1 %v5306_v53  ;;  %v5473_v44 = vld [vmem:[%s6700_s8 + $0x30] sm:$0xff]   ;;  %v5474_v53 = vld [vmem:[%s6700_s8 + $0x78] sm:$0xff]  }
 0x2a3   : > { %4302 = vmatpush1.bf16.msra.mxu0 %v5303_v16  ;;  %4343 = vmatpush1.bf16.msra.mxu1 %v5305_v17 }
 0x2a4   : > { %4303 = vmatprep.subr.bf16.mxu0 %v5312_v56  ;;  %4344 = vmatprep.subr.bf16.mxu1 %v5314_v15 }
 0x2a7   : > { %4304 = vmatpush1.bf16.msra.mxu0 %v5311_v20  ;;  %4345 = vmatpush1.bf16.msra.mxu1 %v5313_v49  ;;  %v4359_v49 = vld [vmem:[%s6699_s7] sm:$0xff] }
 0x2a8   : > { %4305 = vmatprep.subr.bf16.mxu0 %v5320_v19  ;;  %4346 = vmatprep.subr.bf16.mxu1 %v5322_v28  ;;  %v4364_v19 = vrot.slane %v4359_v49, %v5986_v6 }
 0x2ab   : > { %4306 = vmatpush1.bf16.msra.mxu0 %v5319_v36  ;;  %4347 = vmatpush1.bf16.msra.mxu1 %v5321_v37 }
 0x2ac   : > { %4307 = vmatprep.subr.bf16.mxu0 %v5328_v38  ;;  %4348 = vmatprep.subr.bf16.mxu1 %v5330_v39 }
 0x2af   : > { %4308 = vmatpush1.bf16.msra.mxu0 %v5327_v40  ;;  %4349 = vmatpush1.bf16.msra.mxu1 %v5329_v41 }
 0x2b0   : > { %5358 = vmatprep.subr.bf16.mxu0 %v5460_v0 }
 0x2b2   : > { %4310 = vmatmul.mubr.bf16.vlgmr.msra.gmra.mrb[28].mxu0 %v6508_v14  ;;  %4351 = vmatmul.mubr.bf16.vlgmr.msra.gmra.mrb[28].mxu1 %v6508_v14  ;;  %v5461_v14 = vld [vmem:[%s6700_s8] sm:$0xff]  }
 0x2b3   : > { %5359 = vmatpush3.bf16.msra.mxu0 %v5461_v14 }
 0x2b4   : > { %5360 = vmatprep.subr.bf16.mxu0 %v5462_v59  ;;  %v4384_v59 = vrot.slane %v4359_v49, %v2349_v2 }
 0x2b7   : > { %5361 = vmatpush3.bf16.msra.mxu0 %v5463_v61  ;;  %v4392_v61 = vrot.slane %v4359_v49, %v2357_v7 }
 0x2b8   : > { %5362 = vmatprep.subr.bf16.mxu0 %v5464_v62 }
 0x2bb   : > { %5363 = vmatpush3.bf16.msra.mxu0 %v5465_v63 }
 0x2bc   : > { %5364 = vmatprep.subr.bf16.mxu0 %v5466_v3 }
 0x2bf   : > { %5365 = vmatpush3.bf16.msra.mxu0 %v5467_v4 }
 0x2c0   : > { %5366 = vmatprep.subr.bf16.mxu0 %v5468_v5 }
 0x2c3   : > { %5367 = vmatpush3.bf16.msra.mxu0 %v5469_v9 }
 0x2c4   : > { %5368 = vmatprep.subr.bf16.mxu0 %v5470_v26 }
 0x2c7   : > { %5369 = vmatpush3.bf16.msra.mxu0 %v5471_v10 }
 0x2c8   : > { %5370 = vmatprep.subr.bf16.mxu0 %v5472_v11 }
 0x2ca   : > { %v6526_v43 = vpop.f32.mrb[20].mxu0  ;;  %v6528_v45 = vpop.f32.mrb[20].mxu1 }
 0x2cb   : > { %v6530_v46 = vpop.f32.mrb[21].mxu0  ;;  %v6532_v47 = vpop.f32.mrb[21].mxu1  ;;  %5371 = vmatpush3.bf16.msra.mxu0 %v5473_v44  ;;  %v2481_v44 = vld [vmem:[#allocation2 + $0x3] ss:$4 sm:$0x3] }
 0x2cc   : > { %v3511_v48 = vpop.f32.mrb[22].mxu0  ;;  %v3552_v50 = vpop.f32.mrb[22].mxu1  ;;  %5372 = vmatprep.subr.bf16.mxu0 %v5474_v53 }
 0x2cd   : > { %v3512_v52 = vpop.f32.mrb[23].mxu0  ;;  %v3553_v1 = vpop.f32.mrb[23].mxu1 }
 0x2ce   : > { %v4388_v52 = vrot.slane %v4359_v49, %v2353_v55 }
 0x2cf   : > { %5373 = vmatpush3.bf16.msra.mxu0 %v5475_v12 }
 0x345   : > { %v4229_v33 = vpop.f32.mrb[24].mxu0  ;;  %v4270_v13 = vpop.f32.mrb[24].mxu1 }
 0x346   : > { %v4230_v22 = vadd.f32 %v4229_v33, %v6516_v18  ;;  %v4271_v16 = vadd.f32 %v4270_v13, %v6518_v54  ;;  %v4231_v17 = vpop.f32.mrb[25].mxu0  ;;  %v4272_v56 = vpop.f32.mrb[25].mxu1  ;;  %v4372_v18 = vrot.slane %v4359_v49, %v2337_v21  ;;  %v4368_v54 = vrot.slane %v4359_v49, %v5975_v51 }
 0x347   : > { %v4232_v15 = vadd.f32 %v4231_v17, %v6520_v29  ;;  %v4273_v24 = vadd.f32 %v4272_v56, %v6522_v57  ;;  %v4233_v25 = vpop.f32.mrb[26].mxu0  ;;  %v4274_v31 = vpop.f32.mrb[26].mxu1  ;;  %v4376_v29 = vrot.slane %v4359_v49, %v2341_v27  ;;  %v4380_v27 = vrot.slane %v4359_v49, %v2345_v60 }
 0x348   : > { %v4234_v32 = vpop.f32.mrb[27].mxu0  ;;  %v4275_v20 = vpop.f32.mrb[27].mxu1  ;;  %v4401_v28 = vadd.f32 %v4364_v19, %v4230_v22  ;;  %v4403_v57 = vadd.f32 %v4372_v18, %v4271_v16  ;;  %v4455_v33 = vrot.slane %v2481_v44, %v5975_v51 }
 0x349   : > { %v4402_v30 = vadd.f32 %v4368_v54, %v4232_v15  ;;  %v4404_v23 = vadd.f32 %v4376_v29, %v4273_v24 }
 0x34a   : > { %v5331_v34 = vmul.f32 -1.442695, %v4401_v28  ;;  %v5333_v35 = vmul.f32 -1.442695, %v4403_v57 }
 0x34b   : > { %v5332_v36 = vmul.f32 -1.442695, %v4402_v30  ;;  %v5334_v37 = vmul.f32 -1.442695, %v4404_v23 }
 0x34c   : > { %5508 = vpow2.f32 %v5331_v34 }
 0x34d   : > { %5510 = vpow2.f32 %v5333_v35 }
 0x34e   : > { %5512 = vpow2.f32 %v5332_v36 }
 0x34f   : > { %5514 = vpow2.f32 %v5334_v37 }
 0x356   : > { %v5509_v38 = vpop.eup %5508 }
 0x357   : > { %v5511_v39 = vpop.eup %5510  ;;  %v4427_v41 = vadd.f32 1.0, %v5509_v38 }
 0x358   : > { %v5513_v21 = vpop.eup %5512  ;;  %v4429_v48 = vadd.f32 1.0, %v5511_v39 }
 0x359   : > { %v5515_v40 = vpop.eup %5514  ;;  %v4428_v50 = vadd.f32 1.0, %v5513_v21  ;;  %5516 = vrcp.f32 %v4427_v41 }
 0x35a   : > { %v4430_v1 = vadd.f32 1.0, %v5515_v40  ;;  %5518 = vrcp.f32 %v4429_v48 }
 0x35b   : > { %5520 = vrcp.f32 %v4428_v50 }
 0x35c   : > { %5522 = vrcp.f32 %v4430_v1 }
 0x385   : > { %v4311_v0 = vpop.f32.mrb[28].mxu0  ;;  %v4352_v14 = vpop.f32.mrb[28].mxu1 }
 0x386   : > { %v4312_v62 = vadd.f32 %v4311_v0, %v6526_v43  ;;  %v4353_v63 = vadd.f32 %v4352_v14, %v6528_v45  ;;  %v4313_v3 = vpop.f32.mrb[29].mxu0  ;;  %v4354_v4 = vpop.f32.mrb[29].mxu1 }
 0x387   : > { %v4314_v60 = vadd.f32 %v4313_v3, %v6530_v46  ;;  %v4355_v55 = vadd.f32 %v4354_v4, %v6532_v47  ;;  %v4315_v5 = vpop.f32.mrb[30].mxu0  ;;  %v4356_v9 = vpop.f32.mrb[30].mxu1  ;;  %v4451_v47 = vrot.slane %v2481_v44, %v5986_v6 }
 0x388   : > { %v4405_v26 = vadd.f32 %v4380_v27, %v4312_v62  ;;  %v4407_v2 = vadd.f32 %v4388_v52, %v4353_v63  ;;  %v4316_v10 = vpop.f32.mrb[31].mxu0  ;;  %v4357_v42 = vpop.f32.mrb[31].mxu1 }
 0x389   : > { %v4406_v7 = vadd.f32 %v4384_v59, %v4314_v60  ;;  %v4408_v11 = vadd.f32 %v4392_v61, %v4355_v55  ;;  %v5517_v46 = vpop.eup %5516 }
 0x38a   : > { %v5335_v43 = vmul.f32 -1.442695, %v4405_v26  ;;  %5524 = vtanh.f32 %v4407_v2  ;;  %v5519_v53 = vpop.eup %5518 }
 0x38b   : > { %v5336_v45 = vmul.f32 -1.442695, %v4406_v7  ;;  %5526 = vtanh.f32 %v4408_v11  ;;  %v5521_v12 = vpop.eup %5520  ;;  %v4458_v17 = vmul.f32 %v5519_v53, %v4451_v47 }
 0x38c   : > { %5528 = vpow2.f32 %v5335_v43  ;;  %v5523_v13 = vpop.eup %5522 }
 0x38d   : > { %5530 = vpow2.f32 %v5336_v45  ;;  %v4459_v24 = vmul.f32 %v5523_v13, %v4455_v33 }
 0x394   : > { %v5525_v22 = vpop.eup %5524 }
 0x395   : > { %v5527_v16 = vpop.eup %5526  ;;  %v4460_v56 = vmul.f32 %v5525_v22, %v5517_v46 }
 0x396   : > { %v5529_v15 = vpop.eup %5528  ;;  %v4461_v25 = vmul.f32 %v5527_v16, %v5521_v12 }
 0x397   : > { %v5531_v31 = vpop.eup %5530  ;;  %v4431_v32 = vadd.f32 1.0, %v5529_v15  ;;  %v4462_v20 = vadd.f32 %v4460_v56, %v4458_v17 }
 0x398   : > { %v4432_v49 = vadd.f32 1.0, %v5531_v31  ;;  %v4463_v19 = vadd.f32 %v4461_v25, %v4459_v24 }
 0x399   : > { %5532 = vrcp.f32 %v4431_v32 }
 0x39a   : > { %5534 = vtanh.f32 %v4462_v20  ;;  %v4489_v18 = vcombine.low %v4462_v20, %v4463_v19 }
 0x39b   : > { %5536 = vrcp.f32 %v4432_v49 }
 0x39c   : > { %v4496_v6 = vrot.slane %v4489_v18, %v6493_v58  ;;  %5538 = vtanh.f32 %v4463_v19 }
 0x39e   : > { %v4503_v51 = vrot.slane %v4496_v6, %v6493_v58 }
 0x3a0   : > { %4505 = vst.msk [vmem:[#allocation2 + $0x3] ss:$4 sm:$0x3] %vm6497_vm0, %v4503_v51 }
 0x3a3   : > { %v5533_v54 = vpop.eup %5532 }
 0x3a4   : > { %v5535_v29 = vpop.eup %5534 }
 0x3a5   : > { %v5537_v28 = vpop.eup %5536  ;;  %v4466_v57 = vmul.f32 %v5535_v29, %v5533_v54 }
 0x3a6   : > { %v5539_v30 = vpop.eup %5538 }
 0x3a7   : > { %v4467_v23 = vmul.f32 %v5539_v30, %v5537_v28  ;;  %v4506_v36 = vpack.c.bf16 %v4466_v57, %v4466_v57 }
 0x3a9   : > { %v4470_v34 = vcombine.low %v4466_v57, %v4467_v23  ;;  %v4507_v35 = vpack.c.bf16 %v4467_v23, %v4467_v23 }
 0x3ab   : > { %v4477_v37 = vrot.slane %v4470_v34, %v6493_v58  ;;  %4669 = vmatprep.mubr.bf16.mxu0 %v4507_v35 }
 0x3ac   : > { %4670 = vmatmul.mubr.bf16.vlgmr.msra.gmra.mrb[32].mxu0 %v4506_v36 }
 0x3ad   : > { %v4484_v38 = vrot.slane %v4477_v37, %v6493_v58 }
 0x3af   : > { %4486 = vst.msk [vmem:[#allocation2 + $0x1] ss:$4 sm:$0x3] %vm6497_vm0, %v4484_v38 }
 0x3b6   : > { %v4678_v39 = vld [vmem:[#allocation2] sm:$0xff] }
 0x3b7   : > { %4679 = vst [vmem:[#allocation10] sm:$0xff] %v4678_v39 }
 0x3b8   : > { %5637 = shalt.err (!%p5634_p9)
}
 0x3b9   : > { %s5638_s26 = scalar_lea.hbm %s6703_s11, 128  ;;  %p6736_p10 = pmov %p6735_p8 }
 0x3ba   : > { %p5639_p1 = scmp.ne.s32.totalorder %s6703_s11, %s5638_s26  ;;  %p5644_p13 = scmp.lt.u32.totalorder %s5638_s26, %s6703_s11 }
 0x3bc   : > { %p5640_p5 = pnand %p5639_p1, %p6736_p10 }
 0x3be   : > { %p5641_p11 = pneg %p5640_p5 }
 0x3c0   : > { %p5646_p4 = pnand %p5644_p13, %p5641_p11 }
 0x3c2   : > { %5649 = shalt.err (!%p5646_p4)
}
 0x3c3   : > { %p6737_p7 = pmov %p6735_p8  ;;  %v4540_v8 = vld [vmem:[%s6701_s9] sm:$0x1]  ;;  %s5353_s15 = sshll.u32 %s5815_s21, 4 }
 0x3c4   : > { %s4693_s10 = sshll.u32 %s5964_s17, 4  ;;  %s6738_s24 = sld [smem:[#allocation22_spill]]  ;;  %s6645_s10 = int_to_ptr.vmem [resolvable:$true] %s4693_s10 }
 0x3c5   : > { %5394 = dma.vmem_to_hbm [thread:$0]  (%p6737_p7), %s4705_s29, 128, %s6703_s11, [#allocation11]  }
 0x3c6   : > { %s4681_s29 = scalar_lea.sflag [#allocation5], %s416_s23  ;;  %s5650_s20 = scalar_lea.vmem %s6645_s10, 16 }
 0x3c7   : > { %p5651_p8 = scmp.ne.s32.totalorder %s6645_s10, %s5650_s20  ;;  %p6739_p12 = scmp.ne.s32.totalorder %s6721_s27, 0 }
 0x3c8   : > { %s5733_s28 = smov [#allocation9]  }
 0x3c9   : > { %p5652_p0 = pnand %p5651_p8, %p6739_p12  ;;  %s5654_s25 = sshll.u32 %s5733_s28, 4  ;;  %s5655_s25 = int_to_ptr.vmem [resolvable:$false] %s5654_s25 }
 0x3ca   : > { %s6643_s26 = scalar_lea.hbm %s6738_s24, %s5353_s15  ;;  %s5656_s30 = scalar_lea.vmem %s5655_s25, 32 }
 0x3cb   : > { %p5653_p3 = pneg %p5652_p0  ;;  %p5657_p2 = scmp.lt.s32.totalorder %s6645_s10, %s5655_s25 }
 0x3cc   : > { %p5658_p6 = scmp.lt.s32.totalorder %s5656_s30, %s5650_s20 }
 0x3ce   : > { %p5659_p9 = por %p5658_p6, %p5657_p2 }
 0x3d0   : > { %p5660_p1 = pnand %p5659_p9, %p5653_p3 }
 0x47f   : > { %v5374_v58 = vpop.f32.mrb[32].mxu0 }
 0x480   : > { %v5375_v21 = vpop.f32.mrb[33].mxu0 }
 0x481   : > { %v5376_v40 = vadd.f32 %v5375_v21, %v5374_v58  ;;  %v5377_v41 = vpop.f32.mrb[34].mxu0 }
 0x482   : > { %v5378_v48 = vpop.f32.mrb[35].mxu0 }
 0x483   : > { %v4672_v50 = vadd.f32 %v5376_v40, %v4540_v8 }
 0x485   : > { %4677 = vst [vmem:[%s5964_s17] sm:$0x1] %v4672_v50 }
 0x486   : > { %5663 = shalt.err (!%p5660_p1)
}
 0x487   : > { %s5664_s23 = scalar_lea.hbm %s6643_s26, 16  ;;  %s5668_s16 = scalar_lea.hbm %s6738_s24, 128 }
 0x488   : > { %p5665_p10 = scmp.ne.s32.totalorder %s6643_s26, %s5664_s23  ;;  %p5669_p13 = scmp.lt.u32.totalorder %s6643_s26, %s6738_s24 }
 0x489   : > { %p5670_p4 = scmp.lt.u32.totalorder %s5668_s16, %s5664_s23  ;;  %p5672_p8 = scmp.lt.u32.totalorder %s5664_s23, %s6643_s26 }
 0x48a   : > { %p5666_p5 = pnand %p5665_p10, %p6739_p12 }
 0x48b   : > { %p5671_p7 = por %p5670_p4, %p5669_p13 }
 0x48c   : > { %p5667_p11 = pneg %p5666_p5 }
 0x48d   : > { %p5673_p0 = por %p5672_p8, %p5671_p7 }
 0x48f   : > { %p5674_p3 = pnand %p5673_p0, %p5667_p11 }
 0x491   : > { %5677 = shalt.err (!%p5674_p3)
}
 0x492   : > { %5392 = dma.vmem_to_hbm [thread:$0]  (%p6739_p12), %s6645_s10, 16, %s6643_s26, %s4681_s29  }
 0x493   : > { %p6740_p2 = scmp.eq.s32.totalorder %s5815_s21, 7 }
 0x495   : > { %5703 = dma.done.wait (%p6740_p2), [#allocation11], 128   ;;  %p6741_p6 = pmov %p6740_p2 }
 0x497   : > { %5705 = vsyncadd (%p6741_p6), [#allocation11], 4294967168 }
 0x498 PF: > { %s6742_s15 = sld [smem:[#allocation18_spill]]  ;;  %s6743_s13 = sld [smem:[#allocation16_spill]] }
 0x499   : > { %s6744_s22 = sld [smem:[#allocation21_spill]] }
 0x49e   : > { %p5420_p9 = scmp.ge.s32.totalorder %s6742_s15, 2  ;;  %s4720_s20 = sand.u32 1, %s6743_s13  }
 0x49f   : > { %p6745_p1 = scmp.ne.s32.totalorder %s6744_s22, 0  ;;  %s4721_s28 = scalar_lea.sflag [#allocation5], %s4720_s20 }
 0x4a1   : > { %p5409_p10 = pnand %p5420_p9, %p6745_p1 }
 0x4a3   : > { %5707 = dma.done.wait (!%p5409_p10), %s4721_s28, 16  }
 0x4a4   : > { %5709 = vsyncadd (!%p5409_p10), %s4721_s28, 4294967280  ;;  %s6746_s20 = sld [smem:[#allocation19_spill]]  ;;  %s6747_s27 = sld [smem:[#allocation17_spill]] }
 0x4a5   : > { %s6748_s19 = sld [smem:[#allocation20_spill]]  ;;  %s6749_s17 = smov %s5716_s18 }
 0x4aa   : > { %p25_p12 = scmp.ge.s32.totalorder %s6746_s20, 10   ;;  %s6750_s18 = smov %s6747_s27 }
 0x4ac   :  { %27 = sbr.rel (!%p25_p12) target bundleno = 8 (0x8), region = 123 }
 0x4b3   :  { %4725 = vsyncpa [#allocation4], 1 }
 0x4b4   :  { %4727 = vsyncpa [#allocation4 + $0x1], 1 }
 0x4b5   :  { %4728 = vsyncpa [#allocation7], 1 }
 0x4b6   :  { %4729 = vsyncpa [#allocation5], 1 }
 0x4b7   :  { %4731 = vsyncpa [#allocation5 + $0x1], 1 }
 0x4b8   :  { %4732 = vsyncpa [#allocation11], 1 }

</bundles_post_ra>
